<compile_context>
chip_gen: v6e
topology: v6e:2x2x1
jax: 0.10.0
libtpu: 0.0.40
codegen_flags: <defaults>
</compile_context>

<pallas_src>
import functools
import numpy as np
import jax
import jax.numpy as jnp
from jax.experimental import pallas as pl
from jax.experimental.pallas import tpu as pltpu


# ------------------------- device / tiling helpers --------------------------

@functools.lru_cache(maxsize=None)
def _tpu_vmem_capacity_bytes():
    try:
        return int(pltpu.get_tpu_info().vmem_capacity_bytes)
    except Exception:
        return None


def _mosaic_params(dims):
    cap = _tpu_vmem_capacity_bytes()
    if cap is None:
        return pltpu.CompilerParams(dimension_semantics=dims)
    # raise the scoped VMEM limit above the (16/32 MiB) default, keep headroom.
    return pltpu.CompilerParams(
        dimension_semantics=dims,
        vmem_limit_bytes=max(32 * 1024 * 1024, (cap * 3) // 4))


def _device_tile_targets():
    """(row target for LN/tail kernels, row target (Wb*N) for window attention)."""
    cap = _tpu_vmem_capacity_bytes() or (128 * 1024 * 1024)
    if cap <= 64 * 1024 * 1024:          # v7x: 64 MiB physical VMEM per TC
        return 512, 256
    return 1024, 1024                    # v5e / v6e: 128 MiB physical VMEM


def _choose_row_block(M, target):
    """Largest divisor of M that is a multiple of 8, <= target, and (when possible)
    leaves a grid of >= 2 steps (DMA/compute overlap + 2-TC sharding)."""
    cands = [d for d in range(1, M + 1) if M % d == 0 and (d % 8 == 0 or d == M)]
    good = [d for d in cands if d <= target and M // d >= 2]
    if good:
        return max(good)
    ok = [d for d in cands if d <= target]
    return max(ok) if ok else M


def _choose_window_block(nWt, nW_mask, N, target_rows):
    """Windows per grid step: divides nWt (and nW when masked), Wb*N <= target_rows,
    and leaves a grid of >= 2 steps when possible."""
    def ok(d):
        return (nWt % d == 0 and (nW_mask is None or nW_mask % d == 0)
                and d * N <= target_rows)
    cands = [d for d in range(1, nWt + 1) if ok(d)]
    good = [d for d in cands if nWt // d >= 2]
    if good:
        return max(good)
    return max(cands) if cands else 1


# ----------------------------- Pallas kernels ------------------------------

def _layernorm_kernel(x_ref, g_ref, b_ref, o_ref):
    x = x_ref[...].astype(jnp.float32)                    # (Mb, C)
    mu = jnp.mean(x, axis=-1, keepdims=True)
    xc = x - mu
    var = jnp.mean(xc * xc, axis=-1, keepdims=True)
    y = xc * jax.lax.rsqrt(var + 1e-5)
    o_ref[...] = (y * g_ref[...] + b_ref[...]).astype(o_ref.dtype)


def layernorm(x2d, gamma, beta, *, block_rows):
    """Row-tiled LayerNorm (only used on the padding path; LN1 is usually fused)."""
    M, C = x2d.shape
    mb = _choose_row_block(M, block_rows)
    return pl.pallas_call(
        _layernorm_kernel,
        out_shape=jax.ShapeDtypeStruct((M, C), x2d.dtype),
        grid=(M // mb,),
        in_specs=[
            pl.BlockSpec((mb, C), lambda i: (i, 0)),
            pl.BlockSpec((1, C), lambda i: (0, 0)),
            pl.BlockSpec((1, C), lambda i: (0, 0)),
        ],
        out_specs=pl.BlockSpec((mb, C), lambda i: (i, 0)),
        compiler_params=_mosaic_params(("parallel",)),
    )(x2d, gamma.reshape(1, C), beta.reshape(1, C))


def _window_attn_kernel(*refs, num_heads, scale, apply_ln, has_mask):
    if has_mask:
        (x_ref, g1_ref, b1_ref, wqkv_ref, bqkv_ref, wproj_ref, bproj_ref,
         rel_ref, mask_ref, o_ref) = refs
    else:
        (x_ref, g1_ref, b1_ref, wqkv_ref, bqkv_ref, wproj_ref, bproj_ref,
         rel_ref, o_ref) = refs
        mask_ref = None

    Wb, N, C = x_ref.shape
    nH = num_heads
    hd = C // nH

    x = x_ref[...].reshape(Wb * N, C).astype(jnp.float32)
    if apply_ln:                                          # fused LayerNorm1 (per-token)
        mu = jnp.mean(x, axis=-1, keepdims=True)
        xc = x - mu
        var = jnp.mean(xc * xc, axis=-1, keepdims=True)
        x = xc * jax.lax.rsqrt(var + 1e-5) * g1_ref[...] + b1_ref[...]

    # one bf16 MXU matmul for all Wb windows (f32 accumulate)
    qkv = jnp.dot(x.astype(jnp.bfloat16), wqkv_ref[...],
                  preferred_element_type=jnp.float32) + bqkv_ref[...]
    q = qkv[:, 0 * C:1 * C].reshape(Wb, N, C).astype(jnp.bfloat16)
    k = qkv[:, 1 * C:2 * C].reshape(Wb, N, C).astype(jnp.bfloat16)
    v = qkv[:, 2 * C:3 * C].reshape(Wb, N, C).astype(jnp.bfloat16)

    # split heads into a single leading batch dim -> (Wb*nH, N, hd); batch index is
    # w*nH + h.  Only leading-dim stacks / reshapes (Mosaic-friendly).
    def split_heads(t):
        t = jnp.stack([t[..., h * hd:(h + 1) * hd] for h in range(nH)], axis=1)
        return t.reshape(Wb * nH, N, hd)

    qh, kh, vh = split_heads(q), split_heads(k), split_heads(v)

    # head-batched score matmul: one MXU dispatch for all windows and heads
    s = jnp.einsum('bnd,bmd->bnm', qh, kh,
                   preferred_element_type=jnp.float32)    # (Wb*nH, N, N)
    s = s.reshape(Wb, nH, N, N) * np.float32(scale)
    s = s + rel_ref[...][None]                            # (nH, N, N) rel-pos bias
    if mask_ref is not None:
        s = s + mask_ref[...][:, None]                    # (Wb, N, N) shift mask
    s = s - jnp.max(s, axis=-1, keepdims=True)
    e = jnp.exp(s)
    p = e * pl.reciprocal(jnp.sum(e, axis=-1, keepdims=True), approx=True)
    p = p.reshape(Wb * nH, N, N).astype(jnp.bfloat16)

    # head-batched context matmul
    ctx = jnp.einsum('bnm,bmd->bnd', p, vh,
                     preferred_element_type=jnp.float32)  # (Wb*nH, N, hd)
    ctx = ctx.reshape(Wb, nH, N, hd)
    ctx = jnp.concatenate([ctx[:, h] for h in range(nH)], axis=-1)   # (Wb, N, C)
    ctx = ctx.reshape(Wb * N, C)

    y = jnp.dot(ctx.astype(jnp.bfloat16), wproj_ref[...],
                preferred_element_type=jnp.float32) + bproj_ref[...]
    o_ref[...] = y.reshape(Wb, N, C).astype(o_ref.dtype)


def window_attention(x_windows, g1, b1, wqkv, bqkv, wproj, bproj,
                     rel_bias, mask, num_heads, scale, apply_ln, target_rows):
    nWt, N, C = x_windows.shape
    nH = num_heads
    has_mask = mask is not None
    nW_mask = mask.shape[0] if has_mask else None
    Wb = _choose_window_block(nWt, nW_mask, N, target_rows)

    kernel = functools.partial(_window_attn_kernel, num_heads=nH, scale=scale,
                               apply_ln=apply_ln, has_mask=has_mask)

    in_specs = [
        pl.BlockSpec((Wb, N, C), lambda w: (w, 0, 0)),
        pl.BlockSpec((1, C), lambda w: (0, 0)),
        pl.BlockSpec((1, C), lambda w: (0, 0)),
        pl.BlockSpec((C, 3 * C), lambda w: (0, 0)),
        pl.BlockSpec((1, 3 * C), lambda w: (0, 0)),
        pl.BlockSpec((C, C), lambda w: (0, 0)),
        pl.BlockSpec((1, C), lambda w: (0, 0)),
        pl.BlockSpec((nH, N, N), lambda w: (0, 0, 0)),    # rel-pos bias (grid-invariant)
    ]
    args = [x_windows, g1.reshape(1, C), b1.reshape(1, C),
            wqkv.astype(jnp.bfloat16), bqkv.reshape(1, 3 * C),
            wproj.astype(jnp.bfloat16), bproj.reshape(1, C), rel_bias]
    if has_mask:
        n_mask_blocks = nW_mask // Wb                     # Wb divides nW (enforced above)
        in_specs.append(
            pl.BlockSpec((Wb, N, N), lambda w: (w % n_mask_blocks, 0, 0)))
        args.append(mask)

    return pl.pallas_call(
        kernel,
        out_shape=jax.ShapeDtypeStruct((nWt, N, C), x_windows.dtype),
        grid=(nWt // Wb,),
        in_specs=in_specs,
        out_specs=pl.BlockSpec((Wb, N, C), lambda w: (w, 0, 0)),
        compiler_params=_mosaic_params(("parallel",)),
    )(*args)


def _block_tail_kernel(sc_ref, at_ref, g_ref, b_ref, w1_ref, b1_ref,
                       w2_ref, b2_ref, o_ref):
    # x = shortcut + attn_out ; out = x + fc2(gelu(fc1(LN2(x))))
    x = sc_ref[...].astype(jnp.float32) + at_ref[...].astype(jnp.float32)   # (Mb, C)
    mu = jnp.mean(x, axis=-1, keepdims=True)
    xc = x - mu
    var = jnp.mean(xc * xc, axis=-1, keepdims=True)
    xn = xc * jax.lax.rsqrt(var + 1e-5) * g_ref[...] + b_ref[...]
    h = jnp.dot(xn.astype(jnp.bfloat16), w1_ref[...],
                preferred_element_type=jnp.float32) + b1_ref[...]
    # exact-erf GELU (parity with torch.nn.GELU default); tanh approx would be cheaper.
    h = 0.5 * h * (1.0 + jax.lax.erf(h * np.float32(1.0 / np.sqrt(2.0))))
    y = jnp.dot(h.astype(jnp.bfloat16), w2_ref[...],
                preferred_element_type=jnp.float32) + b2_ref[...]
    o_ref[...] = (x + y).astype(o_ref.dtype)


def block_tail(shortcut2d, attn2d, g, b, w1, b1, w2, b2, *, block_rows):
    M, C = shortcut2d.shape
    Hd = w1.shape[1]
    mb = _choose_row_block(M, block_rows)
    return pl.pallas_call(
        _block_tail_kernel,
        out_shape=jax.ShapeDtypeStruct((M, C), shortcut2d.dtype),
        grid=(M // mb,),
        in_specs=[
            pl.BlockSpec((mb, C), lambda i: (i, 0)),
            pl.BlockSpec((mb, C), lambda i: (i, 0)),
            pl.BlockSpec((1, C), lambda i: (0, 0)),
            pl.BlockSpec((1, C), lambda i: (0, 0)),
            pl.BlockSpec((C, Hd), lambda i: (0, 0)),
            pl.BlockSpec((1, Hd), lambda i: (0, 0)),
            pl.BlockSpec((Hd, C), lambda i: (0, 0)),
            pl.BlockSpec((1, C), lambda i: (0, 0)),
        ],
        out_specs=pl.BlockSpec((mb, C), lambda i: (i, 0)),
        compiler_params=_mosaic_params(("parallel",)),
    )(shortcut2d, attn2d, g.reshape(1, C), b.reshape(1, C),
      w1.astype(jnp.bfloat16), b1.reshape(1, Hd),
      w2.astype(jnp.bfloat16), b2.reshape(1, C))


# ------------------------------ JAX / numpy glue -----------------------------

def window_partition(x, ws):
    B, H, W, C = x.shape
    x = x.reshape(B, H // ws, ws, W // ws, ws, C)
    return x.transpose(0, 1, 3, 2, 4, 5).reshape(-1, ws, ws, C)


def window_reverse(windows, ws, Hp, Wp):
    B = windows.shape[0] // ((Hp // ws) * (Wp // ws))
    x = windows.reshape(B, Hp // ws, Wp // ws, ws, ws, -1)
    return x.transpose(0, 1, 3, 2, 4, 5).reshape(B, Hp, Wp, -1)


def relative_position_index(ws):
    coords = np.stack(np.meshgrid(np.arange(ws), np.arange(ws), indexing="ij"))
    coords_flatten = coords.reshape(2, -1)
    rel = coords_flatten[:, :, None] - coords_flatten[:, None, :]
    rel = rel.transpose(1, 2, 0).astype(np.int64)
    rel[:, :, 0] += ws - 1
    rel[:, :, 1] += ws - 1
    rel[:, :, 0] *= 2 * ws - 1
    return rel.sum(-1)                                                           # (N, N)


def create_mask(H, W, window_size, shift_size):
    ws = window_size
    Hp = int(np.ceil(H / ws)) * ws
    Wp = int(np.ceil(W / ws)) * ws
    img_mask = np.zeros((1, Hp, Wp, 1), dtype=np.float32)
    h_slices = (slice(0, -ws), slice(-ws, -shift_size), slice(-shift_size, None))
    w_slices = (slice(0, -ws), slice(-ws, -shift_size), slice(-shift_size, None))
    cnt = 0
    for h in h_slices:
        for w in w_slices:
            img_mask[:, h, w, :] = cnt
            cnt += 1
    mw = img_mask.reshape(1, Hp // ws, ws, Wp // ws, ws, 1)
    mw = mw.transpose(0, 1, 3, 2, 4, 5).reshape(-1, ws * ws)
    attn_mask = mw[:, None, :] - mw[:, :, None]
    attn_mask = np.where(attn_mask != 0, np.float32(-100.0), np.float32(0.0))
    return jnp.asarray(attn_mask)                                                # (nW, N, N)


# --------------------------- block / layer forward ---------------------------

def swin_block_forward(x, p, H, W, window_size, shift_size, num_heads,
                       attn_mask, rel_index, row_target, attn_rows_target):
    B, L, C = x.shape
    ws = window_size
    N = ws * ws
    nH = num_heads
    shortcut = x

    pad_r = (ws - W % ws) % ws
    pad_b = (ws - H % ws) % ws
    # LN is per-token, so when there is no spatial padding it commutes exactly with
    # roll/window_partition and can be fused into the attention kernel.
    fuse_ln1 = (pad_r == 0 and pad_b == 0)

    if fuse_ln1:
        xn = x.reshape(B, H, W, C)
    else:
        xn = layernorm(x.reshape(B * L, C), p["norm1_g"], p["norm1_b"],
                       block_rows=row_target).reshape(B, H, W, C)
        xn = jnp.pad(xn, ((0, 0), (0, pad_b), (0, pad_r), (0, 0)))
    Hp, Wp = H + pad_b, W + pad_r

    if shift_size > 0:
        shifted = jnp.roll(xn, shift=(-shift_size, -shift_size), axis=(1, 2))
        mask = attn_mask
    else:
        shifted = xn
        mask = None

    windows = window_partition(shifted, ws).reshape(-1, N, C)

    # (nH, N, N) relative-position bias; mask is passed separately (never the
    # combined (nW, nH, N, N) tensor).
    rel_bias = p["rel_table"][rel_index.reshape(-1)].reshape(N, N, nH).transpose(2, 0, 1)

    scale = (C // nH) ** -0.5
    attn_windows = window_attention(windows,
                                    p["norm1_g"], p["norm1_b"],
                                    p["wqkv"], p["bqkv"],
                                    p["wproj"], p["bproj"],
                                    rel_bias, mask, nH, scale,
                                    apply_ln=fuse_ln1,
                                    target_rows=attn_rows_target)

    attn_windows = attn_windows.reshape(-1, ws, ws, C)
    shifted = window_reverse(attn_windows, ws, Hp, Wp)
    if shift_size > 0:
        xo = jnp.roll(shifted, shift=(shift_size, shift_size), axis=(1, 2))
    else:
        xo = shifted
    if pad_r > 0 or pad_b > 0:
        xo = xo[:, :H, :W, :]
    xo = xo.reshape(B * L, C)

    # fused: residual1 + LN2 + MLP + residual2 (drop_path = Identity)
    y = block_tail(shortcut.reshape(B * L, C), xo,
                   p["norm2_g"], p["norm2_b"],
                   p["fc1_w"], p["fc1_b"], p["fc2_w"], p["fc2_b"],
                   block_rows=row_target)
    return y.reshape(B, L, C)


def basic_layer_forward(x, params_list, H, W, window_size, num_heads):
    shift_size = window_size // 2
    attn_mask = create_mask(H, W, window_size, shift_size)
    rel_index = relative_position_index(window_size)
    row_target, attn_rows_target = _device_tile_targets()
    for i, p in enumerate(params_list):
        ss = 0 if i % 2 == 0 else shift_size
        x = swin_block_forward(x, p, H, W, window_size, ss, num_heads,
                               attn_mask, rel_index, row_target, attn_rows_target)
    # downsample=None in this config
    return x, H, W


# ------------------------------ params & main -------------------------------

def init_block_params(key, dim, num_heads, window_size, mlp_ratio=4.0):
    hidden = int(dim * mlp_ratio)
    ks = jax.random.split(key, 5)
    table_size = (2 * window_size - 1) * (2 * window_size - 1)
    return {
        "norm1_g": jnp.ones((dim,), jnp.float32),
        "norm1_b": jnp.zeros((dim,), jnp.float32),
        "wqkv": 0.02 * jax.random.normal(ks[0], (dim, 3 * dim), jnp.float32),
        "bqkv": jnp.zeros((3 * dim,), jnp.float32),
        "rel_table": 0.02 * jax.random.normal(ks[1], (table_size, num_heads), jnp.float32),
        "wproj": 0.02 * jax.random.normal(ks[2], (dim, dim), jnp.float32),
        "bproj": jnp.zeros((dim,), jnp.float32),
        "norm2_g": jnp.ones((dim,), jnp.float32),
        "norm2_b": jnp.zeros((dim,), jnp.float32),
        "fc1_w": 0.02 * jax.random.normal(ks[3], (dim, hidden), jnp.float32),
        "fc1_b": jnp.zeros((hidden,), jnp.float32),
        "fc2_w": 0.02 * jax.random.normal(ks[4], (hidden, dim), jnp.float32),
        "fc2_b": jnp.zeros((dim,), jnp.float32),
    }


if __name__ == "__main__":
    dim = 32
    depth = 2
    num_heads = 4
    window_size = 4
    B, H, W = 2, 8, 8

    key = jax.random.PRNGKey(0)
    kx, *kblocks = jax.random.split(key, depth + 1)
    params_list = [init_block_params(kblocks[i], dim, num_heads, window_size)
                   for i in range(depth)]

    x = jax.random.normal(kx, (B, H * W, dim), jnp.float32)

    @jax.jit
    def run(x, params_list):
        y, _, _ = basic_layer_forward(x, params_list, H, W, window_size, num_heads)
        return y

    y = jax.block_until_ready(run(x, params_list))
    assert y.shape == (B, H * W, dim)
    assert bool(jnp.all(jnp.isfinite(y)))
    print("KERNEL_OK")
</pallas_src>

<mosaic_0001>
module attributes {stable_mosaic.version = 11 : i64} {
  func.func @_window_attn_kernel(%arg0: i32, %arg1: memref<4x16x32xf32, #tpu.memory_space<vmem>>, %arg2: memref<1x32xf32, #tpu.memory_space<vmem>>, %arg3: memref<1x32xf32, #tpu.memory_space<vmem>>, %arg4: memref<32x96xbf16, #tpu.memory_space<vmem>>, %arg5: memref<1x96xf32, #tpu.memory_space<vmem>>, %arg6: memref<32x32xbf16, #tpu.memory_space<vmem>>, %arg7: memref<1x32xf32, #tpu.memory_space<vmem>>, %arg8: memref<4x16x16xf32, #tpu.memory_space<vmem>>, %arg9: memref<4x16x32xf32, #tpu.memory_space<vmem>>) attributes {dimension_semantics = [#tpu.dimension_semantics<parallel>], iteration_bounds = array<i64: 2>, scalar_prefetch = 0 : i64, scratch_operands = 0 : i64, tpu.core_type = #tpu.core_type<tc>, window_params = [{transform_indices = @transform_0, window_bounds = array<i64: 4, 16, 32>}, {pipeline_mode = #tpu.pipeline_mode<synchronous>, transform_indices = @transform_1, window_bounds = array<i64: 1, 32>}, {pipeline_mode = #tpu.pipeline_mode<synchronous>, transform_indices = @transform_2, window_bounds = array<i64: 1, 32>}, {pipeline_mode = #tpu.pipeline_mode<synchronous>, transform_indices = @transform_3, window_bounds = array<i64: 32, 96>}, {pipeline_mode = #tpu.pipeline_mode<synchronous>, transform_indices = @transform_4, window_bounds = array<i64: 1, 96>}, {pipeline_mode = #tpu.pipeline_mode<synchronous>, transform_indices = @transform_5, window_bounds = array<i64: 32, 32>}, {pipeline_mode = #tpu.pipeline_mode<synchronous>, transform_indices = @transform_6, window_bounds = array<i64: 1, 32>}, {pipeline_mode = #tpu.pipeline_mode<synchronous>, transform_indices = @transform_7, window_bounds = array<i64: 4, 16, 16>}, {transform_indices = @transform_8, window_bounds = array<i64: 4, 16, 32>}]} {
    %c0 = arith.constant 0 : index
    %c0_0 = arith.constant 0 : index
    %c0_1 = arith.constant 0 : index
    %0 = vector.load %arg1[%c0, %c0_0, %c0_1] : memref<4x16x32xf32, #tpu.memory_space<vmem>>, vector<4x16x32xf32>
    %1 = vector.shape_cast %0 : vector<4x16x32xf32> to vector<64x32xf32>
    %cst = arith.constant dense<0.000000e+00> : vector<64xf32>
    %2 = vector.multi_reduction <add>, %1, %cst [1] : vector<64x32xf32> to vector<64xf32>
    %3 = vector.shape_cast %2 : vector<64xf32> to vector<64x1xf32>
    %cst_2 = arith.constant 3.200000e+01 : f32
    %4 = vector.broadcast %cst_2 : f32 to vector<64x1xf32>
    %5 = arith.divf %3, %4 : vector<64x1xf32>
    %6 = vector.broadcast %5 : vector<64x1xf32> to vector<64x32xf32>
    %7 = arith.subf %1, %6 : vector<64x32xf32>
    %8 = arith.mulf %7, %7 : vector<64x32xf32>
    %cst_3 = arith.constant dense<0.000000e+00> : vector<64xf32>
    %9 = vector.multi_reduction <add>, %8, %cst_3 [1] : vector<64x32xf32> to vector<64xf32>
    %10 = vector.shape_cast %9 : vector<64xf32> to vector<64x1xf32>
    %cst_4 = arith.constant 3.200000e+01 : f32
    %11 = vector.broadcast %cst_4 : f32 to vector<64x1xf32>
    %12 = arith.divf %10, %11 : vector<64x1xf32>
    %cst_5 = arith.constant 9.99999974E-6 : f32
    %13 = vector.broadcast %cst_5 : f32 to vector<64x1xf32>
    %14 = arith.addf %12, %13 : vector<64x1xf32>
    %15 = math.rsqrt %14 : vector<64x1xf32>
    %16 = vector.broadcast %15 : vector<64x1xf32> to vector<64x32xf32>
    %17 = arith.mulf %7, %16 : vector<64x32xf32>
    %c0_6 = arith.constant 0 : index
    %c0_7 = arith.constant 0 : index
    %18 = vector.load %arg2[%c0_6, %c0_7] : memref<1x32xf32, #tpu.memory_space<vmem>>, vector<1x32xf32>
    %19 = vector.broadcast %18 : vector<1x32xf32> to vector<64x32xf32>
    %20 = arith.mulf %17, %19 : vector<64x32xf32>
    %c0_8 = arith.constant 0 : index
    %c0_9 = arith.constant 0 : index
    %21 = vector.load %arg3[%c0_8, %c0_9] : memref<1x32xf32, #tpu.memory_space<vmem>>, vector<1x32xf32>
    %22 = vector.broadcast %21 : vector<1x32xf32> to vector<64x32xf32>
    %23 = arith.addf %20, %22 : vector<64x32xf32>
    %24 = arith.truncf %23 : vector<64x32xf32> to vector<64x32xbf16>
    %c0_10 = arith.constant 0 : index
    %c0_11 = arith.constant 0 : index
    %25 = vector.load %arg4[%c0_10, %c0_11] : memref<32x96xbf16, #tpu.memory_space<vmem>>, vector<32x96xbf16>
    %cst_12 = arith.constant dense<0.000000e+00> : vector<64x96xf32>
    %26 = tpu.matmul %24, %25, %cst_12 {dimension_numbers = #tpu.dot_dimension_numbers<[1], [0], [0], [1], [0, 0, 1, 1], [], []>} : vector<64x32xbf16>, vector<32x96xbf16>, vector<64x96xf32> -> vector<64x96xf32>
    %c0_13 = arith.constant 0 : index
    %c0_14 = arith.constant 0 : index
    %27 = vector.load %arg5[%c0_13, %c0_14] : memref<1x96xf32, #tpu.memory_space<vmem>>, vector<1x96xf32>
    %28 = vector.broadcast %27 : vector<1x96xf32> to vector<64x96xf32>
    %29 = arith.addf %26, %28 : vector<64x96xf32>
    %30 = vector.extract_strided_slice %29 {offsets = [0, 0], sizes = [64, 32], strides = [1, 1]} : vector<64x96xf32> to vector<64x32xf32>
    %31 = vector.shape_cast %30 : vector<64x32xf32> to vector<4x16x32xf32>
    %32 = arith.truncf %31 : vector<4x16x32xf32> to vector<4x16x32xbf16>
    %33 = vector.extract_strided_slice %29 {offsets = [0, 32], sizes = [64, 32], strides = [1, 1]} : vector<64x96xf32> to vector<64x32xf32>
    %34 = vector.shape_cast %33 : vector<64x32xf32> to vector<4x16x32xf32>
    %35 = arith.truncf %34 : vector<4x16x32xf32> to vector<4x16x32xbf16>
    %36 = vector.extract_strided_slice %29 {offsets = [0, 64], sizes = [64, 32], strides = [1, 1]} : vector<64x96xf32> to vector<64x32xf32>
    %37 = vector.shape_cast %36 : vector<64x32xf32> to vector<4x16x32xf32>
    %38 = arith.truncf %37 : vector<4x16x32xf32> to vector<4x16x32xbf16>
    %39 = vector.extract_strided_slice %32 {offsets = [0, 0, 0], sizes = [4, 16, 8], strides = [1, 1, 1]} : vector<4x16x32xbf16> to vector<4x16x8xbf16>
    %40 = vector.extract_strided_slice %32 {offsets = [0, 0, 8], sizes = [4, 16, 8], strides = [1, 1, 1]} : vector<4x16x32xbf16> to vector<4x16x8xbf16>
    %41 = vector.extract_strided_slice %32 {offsets = [0, 0, 16], sizes = [4, 16, 8], strides = [1, 1, 1]} : vector<4x16x32xbf16> to vector<4x16x8xbf16>
    %42 = vector.extract_strided_slice %32 {offsets = [0, 0, 24], sizes = [4, 16, 8], strides = [1, 1, 1]} : vector<4x16x32xbf16> to vector<4x16x8xbf16>
    %43 = vector.shape_cast %39 : vector<4x16x8xbf16> to vector<4x1x16x8xbf16>
    %44 = vector.shape_cast %40 : vector<4x16x8xbf16> to vector<4x1x16x8xbf16>
    %45 = vector.shape_cast %41 : vector<4x16x8xbf16> to vector<4x1x16x8xbf16>
    %46 = vector.shape_cast %42 : vector<4x16x8xbf16> to vector<4x1x16x8xbf16>
    %47 = tpu.concatenate %43, %44, %45, %46 in 1 : vector<4x1x16x8xbf16>, vector<4x1x16x8xbf16>, vector<4x1x16x8xbf16>, vector<4x1x16x8xbf16> -> vector<4x4x16x8xbf16>
    %48 = vector.shape_cast %47 : vector<4x4x16x8xbf16> to vector<16x16x8xbf16>
    %49 = vector.extract_strided_slice %35 {offsets = [0, 0, 0], sizes = [4, 16, 8], strides = [1, 1, 1]} : vector<4x16x32xbf16> to vector<4x16x8xbf16>
    %50 = vector.extract_strided_slice %35 {offsets = [0, 0, 8], sizes = [4, 16, 8], strides = [1, 1, 1]} : vector<4x16x32xbf16> to vector<4x16x8xbf16>
    %51 = vector.extract_strided_slice %35 {offsets = [0, 0, 16], sizes = [4, 16, 8], strides = [1, 1, 1]} : vector<4x16x32xbf16> to vector<4x16x8xbf16>
    %52 = vector.extract_strided_slice %35 {offsets = [0, 0, 24], sizes = [4, 16, 8], strides = [1, 1, 1]} : vector<4x16x32xbf16> to vector<4x16x8xbf16>
    %53 = vector.shape_cast %49 : vector<4x16x8xbf16> to vector<4x1x16x8xbf16>
    %54 = vector.shape_cast %50 : vector<4x16x8xbf16> to vector<4x1x16x8xbf16>
    %55 = vector.shape_cast %51 : vector<4x16x8xbf16> to vector<4x1x16x8xbf16>
    %56 = vector.shape_cast %52 : vector<4x16x8xbf16> to vector<4x1x16x8xbf16>
    %57 = tpu.concatenate %53, %54, %55, %56 in 1 : vector<4x1x16x8xbf16>, vector<4x1x16x8xbf16>, vector<4x1x16x8xbf16>, vector<4x1x16x8xbf16> -> vector<4x4x16x8xbf16>
    %58 = vector.shape_cast %57 : vector<4x4x16x8xbf16> to vector<16x16x8xbf16>
    %59 = vector.extract_strided_slice %38 {offsets = [0, 0, 0], sizes = [4, 16, 8], strides = [1, 1, 1]} : vector<4x16x32xbf16> to vector<4x16x8xbf16>
    %60 = vector.extract_strided_slice %38 {offsets = [0, 0, 8], sizes = [4, 16, 8], strides = [1, 1, 1]} : vector<4x16x32xbf16> to vector<4x16x8xbf16>
    %61 = vector.extract_strided_slice %38 {offsets = [0, 0, 16], sizes = [4, 16, 8], strides = [1, 1, 1]} : vector<4x16x32xbf16> to vector<4x16x8xbf16>
    %62 = vector.extract_strided_slice %38 {offsets = [0, 0, 24], sizes = [4, 16, 8], strides = [1, 1, 1]} : vector<4x16x32xbf16> to vector<4x16x8xbf16>
    %63 = vector.shape_cast %59 : vector<4x16x8xbf16> to vector<4x1x16x8xbf16>
    %64 = vector.shape_cast %60 : vector<4x16x8xbf16> to vector<4x1x16x8xbf16>
    %65 = vector.shape_cast %61 : vector<4x16x8xbf16> to vector<4x1x16x8xbf16>
    %66 = vector.shape_cast %62 : vector<4x16x8xbf16> to vector<4x1x16x8xbf16>
    %67 = tpu.concatenate %63, %64, %65, %66 in 1 : vector<4x1x16x8xbf16>, vector<4x1x16x8xbf16>, vector<4x1x16x8xbf16>, vector<4x1x16x8xbf16> -> vector<4x4x16x8xbf16>
    %68 = vector.shape_cast %67 : vector<4x4x16x8xbf16> to vector<16x16x8xbf16>
    "tpu.trace_start"() <{level = 10 : i32, message = "bnd,bmd->bnm"}> : () -> ()
    %cst_15 = arith.constant dense<0.000000e+00> : vector<16x16x16xf32>
    %69 = tpu.matmul %48, %58, %cst_15 {dimension_numbers = #tpu.dot_dimension_numbers<[2], [2], [1], [1], [0, 0, 0, 1, 1, 1], [0], [0]>} : vector<16x16x8xbf16>, vector<16x16x8xbf16>, vector<16x16x16xf32> -> vector<16x16x16xf32>
    "tpu.trace_stop"() : () -> ()
    %70 = vector.shape_cast %69 : vector<16x16x16xf32> to vector<4x4x16x16xf32>
    %cst_16 = arith.constant 0.353553385 : f32
    %71 = vector.broadcast %cst_16 : f32 to vector<4x4x16x16xf32>
    %72 = arith.mulf %70, %71 : vector<4x4x16x16xf32>
    %c0_17 = arith.constant 0 : index
    %c0_18 = arith.constant 0 : index
    %c0_19 = arith.constant 0 : index
    %73 = vector.load %arg8[%c0_17, %c0_18, %c0_19] : memref<4x16x16xf32, #tpu.memory_space<vmem>>, vector<4x16x16xf32>
    %74 = vector.shape_cast %73 : vector<4x16x16xf32> to vector<1x4x16x16xf32>
    %75 = vector.broadcast %74 : vector<1x4x16x16xf32> to vector<4x4x16x16xf32>
    %76 = arith.addf %72, %75 : vector<4x4x16x16xf32>
    %cst_20 = arith.constant dense<0xFF800000> : vector<4x4x16xf32>
    %77 = vector.multi_reduction <maximumf>, %76, %cst_20 [3] : vector<4x4x16x16xf32> to vector<4x4x16xf32>
    %78 = vector.shape_cast %77 : vector<4x4x16xf32> to vector<4x4x16x1xf32>
    %79 = vector.broadcast %78 : vector<4x4x16x1xf32> to vector<4x4x16x16xf32>
    %80 = arith.subf %76, %79 : vector<4x4x16x16xf32>
    %81 = math.exp %80 : vector<4x4x16x16xf32>
    %cst_21 = arith.constant dense<0.000000e+00> : vector<4x4x16xf32>
    %82 = vector.multi_reduction <add>, %81, %cst_21 [3] : vector<4x4x16x16xf32> to vector<4x4x16xf32>
    %83 = vector.shape_cast %82 : vector<4x4x16xf32> to vector<4x4x16x1xf32>
    %84 = tpu.reciprocal %83 {approx = true} : vector<4x4x16x1xf32> -> vector<4x4x16x1xf32>
    %85 = vector.broadcast %84 : vector<4x4x16x1xf32> to vector<4x4x16x16xf32>
    %86 = arith.mulf %81, %85 : vector<4x4x16x16xf32>
    %87 = vector.shape_cast %86 : vector<4x4x16x16xf32> to vector<16x16x16xf32>
    %88 = arith.truncf %87 : vector<16x16x16xf32> to vector<16x16x16xbf16>
    "tpu.trace_start"() <{level = 10 : i32, message = "bnm,bmd->bnd"}> : () -> ()
    %cst_22 = arith.constant dense<0.000000e+00> : vector<16x16x8xf32>
    %89 = tpu.matmul %88, %68, %cst_22 {dimension_numbers = #tpu.dot_dimension_numbers<[2], [1], [1], [2], [0, 0, 0, 1, 1, 2], [0], [0]>} : vector<16x16x16xbf16>, vector<16x16x8xbf16>, vector<16x16x8xf32> -> vector<16x16x8xf32>
    "tpu.trace_stop"() : () -> ()
    %90 = vector.shape_cast %89 : vector<16x16x8xf32> to vector<4x4x16x8xf32>
    %91 = vector.extract_strided_slice %90 {offsets = [0, 0, 0, 0], sizes = [4, 1, 16, 8], strides = [1, 1, 1, 1]} : vector<4x4x16x8xf32> to vector<4x1x16x8xf32>
    %92 = vector.shape_cast %91 : vector<4x1x16x8xf32> to vector<4x16x8xf32>
    %93 = vector.extract_strided_slice %90 {offsets = [0, 1, 0, 0], sizes = [4, 1, 16, 8], strides = [1, 1, 1, 1]} : vector<4x4x16x8xf32> to vector<4x1x16x8xf32>
    %94 = vector.shape_cast %93 : vector<4x1x16x8xf32> to vector<4x16x8xf32>
    %95 = vector.extract_strided_slice %90 {offsets = [0, 2, 0, 0], sizes = [4, 1, 16, 8], strides = [1, 1, 1, 1]} : vector<4x4x16x8xf32> to vector<4x1x16x8xf32>
    %96 = vector.shape_cast %95 : vector<4x1x16x8xf32> to vector<4x16x8xf32>
    %97 = vector.extract_strided_slice %90 {offsets = [0, 3, 0, 0], sizes = [4, 1, 16, 8], strides = [1, 1, 1, 1]} : vector<4x4x16x8xf32> to vector<4x1x16x8xf32>
    %98 = vector.shape_cast %97 : vector<4x1x16x8xf32> to vector<4x16x8xf32>
    %99 = tpu.concatenate %92, %94, %96, %98 in 2 : vector<4x16x8xf32>, vector<4x16x8xf32>, vector<4x16x8xf32>, vector<4x16x8xf32> -> vector<4x16x32xf32>
    %100 = vector.shape_cast %99 : vector<4x16x32xf32> to vector<64x32xf32>
    %101 = arith.truncf %100 : vector<64x32xf32> to vector<64x32xbf16>
    %c0_23 = arith.constant 0 : index
    %c0_24 = arith.constant 0 : index
    %102 = vector.load %arg6[%c0_23, %c0_24] : memref<32x32xbf16, #tpu.memory_space<vmem>>, vector<32x32xbf16>
    %cst_25 = arith.constant dense<0.000000e+00> : vector<64x32xf32>
    %103 = tpu.matmul %101, %102, %cst_25 {dimension_numbers = #tpu.dot_dimension_numbers<[1], [0], [0], [1], [0, 0, 1, 1], [], []>} : vector<64x32xbf16>, vector<32x32xbf16>, vector<64x32xf32> -> vector<64x32xf32>
    %c0_26 = arith.constant 0 : index
    %c0_27 = arith.constant 0 : index
    %104 = vector.load %arg7[%c0_26, %c0_27] : memref<1x32xf32, #tpu.memory_space<vmem>>, vector<1x32xf32>
    %105 = vector.broadcast %104 : vector<1x32xf32> to vector<64x32xf32>
    %106 = arith.addf %103, %105 : vector<64x32xf32>
    %107 = vector.shape_cast %106 : vector<64x32xf32> to vector<4x16x32xf32>
    %c0_28 = arith.constant 0 : index
    %c0_29 = arith.constant 0 : index
    %c0_30 = arith.constant 0 : index
    %108 = vector.load %arg9[%c0_28, %c0_29, %c0_30] : memref<4x16x32xf32, #tpu.memory_space<vmem>>, vector<4x16x32xf32>
    tpu.vector_store %arg9[%c0_28, %c0_29, %c0_30], %107 {strides = array<i32>} : memref<4x16x32xf32, #tpu.memory_space<vmem>>, vector<4x16x32xf32>,
    return
  }
  func.func @transform_0(%arg0: i32) -> (i32, i32, i32) {
    %c0_i32 = arith.constant 0 : i32
    %c0_i32_0 = arith.constant 0 : i32
    %c0_i32_1 = arith.constant 0 : i32
    return %arg0, %c0_i32, %c0_i32_0 : i32, i32, i32
  }
  func.func @transform_1(%arg0: i32) -> (i32, i32) {
    %c0_i32 = arith.constant 0 : i32
    %c0_i32_0 = arith.constant 0 : i32
    %c0_i32_1 = arith.constant 0 : i32
    return %c0_i32, %c0_i32_0 : i32, i32
  }
  func.func @transform_2(%arg0: i32) -> (i32, i32) {
    %c0_i32 = arith.constant 0 : i32
    %c0_i32_0 = arith.constant 0 : i32
    %c0_i32_1 = arith.constant 0 : i32
    return %c0_i32, %c0_i32_0 : i32, i32
  }
  func.func @transform_3(%arg0: i32) -> (i32, i32) {
    %c0_i32 = arith.constant 0 : i32
    %c0_i32_0 = arith.constant 0 : i32
    %c0_i32_1 = arith.constant 0 : i32
    return %c0_i32, %c0_i32_0 : i32, i32
  }
  func.func @transform_4(%arg0: i32) -> (i32, i32) {
    %c0_i32 = arith.constant 0 : i32
    %c0_i32_0 = arith.constant 0 : i32
    %c0_i32_1 = arith.constant 0 : i32
    return %c0_i32, %c0_i32_0 : i32, i32
  }
  func.func @transform_5(%arg0: i32) -> (i32, i32) {
    %c0_i32 = arith.constant 0 : i32
    %c0_i32_0 = arith.constant 0 : i32
    %c0_i32_1 = arith.constant 0 : i32
    return %c0_i32, %c0_i32_0 : i32, i32
  }
  func.func @transform_6(%arg0: i32) -> (i32, i32) {
    %c0_i32 = arith.constant 0 : i32
    %c0_i32_0 = arith.constant 0 : i32
    %c0_i32_1 = arith.constant 0 : i32
    return %c0_i32, %c0_i32_0 : i32, i32
  }
  func.func @transform_7(%arg0: i32) -> (i32, i32, i32) {
    %c0_i32 = arith.constant 0 : i32
    %c0_i32_0 = arith.constant 0 : i32
    %c0_i32_1 = arith.constant 0 : i32
    %c0_i32_2 = arith.constant 0 : i32
    return %c0_i32, %c0_i32_0, %c0_i32_1 : i32, i32, i32
  }
  func.func @transform_8(%arg0: i32) -> (i32, i32, i32) {
    %c0_i32 = arith.constant 0 : i32
    %c0_i32_0 = arith.constant 0 : i32
    %c0_i32_1 = arith.constant 0 : i32
    return %arg0, %c0_i32, %c0_i32_0 : i32, i32, i32
  }
}

module attributes {stable_mosaic.version = 11 : i64} {
  func.func @_block_tail_kernel(%arg0: i32, %arg1: memref<64x32xf32, #tpu.memory_space<vmem>>, %arg2: memref<64x32xf32, #tpu.memory_space<vmem>>, %arg3: memref<1x32xf32, #tpu.memory_space<vmem>>, %arg4: memref<1x32xf32, #tpu.memory_space<vmem>>, %arg5: memref<32x128xbf16, #tpu.memory_space<vmem>>, %arg6: memref<1x128xf32, #tpu.memory_space<vmem>>, %arg7: memref<128x32xbf16, #tpu.memory_space<vmem>>, %arg8: memref<1x32xf32, #tpu.memory_space<vmem>>, %arg9: memref<64x32xf32, #tpu.memory_space<vmem>>) attributes {dimension_semantics = [#tpu.dimension_semantics<parallel>], iteration_bounds = array<i64: 2>, scalar_prefetch = 0 : i64, scratch_operands = 0 : i64, tpu.core_type = #tpu.core_type<tc>, window_params = [{transform_indices = @transform_0, window_bounds = array<i64: 64, 32>}, {transform_indices = @transform_1, window_bounds = array<i64: 64, 32>}, {pipeline_mode = #tpu.pipeline_mode<synchronous>, transform_indices = @transform_2, window_bounds = array<i64: 1, 32>}, {pipeline_mode = #tpu.pipeline_mode<synchronous>, transform_indices = @transform_3, window_bounds = array<i64: 1, 32>}, {pipeline_mode = #tpu.pipeline_mode<synchronous>, transform_indices = @transform_4, window_bounds = array<i64: 32, 128>}, {pipeline_mode = #tpu.pipeline_mode<synchronous>, transform_indices = @transform_5, window_bounds = array<i64: 1, 128>}, {pipeline_mode = #tpu.pipeline_mode<synchronous>, transform_indices = @transform_6, window_bounds = array<i64: 128, 32>}, {pipeline_mode = #tpu.pipeline_mode<synchronous>, transform_indices = @transform_7, window_bounds = array<i64: 1, 32>}, {transform_indices = @transform_8, window_bounds = array<i64: 64, 32>}]} {
    %c0 = arith.constant 0 : index
    %c0_0 = arith.constant 0 : index
    %0 = vector.load %arg1[%c0, %c0_0] : memref<64x32xf32, #tpu.memory_space<vmem>>, vector<64x32xf32>
    %c0_1 = arith.constant 0 : index
    %c0_2 = arith.constant 0 : index
    %1 = vector.load %arg2[%c0_1, %c0_2] : memref<64x32xf32, #tpu.memory_space<vmem>>, vector<64x32xf32>
    %2 = arith.addf %0, %1 : vector<64x32xf32>
    %cst = arith.constant dense<0.000000e+00> : vector<64xf32>
    %3 = vector.multi_reduction <add>, %2, %cst [1] : vector<64x32xf32> to vector<64xf32>
    %4 = vector.shape_cast %3 : vector<64xf32> to vector<64x1xf32>
    %cst_3 = arith.constant 3.200000e+01 : f32
    %5 = vector.broadcast %cst_3 : f32 to vector<64x1xf32>
    %6 = arith.divf %4, %5 : vector<64x1xf32>
    %7 = vector.broadcast %6 : vector<64x1xf32> to vector<64x32xf32>
    %8 = arith.subf %2, %7 : vector<64x32xf32>
    %9 = arith.mulf %8, %8 : vector<64x32xf32>
    %cst_4 = arith.constant dense<0.000000e+00> : vector<64xf32>
    %10 = vector.multi_reduction <add>, %9, %cst_4 [1] : vector<64x32xf32> to vector<64xf32>
    %11 = vector.shape_cast %10 : vector<64xf32> to vector<64x1xf32>
    %cst_5 = arith.constant 3.200000e+01 : f32
    %12 = vector.broadcast %cst_5 : f32 to vector<64x1xf32>
    %13 = arith.divf %11, %12 : vector<64x1xf32>
    %cst_6 = arith.constant 9.99999974E-6 : f32
    %14 = vector.broadcast %cst_6 : f32 to vector<64x1xf32>
    %15 = arith.addf %13, %14 : vector<64x1xf32>
    %16 = math.rsqrt %15 : vector<64x1xf32>
    %17 = vector.broadcast %16 : vector<64x1xf32> to vector<64x32xf32>
    %18 = arith.mulf %8, %17 : vector<64x32xf32>
    %c0_7 = arith.constant 0 : index
    %c0_8 = arith.constant 0 : index
    %19 = vector.load %arg3[%c0_7, %c0_8] : memref<1x32xf32, #tpu.memory_space<vmem>>, vector<1x32xf32>
    %20 = vector.broadcast %19 : vector<1x32xf32> to vector<64x32xf32>
    %21 = arith.mulf %18, %20 : vector<64x32xf32>
    %c0_9 = arith.constant 0 : index
    %c0_10 = arith.constant 0 : index
    %22 = vector.load %arg4[%c0_9, %c0_10] : memref<1x32xf32, #tpu.memory_space<vmem>>, vector<1x32xf32>
    %23 = vector.broadcast %22 : vector<1x32xf32> to vector<64x32xf32>
    %24 = arith.addf %21, %23 : vector<64x32xf32>
    %25 = arith.truncf %24 : vector<64x32xf32> to vector<64x32xbf16>
    %c0_11 = arith.constant 0 : index
    %c0_12 = arith.constant 0 : index
    %26 = vector.load %arg5[%c0_11, %c0_12] : memref<32x128xbf16, #tpu.memory_space<vmem>>, vector<32x128xbf16>
    %cst_13 = arith.constant dense<0.000000e+00> : vector<64x128xf32>
    %27 = tpu.matmul %25, %26, %cst_13 {dimension_numbers = #tpu.dot_dimension_numbers<[1], [0], [0], [1], [0, 0, 1, 1], [], []>} : vector<64x32xbf16>, vector<32x128xbf16>, vector<64x128xf32> -> vector<64x128xf32>
    %c0_14 = arith.constant 0 : index
    %c0_15 = arith.constant 0 : index
    %28 = vector.load %arg6[%c0_14, %c0_15] : memref<1x128xf32, #tpu.memory_space<vmem>>, vector<1x128xf32>
    %29 = vector.broadcast %28 : vector<1x128xf32> to vector<64x128xf32>
    %30 = arith.addf %27, %29 : vector<64x128xf32>
    %cst_16 = arith.constant 5.000000e-01 : f32
    %31 = vector.broadcast %cst_16 : f32 to vector<64x128xf32>
    %32 = arith.mulf %31, %30 : vector<64x128xf32>
    %cst_17 = arith.constant 0.707106769 : f32
    %33 = vector.broadcast %cst_17 : f32 to vector<64x128xf32>
    %34 = arith.mulf %30, %33 : vector<64x128xf32>
    %35 = math.erf %34 : vector<64x128xf32>
    %cst_18 = arith.constant 1.000000e+00 : f32
    %36 = vector.broadcast %cst_18 : f32 to vector<64x128xf32>
    %37 = arith.addf %36, %35 : vector<64x128xf32>
    %38 = arith.mulf %32, %37 : vector<64x128xf32>
    %39 = arith.truncf %38 : vector<64x128xf32> to vector<64x128xbf16>
    %c0_19 = arith.constant 0 : index
    %c0_20 = arith.constant 0 : index
    %40 = vector.load %arg7[%c0_19, %c0_20] : memref<128x32xbf16, #tpu.memory_space<vmem>>, vector<128x32xbf16>
    %cst_21 = arith.constant dense<0.000000e+00> : vector<64x32xf32>
    %41 = tpu.matmul %39, %40, %cst_21 {dimension_numbers = #tpu.dot_dimension_numbers<[1], [0], [0], [1], [0, 0, 1, 1], [], []>} : vector<64x128xbf16>, vector<128x32xbf16>, vector<64x32xf32> -> vector<64x32xf32>
    %c0_22 = arith.constant 0 : index
    %c0_23 = arith.constant 0 : index
    %42 = vector.load %arg8[%c0_22, %c0_23] : memref<1x32xf32, #tpu.memory_space<vmem>>, vector<1x32xf32>
    %43 = vector.broadcast %42 : vector<1x32xf32> to vector<64x32xf32>
    %44 = arith.addf %41, %43 : vector<64x32xf32>
    %45 = arith.addf %2, %44 : vector<64x32xf32>
    %c0_24 = arith.constant 0 : index
    %c0_25 = arith.constant 0 : index
    %46 = vector.load %arg9[%c0_24, %c0_25] : memref<64x32xf32, #tpu.memory_space<vmem>>, vector<64x32xf32>
    tpu.vector_store %arg9[%c0_24, %c0_25], %45 {strides = array<i32>} : memref<64x32xf32, #tpu.memory_space<vmem>>, vector<64x32xf32>,
    return
  }
  func.func @transform_0(%arg0: i32) -> (i32, i32) {
    %c0_i32 = arith.constant 0 : i32
    %c0_i32_0 = arith.constant 0 : i32
    return %arg0, %c0_i32 : i32, i32
  }
  func.func @transform_1(%arg0: i32) -> (i32, i32) {
    %c0_i32 = arith.constant 0 : i32
    %c0_i32_0 = arith.constant 0 : i32
    return %arg0, %c0_i32 : i32, i32
  }
  func.func @transform_2(%arg0: i32) -> (i32, i32) {
    %c0_i32 = arith.constant 0 : i32
    %c0_i32_0 = arith.constant 0 : i32
    %c0_i32_1 = arith.constant 0 : i32
    return %c0_i32, %c0_i32_0 : i32, i32
  }
  func.func @transform_3(%arg0: i32) -> (i32, i32) {
    %c0_i32 = arith.constant 0 : i32
    %c0_i32_0 = arith.constant 0 : i32
    %c0_i32_1 = arith.constant 0 : i32
    return %c0_i32, %c0_i32_0 : i32, i32
  }
  func.func @transform_4(%arg0: i32) -> (i32, i32) {
    %c0_i32 = arith.constant 0 : i32
    %c0_i32_0 = arith.constant 0 : i32
    %c0_i32_1 = arith.constant 0 : i32
    return %c0_i32, %c0_i32_0 : i32, i32
  }
  func.func @transform_5(%arg0: i32) -> (i32, i32) {
    %c0_i32 = arith.constant 0 : i32
    %c0_i32_0 = arith.constant 0 : i32
    %c0_i32_1 = arith.constant 0 : i32
    return %c0_i32, %c0_i32_0 : i32, i32
  }
  func.func @transform_6(%arg0: i32) -> (i32, i32) {
    %c0_i32 = arith.constant 0 : i32
    %c0_i32_0 = arith.constant 0 : i32
    %c0_i32_1 = arith.constant 0 : i32
    return %c0_i32, %c0_i32_0 : i32, i32
  }
  func.func @transform_7(%arg0: i32) -> (i32, i32) {
    %c0_i32 = arith.constant 0 : i32
    %c0_i32_0 = arith.constant 0 : i32
    %c0_i32_1 = arith.constant 0 : i32
    return %c0_i32, %c0_i32_0 : i32, i32
  }
  func.func @transform_8(%arg0: i32) -> (i32, i32) {
    %c0_i32 = arith.constant 0 : i32
    %c0_i32_0 = arith.constant 0 : i32
    return %arg0, %c0_i32 : i32, i32
  }
}

module attributes {stable_mosaic.version = 11 : i64} {
  func.func @_window_attn_kernel(%arg0: i32, %arg1: memref<4x16x32xf32, #tpu.memory_space<vmem>>, %arg2: memref<1x32xf32, #tpu.memory_space<vmem>>, %arg3: memref<1x32xf32, #tpu.memory_space<vmem>>, %arg4: memref<32x96xbf16, #tpu.memory_space<vmem>>, %arg5: memref<1x96xf32, #tpu.memory_space<vmem>>, %arg6: memref<32x32xbf16, #tpu.memory_space<vmem>>, %arg7: memref<1x32xf32, #tpu.memory_space<vmem>>, %arg8: memref<4x16x16xf32, #tpu.memory_space<vmem>>, %arg9: memref<4x16x16xf32, #tpu.memory_space<vmem>>, %arg10: memref<4x16x32xf32, #tpu.memory_space<vmem>>) attributes {dimension_semantics = [#tpu.dimension_semantics<parallel>], iteration_bounds = array<i64: 2>, scalar_prefetch = 0 : i64, scratch_operands = 0 : i64, tpu.core_type = #tpu.core_type<tc>, window_params = [{transform_indices = @transform_0, window_bounds = array<i64: 4, 16, 32>}, {pipeline_mode = #tpu.pipeline_mode<synchronous>, transform_indices = @transform_1, window_bounds = array<i64: 1, 32>}, {pipeline_mode = #tpu.pipeline_mode<synchronous>, transform_indices = @transform_2, window_bounds = array<i64: 1, 32>}, {pipeline_mode = #tpu.pipeline_mode<synchronous>, transform_indices = @transform_3, window_bounds = array<i64: 32, 96>}, {pipeline_mode = #tpu.pipeline_mode<synchronous>, transform_indices = @transform_4, window_bounds = array<i64: 1, 96>}, {pipeline_mode = #tpu.pipeline_mode<synchronous>, transform_indices = @transform_5, window_bounds = array<i64: 32, 32>}, {pipeline_mode = #tpu.pipeline_mode<synchronous>, transform_indices = @transform_6, window_bounds = array<i64: 1, 32>}, {pipeline_mode = #tpu.pipeline_mode<synchronous>, transform_indices = @transform_7, window_bounds = array<i64: 4, 16, 16>}, {transform_indices = @transform_8, window_bounds = array<i64: 4, 16, 16>}, {transform_indices = @transform_9, window_bounds = array<i64: 4, 16, 32>}]} {
    %c0 = arith.constant 0 : index
    %c0_0 = arith.constant 0 : index
    %c0_1 = arith.constant 0 : index
    %0 = vector.load %arg1[%c0, %c0_0, %c0_1] : memref<4x16x32xf32, #tpu.memory_space<vmem>>, vector<4x16x32xf32>
    %1 = vector.shape_cast %0 : vector<4x16x32xf32> to vector<64x32xf32>
    %cst = arith.constant dense<0.000000e+00> : vector<64xf32>
    %2 = vector.multi_reduction <add>, %1, %cst [1] : vector<64x32xf32> to vector<64xf32>
    %3 = vector.shape_cast %2 : vector<64xf32> to vector<64x1xf32>
    %cst_2 = arith.constant 3.200000e+01 : f32
    %4 = vector.broadcast %cst_2 : f32 to vector<64x1xf32>
    %5 = arith.divf %3, %4 : vector<64x1xf32>
    %6 = vector.broadcast %5 : vector<64x1xf32> to vector<64x32xf32>
    %7 = arith.subf %1, %6 : vector<64x32xf32>
    %8 = arith.mulf %7, %7 : vector<64x32xf32>
    %cst_3 = arith.constant dense<0.000000e+00> : vector<64xf32>
    %9 = vector.multi_reduction <add>, %8, %cst_3 [1] : vector<64x32xf32> to vector<64xf32>
    %10 = vector.shape_cast %9 : vector<64xf32> to vector<64x1xf32>
    %cst_4 = arith.constant 3.200000e+01 : f32
    %11 = vector.broadcast %cst_4 : f32 to vector<64x1xf32>
    %12 = arith.divf %10, %11 : vector<64x1xf32>
    %cst_5 = arith.constant 9.99999974E-6 : f32
    %13 = vector.broadcast %cst_5 : f32 to vector<64x1xf32>
    %14 = arith.addf %12, %13 : vector<64x1xf32>
    %15 = math.rsqrt %14 : vector<64x1xf32>
    %16 = vector.broadcast %15 : vector<64x1xf32> to vector<64x32xf32>
    %17 = arith.mulf %7, %16 : vector<64x32xf32>
    %c0_6 = arith.constant 0 : index
    %c0_7 = arith.constant 0 : index
    %18 = vector.load %arg2[%c0_6, %c0_7] : memref<1x32xf32, #tpu.memory_space<vmem>>, vector<1x32xf32>
    %19 = vector.broadcast %18 : vector<1x32xf32> to vector<64x32xf32>
    %20 = arith.mulf %17, %19 : vector<64x32xf32>
    %c0_8 = arith.constant 0 : index
    %c0_9 = arith.constant 0 : index
    %21 = vector.load %arg3[%c0_8, %c0_9] : memref<1x32xf32, #tpu.memory_space<vmem>>, vector<1x32xf32>
    %22 = vector.broadcast %21 : vector<1x32xf32> to vector<64x32xf32>
    %23 = arith.addf %20, %22 : vector<64x32xf32>
    %24 = arith.truncf %23 : vector<64x32xf32> to vector<64x32xbf16>
    %c0_10 = arith.constant 0 : index
    %c0_11 = arith.constant 0 : index
    %25 = vector.load %arg4[%c0_10, %c0_11] : memref<32x96xbf16, #tpu.memory_space<vmem>>, vector<32x96xbf16>
    %cst_12 = arith.constant dense<0.000000e+00> : vector<64x96xf32>
    %26 = tpu.matmul %24, %25, %cst_12 {dimension_numbers = #tpu.dot_dimension_numbers<[1], [0], [0], [1], [0, 0, 1, 1], [], []>} : vector<64x32xbf16>, vector<32x96xbf16>, vector<64x96xf32> -> vector<64x96xf32>
    %c0_13 = arith.constant 0 : index
    %c0_14 = arith.constant 0 : index
    %27 = vector.load %arg5[%c0_13, %c0_14] : memref<1x96xf32, #tpu.memory_space<vmem>>, vector<1x96xf32>
    %28 = vector.broadcast %27 : vector<1x96xf32> to vector<64x96xf32>
    %29 = arith.addf %26, %28 : vector<64x96xf32>
    %30 = vector.extract_strided_slice %29 {offsets = [0, 0], sizes = [64, 32], strides = [1, 1]} : vector<64x96xf32> to vector<64x32xf32>
    %31 = vector.shape_cast %30 : vector<64x32xf32> to vector<4x16x32xf32>
    %32 = arith.truncf %31 : vector<4x16x32xf32> to vector<4x16x32xbf16>
    %33 = vector.extract_strided_slice %29 {offsets = [0, 32], sizes = [64, 32], strides = [1, 1]} : vector<64x96xf32> to vector<64x32xf32>
    %34 = vector.shape_cast %33 : vector<64x32xf32> to vector<4x16x32xf32>
    %35 = arith.truncf %34 : vector<4x16x32xf32> to vector<4x16x32xbf16>
    %36 = vector.extract_strided_slice %29 {offsets = [0, 64], sizes = [64, 32], strides = [1, 1]} : vector<64x96xf32> to vector<64x32xf32>
    %37 = vector.shape_cast %36 : vector<64x32xf32> to vector<4x16x32xf32>
    %38 = arith.truncf %37 : vector<4x16x32xf32> to vector<4x16x32xbf16>
    %39 = vector.extract_strided_slice %32 {offsets = [0, 0, 0], sizes = [4, 16, 8], strides = [1, 1, 1]} : vector<4x16x32xbf16> to vector<4x16x8xbf16>
    %40 = vector.extract_strided_slice %32 {offsets = [0, 0, 8], sizes = [4, 16, 8], strides = [1, 1, 1]} : vector<4x16x32xbf16> to vector<4x16x8xbf16>
    %41 = vector.extract_strided_slice %32 {offsets = [0, 0, 16], sizes = [4, 16, 8], strides = [1, 1, 1]} : vector<4x16x32xbf16> to vector<4x16x8xbf16>
    %42 = vector.extract_strided_slice %32 {offsets = [0, 0, 24], sizes = [4, 16, 8], strides = [1, 1, 1]} : vector<4x16x32xbf16> to vector<4x16x8xbf16>
    %43 = vector.shape_cast %39 : vector<4x16x8xbf16> to vector<4x1x16x8xbf16>
    %44 = vector.shape_cast %40 : vector<4x16x8xbf16> to vector<4x1x16x8xbf16>
    %45 = vector.shape_cast %41 : vector<4x16x8xbf16> to vector<4x1x16x8xbf16>
    %46 = vector.shape_cast %42 : vector<4x16x8xbf16> to vector<4x1x16x8xbf16>
    %47 = tpu.concatenate %43, %44, %45, %46 in 1 : vector<4x1x16x8xbf16>, vector<4x1x16x8xbf16>, vector<4x1x16x8xbf16>, vector<4x1x16x8xbf16> -> vector<4x4x16x8xbf16>
    %48 = vector.shape_cast %47 : vector<4x4x16x8xbf16> to vector<16x16x8xbf16>
    %49 = vector.extract_strided_slice %35 {offsets = [0, 0, 0], sizes = [4, 16, 8], strides = [1, 1, 1]} : vector<4x16x32xbf16> to vector<4x16x8xbf16>
    %50 = vector.extract_strided_slice %35 {offsets = [0, 0, 8], sizes = [4, 16, 8], strides = [1, 1, 1]} : vector<4x16x32xbf16> to vector<4x16x8xbf16>
    %51 = vector.extract_strided_slice %35 {offsets = [0, 0, 16], sizes = [4, 16, 8], strides = [1, 1, 1]} : vector<4x16x32xbf16> to vector<4x16x8xbf16>
    %52 = vector.extract_strided_slice %35 {offsets = [0, 0, 24], sizes = [4, 16, 8], strides = [1, 1, 1]} : vector<4x16x32xbf16> to vector<4x16x8xbf16>
    %53 = vector.shape_cast %49 : vector<4x16x8xbf16> to vector<4x1x16x8xbf16>
    %54 = vector.shape_cast %50 : vector<4x16x8xbf16> to vector<4x1x16x8xbf16>
    %55 = vector.shape_cast %51 : vector<4x16x8xbf16> to vector<4x1x16x8xbf16>
    %56 = vector.shape_cast %52 : vector<4x16x8xbf16> to vector<4x1x16x8xbf16>
    %57 = tpu.concatenate %53, %54, %55, %56 in 1 : vector<4x1x16x8xbf16>, vector<4x1x16x8xbf16>, vector<4x1x16x8xbf16>, vector<4x1x16x8xbf16> -> vector<4x4x16x8xbf16>
    %58 = vector.shape_cast %57 : vector<4x4x16x8xbf16> to vector<16x16x8xbf16>
    %59 = vector.extract_strided_slice %38 {offsets = [0, 0, 0], sizes = [4, 16, 8], strides = [1, 1, 1]} : vector<4x16x32xbf16> to vector<4x16x8xbf16>
    %60 = vector.extract_strided_slice %38 {offsets = [0, 0, 8], sizes = [4, 16, 8], strides = [1, 1, 1]} : vector<4x16x32xbf16> to vector<4x16x8xbf16>
    %61 = vector.extract_strided_slice %38 {offsets = [0, 0, 16], sizes = [4, 16, 8], strides = [1, 1, 1]} : vector<4x16x32xbf16> to vector<4x16x8xbf16>
    %62 = vector.extract_strided_slice %38 {offsets = [0, 0, 24], sizes = [4, 16, 8], strides = [1, 1, 1]} : vector<4x16x32xbf16> to vector<4x16x8xbf16>
    %63 = vector.shape_cast %59 : vector<4x16x8xbf16> to vector<4x1x16x8xbf16>
    %64 = vector.shape_cast %60 : vector<4x16x8xbf16> to vector<4x1x16x8xbf16>
    %65 = vector.shape_cast %61 : vector<4x16x8xbf16> to vector<4x1x16x8xbf16>
    %66 = vector.shape_cast %62 : vector<4x16x8xbf16> to vector<4x1x16x8xbf16>
    %67 = tpu.concatenate %63, %64, %65, %66 in 1 : vector<4x1x16x8xbf16>, vector<4x1x16x8xbf16>, vector<4x1x16x8xbf16>, vector<4x1x16x8xbf16> -> vector<4x4x16x8xbf16>
    %68 = vector.shape_cast %67 : vector<4x4x16x8xbf16> to vector<16x16x8xbf16>
    "tpu.trace_start"() <{level = 10 : i32, message = "bnd,bmd->bnm"}> : () -> ()
    %cst_15 = arith.constant dense<0.000000e+00> : vector<16x16x16xf32>
    %69 = tpu.matmul %48, %58, %cst_15 {dimension_numbers = #tpu.dot_dimension_numbers<[2], [2], [1], [1], [0, 0, 0, 1, 1, 1], [0], [0]>} : vector<16x16x8xbf16>, vector<16x16x8xbf16>, vector<16x16x16xf32> -> vector<16x16x16xf32>
    "tpu.trace_stop"() : () -> ()
    %70 = vector.shape_cast %69 : vector<16x16x16xf32> to vector<4x4x16x16xf32>
    %cst_16 = arith.constant 0.353553385 : f32
    %71 = vector.broadcast %cst_16 : f32 to vector<4x4x16x16xf32>
    %72 = arith.mulf %70, %71 : vector<4x4x16x16xf32>
    %c0_17 = arith.constant 0 : index
    %c0_18 = arith.constant 0 : index
    %c0_19 = arith.constant 0 : index
    %73 = vector.load %arg8[%c0_17, %c0_18, %c0_19] : memref<4x16x16xf32, #tpu.memory_space<vmem>>, vector<4x16x16xf32>
    %74 = vector.shape_cast %73 : vector<4x16x16xf32> to vector<1x4x16x16xf32>
    %75 = vector.broadcast %74 : vector<1x4x16x16xf32> to vector<4x4x16x16xf32>
    %76 = arith.addf %72, %75 : vector<4x4x16x16xf32>
    %c0_20 = arith.constant 0 : index
    %c0_21 = arith.constant 0 : index
    %c0_22 = arith.constant 0 : index
    %77 = vector.load %arg9[%c0_20, %c0_21, %c0_22] : memref<4x16x16xf32, #tpu.memory_space<vmem>>, vector<4x16x16xf32>
    %78 = vector.shape_cast %77 : vector<4x16x16xf32> to vector<4x1x16x16xf32>
    %79 = vector.broadcast %78 : vector<4x1x16x16xf32> to vector<4x4x16x16xf32>
    %80 = arith.addf %76, %79 : vector<4x4x16x16xf32>
    %cst_23 = arith.constant dense<0xFF800000> : vector<4x4x16xf32>
    %81 = vector.multi_reduction <maximumf>, %80, %cst_23 [3] : vector<4x4x16x16xf32> to vector<4x4x16xf32>
    %82 = vector.shape_cast %81 : vector<4x4x16xf32> to vector<4x4x16x1xf32>
    %83 = vector.broadcast %82 : vector<4x4x16x1xf32> to vector<4x4x16x16xf32>
    %84 = arith.subf %80, %83 : vector<4x4x16x16xf32>
    %85 = math.exp %84 : vector<4x4x16x16xf32>
    %cst_24 = arith.constant dense<0.000000e+00> : vector<4x4x16xf32>
    %86 = vector.multi_reduction <add>, %85, %cst_24 [3] : vector<4x4x16x16xf32> to vector<4x4x16xf32>
    %87 = vector.shape_cast %86 : vector<4x4x16xf32> to vector<4x4x16x1xf32>
    %88 = tpu.reciprocal %87 {approx = true} : vector<4x4x16x1xf32> -> vector<4x4x16x1xf32>
    %89 = vector.broadcast %88 : vector<4x4x16x1xf32> to vector<4x4x16x16xf32>
    %90 = arith.mulf %85, %89 : vector<4x4x16x16xf32>
    %91 = vector.shape_cast %90 : vector<4x4x16x16xf32> to vector<16x16x16xf32>
    %92 = arith.truncf %91 : vector<16x16x16xf32> to vector<16x16x16xbf16>
    "tpu.trace_start"() <{level = 10 : i32, message = "bnm,bmd->bnd"}> : () -> ()
    %cst_25 = arith.constant dense<0.000000e+00> : vector<16x16x8xf32>
    %93 = tpu.matmul %92, %68, %cst_25 {dimension_numbers = #tpu.dot_dimension_numbers<[2], [1], [1], [2], [0, 0, 0, 1, 1, 2], [0], [0]>} : vector<16x16x16xbf16>, vector<16x16x8xbf16>, vector<16x16x8xf32> -> vector<16x16x8xf32>
    "tpu.trace_stop"() : () -> ()
    %94 = vector.shape_cast %93 : vector<16x16x8xf32> to vector<4x4x16x8xf32>
    %95 = vector.extract_strided_slice %94 {offsets = [0, 0, 0, 0], sizes = [4, 1, 16, 8], strides = [1, 1, 1, 1]} : vector<4x4x16x8xf32> to vector<4x1x16x8xf32>
    %96 = vector.shape_cast %95 : vector<4x1x16x8xf32> to vector<4x16x8xf32>
    %97 = vector.extract_strided_slice %94 {offsets = [0, 1, 0, 0], sizes = [4, 1, 16, 8], strides = [1, 1, 1, 1]} : vector<4x4x16x8xf32> to vector<4x1x16x8xf32>
    %98 = vector.shape_cast %97 : vector<4x1x16x8xf32> to vector<4x16x8xf32>
    %99 = vector.extract_strided_slice %94 {offsets = [0, 2, 0, 0], sizes = [4, 1, 16, 8], strides = [1, 1, 1, 1]} : vector<4x4x16x8xf32> to vector<4x1x16x8xf32>
    %100 = vector.shape_cast %99 : vector<4x1x16x8xf32> to vector<4x16x8xf32>
    %101 = vector.extract_strided_slice %94 {offsets = [0, 3, 0, 0], sizes = [4, 1, 16, 8], strides = [1, 1, 1, 1]} : vector<4x4x16x8xf32> to vector<4x1x16x8xf32>
    %102 = vector.shape_cast %101 : vector<4x1x16x8xf32> to vector<4x16x8xf32>
    %103 = tpu.concatenate %96, %98, %100, %102 in 2 : vector<4x16x8xf32>, vector<4x16x8xf32>, vector<4x16x8xf32>, vector<4x16x8xf32> -> vector<4x16x32xf32>
    %104 = vector.shape_cast %103 : vector<4x16x32xf32> to vector<64x32xf32>
    %105 = arith.truncf %104 : vector<64x32xf32> to vector<64x32xbf16>
    %c0_26 = arith.constant 0 : index
    %c0_27 = arith.constant 0 : index
    %106 = vector.load %arg6[%c0_26, %c0_27] : memref<32x32xbf16, #tpu.memory_space<vmem>>, vector<32x32xbf16>
    %cst_28 = arith.constant dense<0.000000e+00> : vector<64x32xf32>
    %107 = tpu.matmul %105, %106, %cst_28 {dimension_numbers = #tpu.dot_dimension_numbers<[1], [0], [0], [1], [0, 0, 1, 1], [], []>} : vector<64x32xbf16>, vector<32x32xbf16>, vector<64x32xf32> -> vector<64x32xf32>
    %c0_29 = arith.constant 0 : index
    %c0_30 = arith.constant 0 : index
    %108 = vector.load %arg7[%c0_29, %c0_30] : memref<1x32xf32, #tpu.memory_space<vmem>>, vector<1x32xf32>
    %109 = vector.broadcast %108 : vector<1x32xf32> to vector<64x32xf32>
    %110 = arith.addf %107, %109 : vector<64x32xf32>
    %111 = vector.shape_cast %110 : vector<64x32xf32> to vector<4x16x32xf32>
    %c0_31 = arith.constant 0 : index
    %c0_32 = arith.constant 0 : index
    %c0_33 = arith.constant 0 : index
    %112 = vector.load %arg10[%c0_31, %c0_32, %c0_33] : memref<4x16x32xf32, #tpu.memory_space<vmem>>, vector<4x16x32xf32>
    tpu.vector_store %arg10[%c0_31, %c0_32, %c0_33], %111 {strides = array<i32>} : memref<4x16x32xf32, #tpu.memory_space<vmem>>, vector<4x16x32xf32>,
    return
  }
  func.func @transform_0(%arg0: i32) -> (i32, i32, i32) {
    %c0_i32 = arith.constant 0 : i32
    %c0_i32_0 = arith.constant 0 : i32
    %c0_i32_1 = arith.constant 0 : i32
    return %arg0, %c0_i32, %c0_i32_0 : i32, i32, i32
  }
  func.func @transform_1(%arg0: i32) -> (i32, i32) {
    %c0_i32 = arith.constant 0 : i32
    %c0_i32_0 = arith.constant 0 : i32
    %c0_i32_1 = arith.constant 0 : i32
    return %c0_i32, %c0_i32_0 : i32, i32
  }
  func.func @transform_2(%arg0: i32) -> (i32, i32) {
    %c0_i32 = arith.constant 0 : i32
    %c0_i32_0 = arith.constant 0 : i32
    %c0_i32_1 = arith.constant 0 : i32
    return %c0_i32, %c0_i32_0 : i32, i32
  }
  func.func @transform_3(%arg0: i32) -> (i32, i32) {
    %c0_i32 = arith.constant 0 : i32
    %c0_i32_0 = arith.constant 0 : i32
    %c0_i32_1 = arith.constant 0 : i32
    return %c0_i32, %c0_i32_0 : i32, i32
  }
  func.func @transform_4(%arg0: i32) -> (i32, i32) {
    %c0_i32 = arith.constant 0 : i32
    %c0_i32_0 = arith.constant 0 : i32
    %c0_i32_1 = arith.constant 0 : i32
    return %c0_i32, %c0_i32_0 : i32, i32
  }
  func.func @transform_5(%arg0: i32) -> (i32, i32) {
    %c0_i32 = arith.constant 0 : i32
    %c0_i32_0 = arith.constant 0 : i32
    %c0_i32_1 = arith.constant 0 : i32
    return %c0_i32, %c0_i32_0 : i32, i32
  }
  func.func @transform_6(%arg0: i32) -> (i32, i32) {
    %c0_i32 = arith.constant 0 : i32
    %c0_i32_0 = arith.constant 0 : i32
    %c0_i32_1 = arith.constant 0 : i32
    return %c0_i32, %c0_i32_0 : i32, i32
  }
  func.func @transform_7(%arg0: i32) -> (i32, i32, i32) {
    %c0_i32 = arith.constant 0 : i32
    %c0_i32_0 = arith.constant 0 : i32
    %c0_i32_1 = arith.constant 0 : i32
    %c0_i32_2 = arith.constant 0 : i32
    return %c0_i32, %c0_i32_0, %c0_i32_1 : i32, i32, i32
  }
  func.func @transform_8(%arg0: i32) -> (i32, i32, i32) {
    %c1_i32 = arith.constant 1 : i32
    %c0_i32 = arith.constant 0 : i32
    %0 = arith.cmpi eq, %c1_i32, %c0_i32 : i32
    %c1_i32_0 = arith.constant 1 : i32
    %1 = arith.select %0, %c1_i32_0, %c1_i32 : i32
    %2 = arith.remsi %arg0, %1 : i32
    %c0_i32_1 = arith.constant 0 : i32
    %3 = arith.cmpi ne, %2, %c0_i32_1 : i32
    %c0_i32_2 = arith.constant 0 : i32
    %4 = arith.cmpi slt, %2, %c0_i32_2 : i32
    %c0_i32_3 = arith.constant 0 : i32
    %5 = arith.cmpi slt, %1, %c0_i32_3 : i32
    %6 = arith.xori %4, %5 : i1
    %7 = arith.andi %6, %3 : i1
    %8 = arith.addi %2, %1 : i32
    %9 = arith.select %7, %8, %2 : i32
    %c0_i32_4 = arith.constant 0 : i32
    %c0_i32_5 = arith.constant 0 : i32
    %c0_i32_6 = arith.constant 0 : i32
    return %9, %c0_i32_4, %c0_i32_5 : i32, i32, i32
  }
  func.func @transform_9(%arg0: i32) -> (i32, i32, i32) {
    %c0_i32 = arith.constant 0 : i32
    %c0_i32_0 = arith.constant 0 : i32
    %c0_i32_1 = arith.constant 0 : i32
    return %arg0, %c0_i32, %c0_i32_0 : i32, i32, i32
  }
}

</mosaic_0001>

<bundles_post_ra>
// kernel: run.5
= control target key start
LH: loop header
LB: loop body
LE: loop exit
PB: predicated region body
PF: predicated region fallthrough
CT: control target
= control target key end

     0   :  { %s1048_s27 = smov 0   ;;  %s1223_s0 = inlined_call_operand.vmem [shape: f32[128,32], index: 0, kind: input, shape index: {}]   ;;  %s1224_s1 = inlined_call_operand.vmem [shape: f32[128,32], index: 1, kind: input, shape index: {}]   ;;  %s1225_s2 = inlined_call_operand.vmem [shape: f32[1,32], index: 2, kind: input, shape index: {}]   ;;  %s1226_s3 = inlined_call_operand.vmem [shape: f32[1,32], index: 3, kind: input, shape index: {}]   ;;  %s1227_s4 = inlined_call_operand.vmem [shape: bf16[32,128], index: 4, kind: input, shape index: {}]   ;;  %s1228_s5 = inlined_call_operand.vmem [shape: f32[1,128], index: 5, kind: input, shape index: {}]   ;;  %s1229_s6 = inlined_call_operand.vmem [shape: bf16[128,32], index: 6, kind: input, shape index: {}]   ;;  %s1230_s7 = inlined_call_operand.vmem [shape: f32[1,32], index: 7, kind: input, shape index: {}]   ;;  %s1231_s8 = inlined_call_operand.vmem [shape: f32[128,32], index: 8, kind: output, shape index: {}]  }
   0x1 LB: > { %s860_s28 = sadd.s32 4294967295, %s1001_s27   ;;  %p864_p0 = scmp.ge.s32.totalorder %s1001_s27, 1  ;;  %s1001_s27 = sphi %s1048_s27, %s18_s27  }
   0x2   : > { %p274_p1 = scmp.lt.s32.totalorder %s1001_s27, 3 }
   0x4   : > { %p275_p2 = pnand %p864_p0, %p274_p1 }
   0x5   : > { %s865_s29 = sshll.u32 (!%p275_p2), %s860_s28, 3 }
   0x6   : > { %278 = sbr.rel (%p275_p2) target bundleno = 772 (0x304), region = 52  ;;  %p314_p3 = scmp.lt.s32.totalorder (!%p275_p2), %s865_s29, 15 }
   0xb   : > { %s1233_s29 = smov (!%p314_p3, %s865_s29), 15  ;;  %vm356_vm0 = vcmask 261120  }
   0xc   : > { %s1056_s30 = sshll.u32 %s1233_s29, 3 }
   0xd   : > { %s317_s11 = scalar_lea.vmem %s1223_s0, %s1056_s30  ;;  %s323_s14 = scalar_lea.vmem %s1224_s1, %s1056_s30 }
   0xe   : > { %v332_v0 = vld [vmem:[%s317_s11] sm:$0xff]  ;;  %v334_v2 = vld [vmem:[%s317_s11 + $0x10] sm:$0xff]  ;;  %v333_v5 = vld [vmem:[%s317_s11 + $0x8] sm:$0xff]  ;;  %s329_s25 = scalar_lea.vmem %s1231_s8, %s1056_s30 }
   0xf   : > { %v340_v1 = vld [vmem:[%s323_s14] sm:$0xff]  ;;  %v342_v4 = vld [vmem:[%s323_s14 + $0x10] sm:$0xff]  ;;  %v341_v6 = vld [vmem:[%s323_s14 + $0x8] sm:$0xff] }
  0x10   : > { %v1066_v3 = vadd.f32 %v340_v1, %v332_v0  ;;  %v1068_v7 = vadd.f32 %v342_v4, %v334_v2  ;;  %v1070_v8 = vadd.f32 %v341_v6, %v333_v5  ;;  %v335_v9 = vld [vmem:[%s317_s11 + $0x18] sm:$0xff]  ;;  %v336_v11 = vld [vmem:[%s317_s11 + $0x20] sm:$0xff]  ;;  %v337_v15 = vld [vmem:[%s317_s11 + $0x28] sm:$0xff] }
  0x11   : > { %v343_v10 = vld [vmem:[%s323_s14 + $0x18] sm:$0xff]  ;;  %v344_v14 = vld [vmem:[%s323_s14 + $0x20] sm:$0xff]  ;;  %v345_v16 = vld [vmem:[%s323_s14 + $0x28] sm:$0xff] }
  0x12   : > { %v357_v12 = vsel %vm356_vm0, %v1066_v3, 0.0  ;;  %v1074_v13 = vadd.f32 %v343_v10, %v335_v9  ;;  %v363_v17 = vsel %vm356_vm0, %v1068_v7, 0.0  ;;  %v360_v18 = vsel %vm356_vm0, %v1070_v8, 0.0  ;;  %v338_v22 = vld [vmem:[%s317_s11 + $0x30] sm:$0xff]  ;;  %v339_v24 = vld [vmem:[%s317_s11 + $0x38] sm:$0xff] }
  0x13   : > { %358 = vadd.xlane.f32.xlu0 %v357_v12  ;;  %364 = vadd.xlane.f32.xlu1 %v363_v17  ;;  %v1080_v19 = vadd.f32 %v344_v14, %v336_v11  ;;  %v1084_v21 = vadd.f32 %v345_v16, %v337_v15  ;;  %v346_v23 = vld [vmem:[%s323_s14 + $0x30] sm:$0xff]  ;;  %v347_v25 = vld [vmem:[%s323_s14 + $0x38] sm:$0xff]  ;;  %v953_v11 = vld [vmem:[%s1227_s4 + $0x8] sm:$0xff]  }
  0x14   : > { %v366_v20 = vsel %vm356_vm0, %v1074_v13, 0.0  ;;  %v1088_v27 = vadd.f32 %v346_v23, %v338_v22  ;;  %v1092_v29 = vadd.f32 %v347_v25, %v339_v24  ;;  %v954_v12 = vld [vmem:[%s1227_s4] sm:$0xff]   ;;  %909 = vmatprep.subr.bf16.mxu0 %v953_v11 }
  0x15   : > { %v369_v26 = vsel %vm356_vm0, %v1080_v19, 0.0  ;;  %v372_v28 = vsel %vm356_vm0, %v1084_v21, 0.0  ;;  %910 = vmatpush3.bf16.msra.mxu0 %v953_v11 }
  0x16   : > { %v375_v30 = vsel %vm356_vm0, %v1088_v27, 0.0  ;;  %v378_v31 = vsel %vm356_vm0, %v1092_v29, 0.0  ;;  %911 = vmatprep.subr.bf16.mxu0 %v954_v12 }
  0x17   : > { %361 = vadd.xlane.f32.xlu0 %v360_v18  ;;  %367 = vadd.xlane.f32.xlu1 %v366_v20 }
  0x19   : > { %912 = vmatpush3.bf16.msra.mxu0 %v954_v12 }
  0x1b   : > { %370 = vadd.xlane.f32.xlu0 %v369_v26  ;;  %373 = vadd.xlane.f32.xlu1 %v372_v28 }
  0x1f   : > { %376 = vadd.xlane.f32.xlu0 %v375_v30  ;;  %379 = vadd.xlane.f32.xlu1 %v378_v31 }
  0x9c   : > { %v359_v32 = vpop.xlane.xlu0 %358  ;;  %v365_v34 = vpop.xlane.xlu1 %364 }
  0x9d   : > { %v382_v33 = vmul.f32 0.03125, %v359_v32  ;;  %v384_v35 = vmul.f32 0.03125, %v365_v34 }
  0x9f   : > { %v1099_v36 = vsub.f32 %v1066_v3, %v382_v33  ;;  %v1102_v37 = vsub.f32 %v1068_v7, %v384_v35 }
  0xa0   : > { %v362_v38 = vpop.xlane.xlu0 %361  ;;  %v368_v40 = vpop.xlane.xlu1 %367 }
  0xa1   : > { %v383_v39 = vmul.f32 0.03125, %v362_v38  ;;  %v398_v41 = vmul.f32 %v1099_v36, %v1099_v36  ;;  %v385_v42 = vmul.f32 0.03125, %v368_v40  ;;  %v400_v43 = vmul.f32 %v1102_v37, %v1102_v37 }
  0xa3   : > { %v1109_v44 = vsub.f32 %v1070_v8, %v383_v39  ;;  %v406_v45 = vsel %vm356_vm0, %v398_v41, 0.0  ;;  %v1113_v46 = vsub.f32 %v1074_v13, %v385_v42  ;;  %v412_v50 = vsel %vm356_vm0, %v400_v43, 0.0 }
  0xa4   : > { %407 = vadd.xlane.f32.xlu0 %v406_v45  ;;  %v371_v47 = vpop.xlane.xlu0 %370  ;;  %v374_v49 = vpop.xlane.xlu1 %373 }
  0xa5   : > { %v386_v48 = vmul.f32 0.03125, %v371_v47  ;;  %v399_v51 = vmul.f32 %v1109_v44, %v1109_v44  ;;  %v387_v52 = vmul.f32 0.03125, %v374_v49  ;;  %v401_v53 = vmul.f32 %v1113_v46, %v1113_v46 }
  0xa7   : > { %v1121_v54 = vsub.f32 %v1080_v19, %v386_v48  ;;  %v409_v55 = vsel %vm356_vm0, %v399_v51, 0.0  ;;  %v1125_v56 = vsub.f32 %v1084_v21, %v387_v52  ;;  %v415_v60 = vsel %vm356_vm0, %v401_v53, 0.0  ;;  %v871_v48 = vld [vmem:[%s1225_s2] ss:$0 sm:$0xff] }
  0xa8   : > { %413 = vadd.xlane.f32.xlu0 %v412_v50  ;;  %410 = vadd.xlane.f32.xlu1 %v409_v55  ;;  %v377_v57 = vpop.xlane.xlu0 %376  ;;  %v380_v59 = vpop.xlane.xlu1 %379  ;;  %v872_v53 = vld [vmem:[%s1226_s3] ss:$0 sm:$0xff] }
  0xa9   : > { %v388_v58 = vmul.f32 0.03125, %v377_v57  ;;  %v402_v61 = vmul.f32 %v1121_v54, %v1121_v54  ;;  %v389_v62 = vmul.f32 0.03125, %v380_v59  ;;  %v403_v63 = vmul.f32 %v1125_v56, %v1125_v56 }
  0xab   : > { %v1133_v0 = vsub.f32 %v1088_v27, %v388_v58  ;;  %v418_v1 = vsel %vm356_vm0, %v402_v61, 0.0  ;;  %v1137_v2 = vsub.f32 %v1092_v29, %v389_v62  ;;  %v421_v4 = vsel %vm356_vm0, %v403_v63, 0.0 }
  0xac   : > { %416 = vadd.xlane.f32.xlu1 %v415_v60  ;;  %419 = vadd.xlane.f32.xlu0 %v418_v1 }
  0xad   : > { %v404_v5 = vmul.f32 %v1133_v0, %v1133_v0  ;;  %v405_v6 = vmul.f32 %v1137_v2, %v1137_v2 }
  0xaf   : > { %v424_v9 = vsel %vm356_vm0, %v404_v5, 0.0  ;;  %v427_v10 = vsel %vm356_vm0, %v405_v6, 0.0 }
  0xb0   : > { %422 = vadd.xlane.f32.xlu1 %v421_v4  ;;  %425 = vadd.xlane.f32.xlu0 %v424_v9 }
  0xb4   : > { %428 = vadd.xlane.f32.xlu1 %v427_v10 }
 0x12d   : > { %v408_v14 = vpop.xlane.xlu0 %407 }
 0x12e   : > { %v430_v15 = vmul.f32 0.03125, %v408_v14 }
 0x130   : > { %v438_v16 = vadd.f32 1e-05, %v430_v15 }
 0x131   : > { %v411_v17 = vpop.xlane.xlu1 %410  ;;  %v414_v18 = vpop.xlane.xlu0 %413 }
 0x132   : > { %963 = vrsqrt.f32 %v438_v16  ;;  %v431_v20 = vmul.f32 0.03125, %v411_v17  ;;  %v432_v22 = vmul.f32 0.03125, %v414_v18 }
 0x134   : > { %v439_v23 = vadd.f32 1e-05, %v431_v20  ;;  %v440_v24 = vadd.f32 1e-05, %v432_v22 }
 0x135   : > { %v417_v25 = vpop.xlane.xlu1 %416  ;;  %v420_v26 = vpop.xlane.xlu0 %419 }
 0x136   : > { %965 = vrsqrt.f32 %v439_v23  ;;  %v433_v28 = vmul.f32 0.03125, %v417_v25  ;;  %v434_v30 = vmul.f32 0.03125, %v420_v26  ;;  %v958_v25 = vld [vmem:[%s1229_s6 + $0x20] sm:$0xff]   ;;  %v959_v26 = vld [vmem:[%s1229_s6 + $0x18] sm:$0xff]  }
 0x137   : > { %967 = vrsqrt.f32 %v440_v24  ;;  %v957_v24 = vld [vmem:[%s1229_s6 + $0x28] sm:$0xff]  }
 0x138   : > { %v441_v31 = vadd.f32 1e-05, %v433_v28  ;;  %v442_v32 = vadd.f32 1e-05, %v434_v30  ;;  %v960_v28 = vld [vmem:[%s1229_s6 + $0x10] sm:$0xff]   ;;  %v961_v30 = vld [vmem:[%s1229_s6 + $0x8] sm:$0xff]  }
 0x139   : > { %v423_v33 = vpop.xlane.xlu1 %422  ;;  %v426_v34 = vpop.xlane.xlu0 %425 }
 0x13a   : > { %969 = vrsqrt.f32 %v441_v31  ;;  %v435_v35 = vmul.f32 0.03125, %v423_v33  ;;  %v436_v38 = vmul.f32 0.03125, %v426_v34  ;;  %v962_v31 = vld [vmem:[%s1229_s6] sm:$0xff]  }
 0x13b   : > { %971 = vrsqrt.f32 %v442_v32  ;;  %v873_v32 = vld [vmem:[%s1228_s5] ss:$0 sm:$0xff] }
 0x13c   : > { %v443_v39 = vadd.f32 1e-05, %v435_v35  ;;  %v444_v40 = vadd.f32 1e-05, %v436_v38 }
 0x13d   : > { %v429_v41 = vpop.xlane.xlu1 %428 }
 0x13e   : > { %973 = vrsqrt.f32 %v443_v39  ;;  %v437_v42 = vmul.f32 0.03125, %v429_v41 }
 0x13f   : > { %v964_v43 = vpop.eup %963  ;;  %975 = vrsqrt.f32 %v444_v40 }
 0x140   : > { %v445_v45 = vadd.f32 1e-05, %v437_v42  ;;  %v454_v47 = vmul.f32 %v964_v43, %v1099_v36 }
 0x142   : > { %977 = vrsqrt.f32 %v445_v45  ;;  %v469_v52 = vmul.f32 %v871_v48, %v454_v47 }
 0x143   : > { %v966_v49 = vpop.eup %965 }
 0x144   : > { %v968_v50 = vpop.eup %967  ;;  %v455_v51 = vmul.f32 %v966_v49, %v1109_v44  ;;  %v484_v36 = vadd.f32 %v872_v53, %v469_v52 }
 0x145   : > { %v456_v55 = vmul.f32 %v968_v50, %v1102_v37 }
 0x146   : > { %v470_v57 = vmul.f32 %v871_v48, %v455_v51 }
 0x147   : > { %v970_v58 = vpop.eup %969  ;;  %v471_v62 = vmul.f32 %v871_v48, %v456_v55 }
 0x148   : > { %v972_v59 = vpop.eup %971  ;;  %v485_v60 = vadd.f32 %v872_v53, %v470_v57  ;;  %v457_v61 = vmul.f32 %v970_v58, %v1113_v46 }
 0x149   : > { %v458_v63 = vmul.f32 %v972_v59, %v1121_v54  ;;  %v486_v6 = vadd.f32 %v872_v53, %v471_v62 }
 0x14a   : > { %v492_v1 = vpack.c.bf16 %v485_v60, %v484_v36  ;;  %v472_v4 = vmul.f32 %v871_v48, %v457_v61 }
 0x14b   : > { %v974_v44 = vpop.eup %973  ;;  %v473_v10 = vmul.f32 %v871_v48, %v458_v63 }
 0x14c   : > { %v976_v5 = vpop.eup %975  ;;  %913 = vmatprep.mubr.msk.bf16.mxu0 %vm356_vm0, %v492_v1  ;;  %v487_v9 = vadd.f32 %v872_v53, %v472_v4  ;;  %v459_v37 = vmul.f32 %v974_v44, %v1125_v56 }
 0x14d   : > { %v460_v11 = vmul.f32 %v976_v5, %v1133_v0  ;;  %v488_v46 = vadd.f32 %v872_v53, %v473_v10  ;;  %v955_v0 = vld [vmem:[%s1229_s6 + $0x38] sm:$0xff]  }
 0x14e   : > { %v493_v12 = vpack.c.bf16 %v487_v9, %v486_v6  ;;  %v474_v14 = vmul.f32 %v871_v48, %v459_v37  ;;  %921 = vmatprep.subr.bf16.mxu1 %v955_v0 }
 0x14f   : > { %v978_v15 = vpop.eup %977  ;;  %v475_v17 = vmul.f32 %v871_v48, %v460_v11  ;;  %922 = vmatpush3.bf16.msra.mxu1 %v955_v0 }
 0x150   : > { %914 = vmatmul.mubr.msk.bf16.vlgmr.msra.gmra.mxu0 %vm356_vm0, %v493_v12  ;;  %v489_v54 = vadd.f32 %v872_v53, %v474_v14  ;;  %v461_v16 = vmul.f32 %v978_v15, %v1137_v2  ;;  %v956_v2 = vld [vmem:[%s1229_s6 + $0x30] sm:$0xff]  }
 0x151   : > { %v490_v22 = vadd.f32 %v872_v53, %v475_v17  ;;  %923 = vmatprep.subr.bf16.mxu1 %v956_v2 }
 0x152   : > { %v494_v18 = vpack.c.bf16 %v489_v54, %v488_v46  ;;  %v476_v20 = vmul.f32 %v871_v48, %v461_v16 }
 0x153   : > { %924 = vmatpush3.bf16.msra.mxu1 %v956_v2 }
 0x154   : > { %917 = vmatprep.mubr.msk.bf16.mxu0 %vm356_vm0, %v494_v18  ;;  %v491_v23 = vadd.f32 %v872_v53, %v476_v20  ;;  %925 = vmatprep.subr.bf16.mxu1 %v957_v24 }
 0x156   : > { %v495_v56 = vpack.c.bf16 %v491_v23, %v490_v22 }
 0x157   : > { %926 = vmatpush3.bf16.msra.mxu1 %v957_v24 }
 0x158   : > { %918 = vmatmul.mubr.msk.bf16.gmra.mxu0 %vm356_vm0, %v495_v56  ;;  %927 = vmatprep.subr.bf16.mxu1 %v958_v25 }
 0x15b   : > { %928 = vmatpush3.bf16.msra.mxu1 %v958_v25 }
 0x15c   : > { %929 = vmatprep.subr.bf16.mxu1 %v959_v26 }
 0x15f   : > { %930 = vmatpush3.bf16.msra.mxu1 %v959_v26 }
 0x160   : > { %931 = vmatprep.subr.bf16.mxu1 %v960_v28 }
 0x163   : > { %932 = vmatpush3.bf16.msra.mxu1 %v960_v28 }
 0x164   : > { %933 = vmatprep.subr.bf16.mxu1 %v961_v30 }
 0x167   : > { %934 = vmatpush3.bf16.msra.mxu1 %v961_v30 }
 0x168   : > { %935 = vmatprep.subr.bf16.mxu1 %v962_v31 }
 0x16b   : > { %936 = vmatpush3.bf16.msra.mxu1 %v962_v31 }
 0x210   : > { %v915_v33 = vpop.f32.mrf.mxu0 }
 0x211   : > { %v574_v34 = vadd.f32 %v915_v33, %v873_v32 }
 0x212   : > { %v565_v35 = vpop.f32.mrf.mxu0 }
 0x213   : > { %v566_v38 = vadd.f32 %v873_v32, %v565_v35  ;;  %v606_v39 = vmul.f32 0.70710677, %v574_v34  ;;  %v598_v12 = vmul.f32 0.5, %v574_v34 }
 0x214   : > { %v916_v40 = vpop.f32.mrf.mxu0 }
 0x215   : > { %v604_v41 = vmul.f32 0.70710677, %v566_v38  ;;  %v577_v42 = vadd.f32 %v916_v40, %v873_v32  ;;  %v596_v37 = vmul.f32 0.5, %v566_v38 }
 0x216   : > { %v568_v43 = vpop.f32.mrf.mxu0 }
 0x217   : > { %979 = verf.f32 %v604_v41  ;;  %v607_v45 = vmul.f32 0.70710677, %v577_v42  ;;  %v569_v47 = vadd.f32 %v873_v32, %v568_v43  ;;  %v599_v9 = vmul.f32 0.5, %v577_v42 }
 0x218   : > { %981 = verf.f32 %v606_v39  ;;  %v919_v48 = vpop.f32.mrf.mxu0  ;;  %v880_v39 = vld [vmem:[%s1230_s7] ss:$0 sm:$0xff] }
 0x219   : > { %983 = verf.f32 %v607_v45  ;;  %v605_v49 = vmul.f32 0.70710677, %v569_v47  ;;  %v590_v50 = vadd.f32 %v919_v48, %v873_v32  ;;  %v597_v10 = vmul.f32 0.5, %v569_v47 }
 0x21a   : > { %v581_v51 = vpop.f32.mrf.mxu0 }
 0x21b   : > { %985 = verf.f32 %v605_v49  ;;  %v582_v52 = vadd.f32 %v873_v32, %v581_v51  ;;  %v610_v53 = vmul.f32 0.70710677, %v590_v50  ;;  %v602_v30 = vmul.f32 0.5, %v590_v50 }
 0x21c   : > { %v920_v55 = vpop.f32.mrf.mxu0 }
 0x21d   : > { %v608_v57 = vmul.f32 0.70710677, %v582_v52  ;;  %v593_v58 = vadd.f32 %v920_v55, %v873_v32  ;;  %v600_v25 = vmul.f32 0.5, %v582_v52 }
 0x21e   : > { %v584_v59 = vpop.f32.mrf.mxu0 }
 0x21f   : > { %987 = verf.f32 %v608_v57  ;;  %v611_v36 = vmul.f32 0.70710677, %v593_v58  ;;  %v585_v60 = vadd.f32 %v873_v32, %v584_v59  ;;  %v603_v24 = vmul.f32 0.5, %v593_v58 }
 0x220   : > { %989 = verf.f32 %v610_v53 }
 0x221   : > { %991 = verf.f32 %v611_v36  ;;  %v609_v61 = vmul.f32 0.70710677, %v585_v60  ;;  %v601_v26 = vmul.f32 0.5, %v585_v60 }
 0x223   : > { %993 = verf.f32 %v609_v61 }
 0x224   : > { %v980_v62 = vpop.eup %979 }
 0x225   : > { %v982_v63 = vpop.eup %981  ;;  %v620_v44 = vadd.f32 1.0, %v980_v62 }
 0x226   : > { %v984_v1 = vpop.eup %983  ;;  %v622_v6 = vadd.f32 1.0, %v982_v63 }
 0x227   : > { %v623_v4 = vadd.f32 1.0, %v984_v1  ;;  %v628_v15 = vmul.f32 %v620_v44, %v596_v37 }
 0x228   : > { %v986_v5 = vpop.eup %985  ;;  %v630_v16 = vmul.f32 %v622_v6, %v598_v12 }
 0x229   : > { %v621_v11 = vadd.f32 1.0, %v986_v5  ;;  %v631_v14 = vmul.f32 %v623_v4, %v599_v9 }
 0x22b   : > { %v629_v46 = vmul.f32 %v621_v11, %v597_v10  ;;  %v637_v22 = vpack.c.bf16 %v631_v14, %v630_v16 }
 0x22c   : > { %v988_v54 = vpop.eup %987 }
 0x22d   : > { %v990_v17 = vpop.eup %989  ;;  %v636_v18 = vpack.c.bf16 %v629_v46, %v628_v15  ;;  %v624_v23 = vadd.f32 1.0, %v988_v54 }
 0x22e   : > { %v992_v20 = vpop.eup %991  ;;  %v626_v2 = vadd.f32 1.0, %v990_v17 }
 0x22f   : > { %v627_v56 = vadd.f32 1.0, %v992_v20  ;;  %937 = vmatprep.mubr.bf16.mxu1 %v636_v18  ;;  %v632_v32 = vmul.f32 %v624_v23, %v600_v25 }
 0x230   : > { %v994_v0 = vpop.eup %993  ;;  %938 = vmatmul.mubr.bf16.vlgmr.msra.gmra.mxu1 %v637_v22  ;;  %v634_v34 = vmul.f32 %v626_v2, %v602_v30 }
 0x231   : > { %v625_v28 = vadd.f32 1.0, %v994_v0  ;;  %v635_v31 = vmul.f32 %v627_v56, %v603_v24 }
 0x233   : > { %v633_v33 = vmul.f32 %v625_v28, %v601_v26  ;;  %v639_v38 = vpack.c.bf16 %v635_v31, %v634_v34 }
 0x235   : > { %v638_v35 = vpack.c.bf16 %v633_v33, %v632_v32 }
 0x237   : > { %941 = vmatprep.mubr.bf16.mxu1 %v638_v35 }
 0x238   : > { %942 = vmatmul.mubr.bf16.gmra.mxu1 %v639_v38 }
 0x2f0   : > { %v939_v40 = vpop.f32.mrf.mxu1 }
 0x2f1   : > { %v754_v41 = vadd.f32 %v939_v40, %v880_v39 }
 0x2f2   : > { %v745_v42 = vpop.f32.mrf.mxu1 }
 0x2f3   : > { %v778_v43 = vadd.f32 %v754_v41, %v1068_v7  ;;  %v746_v45 = vadd.f32 %v880_v39, %v745_v42 }
 0x2f4   : > { %v940_v47 = vpop.f32.mrf.mxu1 }
 0x2f5   : > { %786 = vst.msk [vmem:[%s329_s25 + $0x10] sm:$0xff] %vm356_vm0, %v778_v43  ;;  %v776_v48 = vadd.f32 %v746_v45, %v1066_v3  ;;  %v757_v49 = vadd.f32 %v940_v47, %v880_v39 }
 0x2f6   : > { %v748_v50 = vpop.f32.mrf.mxu1 }
 0x2f7   : > { %784 = vst.msk [vmem:[%s329_s25] sm:$0xff] %vm356_vm0, %v776_v48  ;;  %v779_v51 = vadd.f32 %v757_v49, %v1074_v13  ;;  %v749_v52 = vadd.f32 %v880_v39, %v748_v50 }
 0x2f8   : > { %v943_v53 = vpop.f32.mrf.mxu1 }
 0x2f9   : > { %787 = vst.msk [vmem:[%s329_s25 + $0x18] sm:$0xff] %vm356_vm0, %v779_v51  ;;  %v777_v55 = vadd.f32 %v749_v52, %v1070_v8  ;;  %v770_v57 = vadd.f32 %v943_v53, %v880_v39 }
 0x2fa   : > { %v761_v7 = vpop.f32.mrf.mxu1 }
 0x2fb   : > { %785 = vst.msk [vmem:[%s329_s25 + $0x8] sm:$0xff] %vm356_vm0, %v777_v55  ;;  %v782_v58 = vadd.f32 %v770_v57, %v1088_v27  ;;  %v762_v59 = vadd.f32 %v880_v39, %v761_v7 }
 0x2fc   : > { %v944_v3 = vpop.f32.mrf.mxu1 }
 0x2fd   : > { %790 = vst.msk [vmem:[%s329_s25 + $0x30] sm:$0xff] %vm356_vm0, %v782_v58  ;;  %v780_v36 = vadd.f32 %v762_v59, %v1080_v19  ;;  %v773_v60 = vadd.f32 %v944_v3, %v880_v39 }
 0x2fe   : > { %v764_v13 = vpop.f32.mrf.mxu1 }
 0x2ff   : > { %788 = vst.msk [vmem:[%s329_s25 + $0x20] sm:$0xff] %vm356_vm0, %v780_v36  ;;  %v783_v61 = vadd.f32 %v773_v60, %v1092_v29  ;;  %v765_v62 = vadd.f32 %v880_v39, %v764_v13 }
 0x301   : > { %791 = vst.msk [vmem:[%s329_s25 + $0x38] sm:$0xff] %vm356_vm0, %v783_v61  ;;  %v781_v8 = vadd.f32 %v765_v62, %v1084_v21 }
 0x303   : > { %789 = vst.msk [vmem:[%s329_s25 + $0x28] sm:$0xff] %vm356_vm0, %v781_v8 }
 0x304 PF: > { %s18_s27 = sadd.s32 1, %s1001_s27  }
 0x305   : > { %p15_p4 = scmp.ge.s32.totalorder %s18_s27, 4  }
 0x307   :  { %17 = sbr.rel (!%p15_p4) target bundleno = 1 (0x1), region = 85 }

// kernel: run.4
= control target key start
LH: loop header
LB: loop body
LE: loop exit
PB: predicated region body
PF: predicated region fallthrough
CT: control target
= control target key end

     0   :  { %s3512_s27 = smov 0   ;;  %s4382_s0 = inlined_call_operand.vmem [shape: f32[8,16,32], index: 0, kind: input, shape index: {}]   ;;  %s4383_s1 = inlined_call_operand.vmem [shape: f32[1,32], index: 1, kind: input, shape index: {}]   ;;  %s4384_s2 = inlined_call_operand.vmem [shape: f32[1,32], index: 2, kind: input, shape index: {}]   ;;  %s4385_s3 = inlined_call_operand.vmem [shape: bf16[32,96], index: 3, kind: input, shape index: {}]   ;;  %s4386_s4 = inlined_call_operand.vmem [shape: f32[1,96], index: 4, kind: input, shape index: {}]   ;;  %s4387_s5 = inlined_call_operand.vmem [shape: bf16[32,32], index: 5, kind: input, shape index: {}]   ;;  %s4388_s6 = inlined_call_operand.vmem [shape: f32[1,32], index: 6, kind: input, shape index: {}]   ;;  %s4389_s7 = inlined_call_operand.vmem [shape: f32[4,16,16], index: 7, kind: input, shape index: {}]   ;;  %s4390_s8 = inlined_call_operand.vmem [shape: f32[8,16,32], index: 8, kind: output, shape index: {}]  }
   0x1 LB: > { %s2864_s28 = sadd.s32 4294967295, %s3455_s27   ;;  %p2868_p0 = scmp.ge.s32.totalorder %s3455_s27, 1  ;;  %s3455_s27 = sphi %s3512_s27, %s18_s27  }
   0x2   : > { %p264_p1 = scmp.lt.s32.totalorder %s3455_s27, 3 }
   0x4   : > { %p265_p2 = pnand %p2868_p0, %p264_p1 }
   0x5   : > { %s2869_s29 = sshll.u32 (!%p265_p2), %s2864_s28, 2  ;;  %s3457_s22 = smov (!%p265_p2), 112  }
   0x6   : > { %268 = sbr.rel (%p265_p2) target bundleno = 1886 (0x75e), region = 52  ;;  %p301_p3 = scmp.lt.s32.totalorder (!%p265_p2), %s2869_s29, 7 }
   0x7   : > { %s3458_s23 = smov (!%p265_p2), 120   ;;  %s3459_s24 = smov (!%p265_p2), 104  }
   0x8   : > { %s3462_s25 = smov (!%p265_p2), 96   ;;  %s3463_s26 = smov (!%p265_p2), 64  }
   0xb   : > { %s4392_s29 = smov (!%p301_p3, %s2869_s29), 7  ;;  %vm323_vm0 = vcmask 261120   ;;  %v3301_v56 = vld [vmem:[%s4385_s3 + $0x8] sm:$0xff]   ;;  %v3302_v57 = vld [vmem:[%s4385_s3] sm:$0xff]   ;;  %vm3461_vm1 = vmmov 0   ;;  %vm597_vm2 = vcmask 64512  }
   0xc   : > { %s2925_s30 = sshll.u32 %s4392_s29, 4  ;;  %3003 = vmatprep.subr.bf16.mxu0 %v3301_v56  ;;  %3219 = vmatprep.subr.bf16.mxu1 %v3301_v56  ;;  %vm1452_vm3 = vcmask 130048   ;;  %vm2685_vm4 = vcmask 195584  }
   0xd   : > { %s305_s11 = scalar_lea.vmem %s4382_s0, %s2925_s30  ;;  %3004 = vmatpush3.bf16.msra.mxu0 %v3301_v56  ;;  %3221 = vmatpush3.bf16.msra.mxu1 %v3301_v56  ;;  %s312_s16 = scalar_lea.vmem %s4390_s8, %s2925_s30 }
   0xe   : > { %v315_v0 = vld [vmem:[%s305_s11] sm:$0xff]  ;;  %v317_v1 = vld [vmem:[%s305_s11 + $0x10] sm:$0xff]  ;;  %v316_v2 = vld [vmem:[%s305_s11 + $0x8] sm:$0xff]  ;;  %3005 = vmatprep.subr.bf16.mxu0 %v3302_v57  ;;  %3220 = vmatprep.subr.bf16.mxu1 %v3302_v57 }
   0xf   : > { %v324_v3 = vsel %vm323_vm0, %v315_v0, 0.0  ;;  %v330_v4 = vsel %vm323_vm0, %v317_v1, 0.0  ;;  %v318_v5 = vld [vmem:[%s305_s11 + $0x18] sm:$0xff]  ;;  %v327_v6 = vsel %vm323_vm0, %v316_v2, 0.0  ;;  %v319_v8 = vld [vmem:[%s305_s11 + $0x20] sm:$0xff]  ;;  %v320_v9 = vld [vmem:[%s305_s11 + $0x28] sm:$0xff] }
  0x10   : > { %325 = vadd.xlane.f32.xlu0 %v324_v3  ;;  %331 = vadd.xlane.f32.xlu1 %v330_v4  ;;  %v333_v7 = vsel %vm323_vm0, %v318_v5, 0.0  ;;  %v336_v10 = vsel %vm323_vm0, %v319_v8, 0.0  ;;  %v339_v11 = vsel %vm323_vm0, %v320_v9, 0.0  ;;  %v321_v12 = vld [vmem:[%s305_s11 + $0x30] sm:$0xff]  ;;  %v322_v13 = vld [vmem:[%s305_s11 + $0x38] sm:$0xff] }
  0x11   : > { %v342_v14 = vsel %vm323_vm0, %v321_v12, 0.0  ;;  %v345_v15 = vsel %vm323_vm0, %v322_v13, 0.0  ;;  %3006 = vmatpush3.bf16.msra.mxu0 %v3302_v57  ;;  %3222 = vmatpush3.bf16.msra.mxu1 %v3302_v57 }
  0x14   : > { %328 = vadd.xlane.f32.xlu0 %v327_v6  ;;  %334 = vadd.xlane.f32.xlu1 %v333_v7 }
  0x18   : > { %337 = vadd.xlane.f32.xlu0 %v336_v10  ;;  %340 = vadd.xlane.f32.xlu1 %v339_v11 }
  0x1c   : > { %343 = vadd.xlane.f32.xlu0 %v342_v14  ;;  %346 = vadd.xlane.f32.xlu1 %v345_v15 }
  0x99   : > { %v326_v16 = vpop.xlane.xlu0 %325  ;;  %v332_v17 = vpop.xlane.xlu1 %331 }
  0x9a   : > { %v349_v18 = vmul.f32 0.03125, %v326_v16  ;;  %v351_v19 = vmul.f32 0.03125, %v332_v17 }
  0x9c   : > { %v3536_v20 = vsub.f32 %v315_v0, %v349_v18  ;;  %v3538_v21 = vsub.f32 %v317_v1, %v351_v19 }
  0x9d   : > { %v329_v22 = vpop.xlane.xlu0 %328  ;;  %v335_v23 = vpop.xlane.xlu1 %334 }
  0x9e   : > { %v350_v24 = vmul.f32 0.03125, %v329_v22  ;;  %v352_v25 = vmul.f32 0.03125, %v335_v23  ;;  %v365_v26 = vmul.f32 %v3536_v20, %v3536_v20  ;;  %v367_v27 = vmul.f32 %v3538_v21, %v3538_v21  ;;  %v2875_v22 = vld [vmem:[%s4383_s1] ss:$0 sm:$0xff] }
  0xa0   : > { %v3544_v28 = vsub.f32 %v316_v2, %v350_v24  ;;  %v3546_v29 = vsub.f32 %v318_v5, %v352_v25  ;;  %v373_v30 = vsel %vm323_vm0, %v365_v26, 0.0  ;;  %v379_v33 = vsel %vm323_vm0, %v367_v27, 0.0  ;;  %v2876_v27 = vld [vmem:[%s4384_s2] ss:$0 sm:$0xff] }
  0xa1   : > { %374 = vadd.xlane.f32.xlu0 %v373_v30  ;;  %v338_v31 = vpop.xlane.xlu0 %337  ;;  %v341_v32 = vpop.xlane.xlu1 %340 }
  0xa2   : > { %v353_v34 = vmul.f32 0.03125, %v338_v31  ;;  %v354_v35 = vmul.f32 0.03125, %v341_v32  ;;  %v366_v36 = vmul.f32 %v3544_v28, %v3544_v28  ;;  %v368_v37 = vmul.f32 %v3546_v29, %v3546_v29 }
  0xa4   : > { %v3554_v38 = vsub.f32 %v319_v8, %v353_v34  ;;  %v3556_v39 = vsub.f32 %v320_v9, %v354_v35  ;;  %v376_v40 = vsel %vm323_vm0, %v366_v36, 0.0  ;;  %v382_v43 = vsel %vm323_vm0, %v368_v37, 0.0 }
  0xa5   : > { %380 = vadd.xlane.f32.xlu0 %v379_v33  ;;  %377 = vadd.xlane.f32.xlu1 %v376_v40  ;;  %v344_v41 = vpop.xlane.xlu0 %343  ;;  %v347_v42 = vpop.xlane.xlu1 %346 }
  0xa6   : > { %v355_v44 = vmul.f32 0.03125, %v344_v41  ;;  %v356_v45 = vmul.f32 0.03125, %v347_v42  ;;  %v369_v46 = vmul.f32 %v3554_v38, %v3554_v38  ;;  %v370_v47 = vmul.f32 %v3556_v39, %v3556_v39 }
  0xa8   : > { %v3564_v48 = vsub.f32 %v321_v12, %v355_v44  ;;  %v3566_v49 = vsub.f32 %v322_v13, %v356_v45  ;;  %v385_v50 = vsel %vm323_vm0, %v369_v46, 0.0  ;;  %v388_v51 = vsel %vm323_vm0, %v370_v47, 0.0 }
  0xa9   : > { %383 = vadd.xlane.f32.xlu1 %v382_v43  ;;  %386 = vadd.xlane.f32.xlu0 %v385_v50 }
  0xaa   : > { %v371_v52 = vmul.f32 %v3564_v48, %v3564_v48  ;;  %v372_v53 = vmul.f32 %v3566_v49, %v3566_v49 }
  0xac   : > { %v391_v54 = vsel %vm323_vm0, %v371_v52, 0.0  ;;  %v394_v55 = vsel %vm323_vm0, %v372_v53, 0.0 }
  0xad   : > { %389 = vadd.xlane.f32.xlu1 %v388_v51  ;;  %392 = vadd.xlane.f32.xlu0 %v391_v54 }
  0xb1   : > { %395 = vadd.xlane.f32.xlu1 %v394_v55 }
 0x12a   : > { %v375_v58 = vpop.xlane.xlu0 %374 }
 0x12b   : > { %v397_v59 = vmul.f32 0.03125, %v375_v58 }
 0x12d   : > { %v405_v60 = vadd.f32 1e-05, %v397_v59 }
 0x12e   : > { %v378_v61 = vpop.xlane.xlu1 %377  ;;  %v381_v62 = vpop.xlane.xlu0 %380 }
 0x12f   : > { %3305 = vrsqrt.f32 %v405_v60  ;;  %v398_v63 = vmul.f32 0.03125, %v378_v61  ;;  %v399_v0 = vmul.f32 0.03125, %v381_v62  ;;  %v2877_v60 = vld [vmem:[%s4386_s4] ss:$0 sm:$0xff] }
 0x131   : > { %v406_v1 = vadd.f32 1e-05, %v398_v63  ;;  %v407_v2 = vadd.f32 1e-05, %v399_v0 }
 0x132   : > { %v384_v3 = vpop.xlane.xlu1 %383  ;;  %v387_v4 = vpop.xlane.xlu0 %386 }
 0x133   : > { %3307 = vrsqrt.f32 %v406_v1  ;;  %v400_v5 = vmul.f32 0.03125, %v384_v3  ;;  %v401_v6 = vmul.f32 0.03125, %v387_v4 }
 0x134   : > { %3309 = vrsqrt.f32 %v407_v2 }
 0x135   : > { %v408_v7 = vadd.f32 1e-05, %v400_v5  ;;  %v409_v8 = vadd.f32 1e-05, %v401_v6 }
 0x136   : > { %v390_v9 = vpop.xlane.xlu1 %389  ;;  %v393_v10 = vpop.xlane.xlu0 %392 }
 0x137   : > { %3311 = vrsqrt.f32 %v408_v7  ;;  %v402_v11 = vmul.f32 0.03125, %v390_v9  ;;  %v403_v12 = vmul.f32 0.03125, %v393_v10  ;;  %v3460_v9 = vmov 0.0  }
 0x138   : > { %3313 = vrsqrt.f32 %v409_v8  ;;  %3015 = vmatprep.subr.bf16.mxu1 %v3460_v9  ;;  %3027 = vmatprep.subr.bf16.mxu0 %v3460_v9 }
 0x139   : > { %v410_v13 = vadd.f32 1e-05, %v402_v11  ;;  %v411_v14 = vadd.f32 1e-05, %v403_v12 }
 0x13a   : > { %v396_v15 = vpop.xlane.xlu1 %395 }
 0x13b   : > { %3315 = vrsqrt.f32 %v410_v13  ;;  %v404_v16 = vmul.f32 0.03125, %v396_v15 }
 0x13c   : > { %v3306_v17 = vpop.eup %3305  ;;  %3317 = vrsqrt.f32 %v411_v14 }
 0x13d   : > { %v412_v18 = vadd.f32 1e-05, %v404_v16  ;;  %v421_v19 = vmul.f32 %v3306_v17, %v3536_v20 }
 0x13f   : > { %3319 = vrsqrt.f32 %v412_v18  ;;  %v436_v26 = vmul.f32 %v2875_v22, %v421_v19 }
 0x140   : > { %v3308_v23 = vpop.eup %3307 }
 0x141   : > { %v3310_v24 = vpop.eup %3309  ;;  %v422_v25 = vmul.f32 %v3308_v23, %v3544_v28  ;;  %v451_v20 = vadd.f32 %v2876_v27, %v436_v26 }
 0x142   : > { %v423_v30 = vmul.f32 %v3310_v24, %v3538_v21 }
 0x143   : > { %v437_v31 = vmul.f32 %v2875_v22, %v422_v25 }
 0x144   : > { %v3312_v32 = vpop.eup %3311  ;;  %v438_v36 = vmul.f32 %v2875_v22, %v423_v30 }
 0x145   : > { %v3314_v33 = vpop.eup %3313  ;;  %v452_v34 = vadd.f32 %v2876_v27, %v437_v31  ;;  %v424_v35 = vmul.f32 %v3312_v32, %v3546_v29 }
 0x146   : > { %v425_v37 = vmul.f32 %v3314_v33, %v3554_v38  ;;  %v453_v43 = vadd.f32 %v2876_v27, %v438_v36 }
 0x147   : > { %v459_v40 = vpack.c.bf16 %v452_v34, %v451_v20  ;;  %v439_v41 = vmul.f32 %v2875_v22, %v424_v35 }
 0x148   : > { %v3316_v28 = vpop.eup %3315  ;;  %v440_v45 = vmul.f32 %v2875_v22, %v425_v37 }
 0x149   : > { %v3318_v42 = vpop.eup %3317  ;;  %3007 = vmatprep.mubr.msk.bf16.mxu0 %vm323_vm0, %v459_v40  ;;  %v454_v44 = vadd.f32 %v2876_v27, %v439_v41  ;;  %v426_v21 = vmul.f32 %v3316_v28, %v3556_v39 }
 0x14a   : > { %v427_v46 = vmul.f32 %v3318_v42, %v3564_v48  ;;  %v455_v29 = vadd.f32 %v2876_v27, %v440_v45 }
 0x14b   : > { %v460_v47 = vpack.c.bf16 %v454_v44, %v453_v43  ;;  %v441_v50 = vmul.f32 %v2875_v22, %v426_v21 }
 0x14c   : > { %v3320_v51 = vpop.eup %3319  ;;  %v442_v53 = vmul.f32 %v2875_v22, %v427_v46 }
 0x14d   : > { %3008 = vmatmul.mubr.msk.bf16.vlgmr.msra.gmra.mxu0 %vm323_vm0, %v460_v47  ;;  %v456_v38 = vadd.f32 %v2876_v27, %v441_v50  ;;  %v428_v52 = vmul.f32 %v3320_v51, %v3566_v49 }
 0x14e   : > { %v457_v56 = vadd.f32 %v2876_v27, %v442_v53  ;;  %3029 = vmatprep.mubr.msk.bf16.mxu0 %vm3461_vm1, %v3460_v9 }
 0x14f   : > { %v461_v54 = vpack.c.bf16 %v456_v38, %v455_v29  ;;  %v443_v55 = vmul.f32 %v2875_v22, %v428_v52 }
 0x151   : > { %3011 = vmatprep.mubr.msk.bf16.mxu1 %vm323_vm0, %v461_v54  ;;  %v458_v57 = vadd.f32 %v2876_v27, %v443_v55 }
 0x153   : > { %v462_v39 = vpack.c.bf16 %v458_v57, %v457_v56 }
 0x155   : > { %3012 = vmatmul.mubr.msk.bf16.vlgmr.msra.gmra.mxu1 %vm323_vm0, %v462_v39 }
 0x156   : > { %3017 = vmatprep.mubr.msk.bf16.mxu1 %vm3461_vm1, %v3460_v9 }
 0x20d   : > { %v3009_v48 = vpop.f32.mrf.mxu0 }
 0x20e   : > { %v541_v3 = vadd.f32 %v3009_v48, %v2877_v60 }
 0x20f   : > { %v532_v58 = vpop.f32.mrf.mxu0 }
 0x210   : > { %v533_v62 = vadd.f32 %v2877_v60, %v532_v58 }
 0x211   : > { %v3010_v59 = vpop.f32.mrf.mxu0 }
 0x212   : > { %v544_v0 = vadd.f32 %v3010_v59, %v2877_v60 }
 0x213   : > { %v535_v61 = vpop.f32.mrf.mxu0 }
 0x214   : > { %v536_v49 = vadd.f32 %v2877_v60, %v535_v61  ;;  %v3608_v5 = vpack.c.bf16 %v544_v0, %v541_v3 }
 0x215   : > { %v3013_v63 = vpop.f32.mrf.mxu1 }
 0x216   : > { %v3603_v1 = vpack.c.bf16 %v536_v49, %v533_v62  ;;  %v557_v12 = vadd.f32 %v3013_v63, %v2877_v60  ;;  %v3808_v63 = vld [vmem:[%s4389_s7] sm:$0xff] }
 0x217   : > { %v548_v2 = vpop.f32.mrf.mxu1 }
 0x218   : > { %579 = vrot.lane.b32.xlu1 %v3603_v1, %s3457_s22  ;;  %571 = vrot.lane.b32.xlu0 %v3603_v1, %s3458_s23  ;;  %v549_v7 = vadd.f32 %v2877_v60, %v548_v2 }
 0x219   : > { %v3014_v4 = vpop.f32.mrf.mxu1 }
 0x21a   : > { %v560_v11 = vadd.f32 %v3014_v4, %v2877_v60  ;;  %v3816_v4 = vld [vmem:[%s4389_s7 + $0x8] sm:$0xff] }
 0x21b   : > { %v551_v6 = vpop.f32.mrf.mxu1 }
 0x21c   : > { %v552_v8 = vadd.f32 %v2877_v60, %v551_v6  ;;  %587 = vrot.lane.b32.xlu1 %v3603_v1, %s3459_s24  ;;  %581 = vrot.lane.b32.xlu0 %v3608_v5, %s3457_s22  ;;  %v3629_v13 = vpack.c.bf16 %v560_v11, %v557_v12 }
 0x21e   : > { %v3615_v10 = vpack.c.bf16 %v552_v8, %v549_v7 }
 0x220   : > { %573 = vrot.lane.b32.xlu1 %v3608_v5, %s3458_s23  ;;  %575 = vrot.lane.b32.xlu0 %v3615_v10, %s3458_s23 }
 0x224   : > { %589 = vrot.lane.b32.xlu1 %v3608_v5, %s3459_s24  ;;  %591 = vrot.lane.b32.xlu0 %v3615_v10, %s3459_s24 }
 0x228   : > { %583 = vrot.lane.b32.xlu1 %v3615_v10, %s3457_s22  ;;  %595 = vrot.lane.b32.xlu0 %v3603_v1, %s3462_s25 }
 0x22c   : > { %577 = vrot.lane.b32.xlu1 %v3629_v13, %s3458_s23  ;;  %593 = vrot.lane.b32.xlu0 %v3629_v13, %s3459_s24  ;;  %s3464_s24 = smov 8  }
 0x230   : > { %585 = vrot.lane.b32.xlu1 %v3629_v13, %s3457_s22 }
 0x28a   : > { %v580_v14 = vpop.permute.xlu1 %579  ;;  %v572_v15 = vpop.permute.xlu0 %571 }
 0x28b   : > { %694 = vrot.lane.b32.xlu0 %v580_v14, %s3462_s25  ;;  %645 = vrot.lane.b32.xlu1 %v572_v15, %s3462_s25 }
 0x28e   : > { %v3637_v16 = vpop.permute.xlu1 %587  ;;  %v3639_v17 = vpop.permute.xlu0 %581 }
 0x28f   : > { %792 = vrot.lane.b32.xlu0 %v3608_v5, %s3462_s25  ;;  %743 = vrot.lane.b32.xlu1 %v3637_v16, %s3462_s25 }
 0x292   : > { %v3645_v18 = vpop.permute.xlu1 %573  ;;  %v3647_v19 = vpop.permute.xlu0 %575 }
 0x293   : > { %841 = vrot.lane.b32.xlu1 %v3645_v18, %s3462_s25  ;;  %890 = vrot.lane.b32.xlu0 %v3639_v17, %s3462_s25 }
 0x296   : > { %v3653_v22 = vpop.permute.xlu1 %589  ;;  %v3655_v23 = vpop.permute.xlu0 %591 }
 0x297   : > { %939 = vrot.lane.b32.xlu1 %v3653_v22, %s3462_s25  ;;  %988 = vrot.lane.b32.xlu0 %v3615_v10, %s3462_s25 }
 0x29a   : > { %v3661_v24 = vpop.permute.xlu1 %583  ;;  %v596_v25 = vpop.permute.xlu0 %595 }
 0x29b   : > { %v602_v26 = vsel %vm597_vm2, %v596_v25, 0  ;;  %1086 = vrot.lane.b32.xlu0 %v3661_v24, %s3462_s25  ;;  %1037 = vrot.lane.b32.xlu1 %v3647_v19, %s3462_s25  ;;  %v3841_v25 = vld [vmem:[%s4389_s7 + $0x28] sm:$0xff] }
 0x29c   : > { %3016 = vmatpush3.bf16.xpose.msra.mxu1 %v602_v26 }
 0x29d   : > { %3021 = vmatprep.subr.bf16.mxu1 %v3460_v9 }
 0x29e   : > { %v3669_v27 = vpop.permute.xlu1 %577  ;;  %v3685_v31 = vpop.permute.xlu0 %593 }
 0x29f   : > { %1184 = vrot.lane.b32.xlu0 %v3629_v13, %s3462_s25  ;;  %1135 = vrot.lane.b32.xlu1 %v3655_v23, %s3462_s25 }
 0x2a2   : > { %v3675_v30 = vpop.permute.xlu1 %585 }
 0x2a3   : > { %1282 = vrot.lane.b32.xlu0 %v3675_v30, %s3462_s25  ;;  %1233 = vrot.lane.b32.xlu1 %v3669_v27, %s3462_s25 }
 0x2a4   : > { %3018 = vmatmul.mubr.msk.bf16.vlgmr.msra.gmra.mxu1 %vm597_vm2, %v3603_v1 }
 0x2a5   : > { %3023 = vmatprep.mubr.msk.bf16.mxu1 %vm3461_vm1, %v3460_v9 }
 0x2a7   : > { %1821 = vrot.lane.b32.xlu0 %v3603_v1, %s3463_s26  ;;  %1331 = vrot.lane.b32.xlu1 %v3685_v31, %s3462_s25  ;;  %s3465_s25 = smov 16  }
 0x2ab   : > { %2009 = vrot.lane.b32.xlu0 %v3608_v5, %s3463_s26  ;;  %2056 = vrot.lane.b32.xlu1 %v3645_v18, %s3463_s26 }
 0x2af   : > { %2103 = vrot.lane.b32.xlu0 %v3639_v17, %s3463_s26  ;;  %2150 = vrot.lane.b32.xlu1 %v3653_v22, %s3463_s26 }
 0x2b3   : > { %2197 = vrot.lane.b32.xlu0 %v3615_v10, %s3463_s26  ;;  %1868 = vrot.lane.b32.xlu1 %v572_v15, %s3463_s26 }
 0x2b7   : > { %1915 = vrot.lane.b32.xlu0 %v580_v14, %s3463_s26  ;;  %1962 = vrot.lane.b32.xlu1 %v3637_v16, %s3463_s26 }
 0x2bb   : > { %2244 = vrot.lane.b32.xlu1 %v3647_v19, %s3463_s26 }
 0x2bf   : > { %2291 = vrot.lane.b32.xlu1 %v3661_v24, %s3463_s26 }
 0x2c3   : > { %2338 = vrot.lane.b32.xlu1 %v3655_v23, %s3463_s26 }
 0x2fd   : > { %v646_v32 = vpop.permute.xlu1 %645  ;;  %v695_v33 = vpop.permute.xlu0 %694 }
 0x2fe   : > { %v651_v20 = vsel %vm597_vm2, %v646_v32, 0  ;;  %v700_v34 = vsel %vm597_vm2, %v695_v33, 0 }
 0x2ff   : > { %3022 = vmatpush3.bf16.xpose.msra.mxu1 %v651_v20  ;;  %3028 = vmatpush3.bf16.xpose.msra.mxu0 %v700_v34 }
 0x300   : > { %3033 = vmatprep.subr.bf16.mxu1 %v3460_v9  ;;  %3039 = vmatprep.subr.bf16.mxu0 %v3460_v9 }
 0x301   : > { %v744_v35 = vpop.permute.xlu1 %743  ;;  %v793_v36 = vpop.permute.xlu0 %792 }
 0x302   : > { %v749_v37 = vsel %vm597_vm2, %v744_v35, 0  ;;  %v798_v40 = vsel %vm597_vm2, %v793_v36, 0  ;;  %v3851_v36 = vld [vmem:[%s4389_s7 + $0x18] sm:$0xff] }
 0x305   : > { %v842_v41 = vpop.permute.xlu1 %841  ;;  %v891_v28 = vpop.permute.xlu0 %890 }
 0x306   : > { %3024 = vmatmul.mubr.msk.bf16.vlgmr.msra.gmra.mxu1 %vm597_vm2, %v572_v15  ;;  %3030 = vmatmul.mubr.msk.bf16.vlgmr.msra.gmra.mxu0 %vm597_vm2, %v580_v14  ;;  %v847_v42 = vsel %vm597_vm2, %v842_v41, 0  ;;  %v896_v43 = vsel %vm597_vm2, %v891_v28, 0  ;;  %v3828_v14 = vld [vmem:[%s4389_s7 + $0x10] sm:$0xff] }
 0x307   : > { %3034 = vmatpush3.bf16.xpose.msra.mxu1 %v749_v37  ;;  %3040 = vmatpush3.bf16.xpose.msra.mxu0 %v798_v40 }
 0x308   : > { %3035 = vmatprep.mubr.msk.bf16.mxu1 %vm3461_vm1, %v3460_v9  ;;  %3041 = vmatprep.mubr.msk.bf16.mxu0 %vm3461_vm1, %v3460_v9 }
 0x309   : > { %3045 = vmatprep.subr.bf16.mxu1 %v3460_v9  ;;  %3051 = vmatprep.subr.bf16.mxu0 %v3460_v9  ;;  %v940_v44 = vpop.permute.xlu1 %939  ;;  %v989_v21 = vpop.permute.xlu0 %988 }
 0x30a   : > { %v945_v45 = vsel %vm597_vm2, %v940_v44, 0  ;;  %v994_v46 = vsel %vm597_vm2, %v989_v21, 0 }
 0x30d   : > { %v1038_v47 = vpop.permute.xlu1 %1037  ;;  %v1087_v50 = vpop.permute.xlu0 %1086 }
 0x30e   : > { %3036 = vmatmul.mubr.msk.bf16.vlgmr.msra.gmra.mxu1 %vm597_vm2, %v3637_v16  ;;  %3042 = vmatmul.mubr.msk.bf16.vlgmr.msra.gmra.mxu0 %vm597_vm2, %v3608_v5  ;;  %v1043_v51 = vsel %vm597_vm2, %v1038_v47, 0  ;;  %v1092_v29 = vsel %vm597_vm2, %v1087_v50, 0 }
 0x30f   : > { %3046 = vmatpush3.bf16.xpose.msra.mxu1 %v847_v42  ;;  %3052 = vmatpush3.bf16.xpose.msra.mxu0 %v896_v43 }
 0x310   : > { %3047 = vmatprep.mubr.msk.bf16.mxu1 %vm3461_vm1, %v3460_v9  ;;  %3053 = vmatprep.mubr.msk.bf16.mxu0 %vm3461_vm1, %v3460_v9 }
 0x311   : > { %3057 = vmatprep.subr.bf16.mxu1 %v3460_v9  ;;  %3063 = vmatprep.subr.bf16.mxu0 %v3460_v9  ;;  %v1136_v38 = vpop.permute.xlu1 %1135  ;;  %v1185_v52 = vpop.permute.xlu0 %1184 }
 0x312   : > { %v1141_v53 = vsel %vm597_vm2, %v1136_v38, 0  ;;  %v1190_v54 = vsel %vm597_vm2, %v1185_v52, 0 }
 0x315   : > { %v1234_v55 = vpop.permute.xlu1 %1233  ;;  %v1283_v56 = vpop.permute.xlu0 %1282 }
 0x316   : > { %3048 = vmatmul.mubr.msk.bf16.vlgmr.msra.gmra.mxu1 %vm597_vm2, %v3645_v18  ;;  %3054 = vmatmul.mubr.msk.bf16.vlgmr.msra.gmra.mxu0 %vm597_vm2, %v3639_v17  ;;  %v1239_v39 = vsel %vm597_vm2, %v1234_v55, 0  ;;  %v1288_v48 = vsel %vm597_vm2, %v1283_v56, 0 }
 0x317   : > { %3058 = vmatpush3.bf16.xpose.msra.mxu1 %v945_v45  ;;  %3064 = vmatpush3.bf16.xpose.msra.mxu0 %v994_v46  ;;  %v3866_v46 = vld [vmem:[%s4389_s7 + $0x30] sm:$0xff] }
 0x318   : > { %3059 = vmatprep.mubr.msk.bf16.mxu1 %vm3461_vm1, %v3460_v9  ;;  %3065 = vmatprep.mubr.msk.bf16.mxu0 %vm3461_vm1, %v3460_v9 }
 0x319   : > { %3069 = vmatprep.subr.bf16.mxu1 %v3460_v9  ;;  %3075 = vmatprep.subr.bf16.mxu0 %v3460_v9  ;;  %v1332_v57 = vpop.permute.xlu1 %1331  ;;  %v1822_v60 = vpop.permute.xlu0 %1821 }
 0x31a   : > { %v1337_v59 = vsel %vm597_vm2, %v1332_v57, 0 }
 0x31d   : > { %v3785_v58 = vpop.permute.xlu1 %2056 }
 0x31e   : > { %3060 = vmatmul.mubr.msk.bf16.vlgmr.msra.gmra.mxu1 %vm597_vm2, %v3653_v22  ;;  %3066 = vmatmul.mubr.msk.bf16.vlgmr.msra.gmra.mxu0 %vm597_vm2, %v3615_v10 }
 0x31f   : > { %3070 = vmatpush3.bf16.xpose.msra.mxu1 %v1043_v51  ;;  %3076 = vmatpush3.bf16.xpose.msra.mxu0 %v1092_v29  ;;  %v3871_v29 = vld [vmem:[%s4389_s7 + $0x38] sm:$0xff] }
 0x320   : > { %3071 = vmatprep.mubr.msk.bf16.mxu1 %vm3461_vm1, %v3460_v9  ;;  %3077 = vmatprep.mubr.msk.bf16.mxu0 %vm3461_vm1, %v3460_v9 }
 0x321   : > { %3081 = vmatprep.subr.bf16.mxu1 %v3460_v9  ;;  %3087 = vmatprep.subr.bf16.mxu0 %v3460_v9  ;;  %v3792_v61 = vpop.permute.xlu1 %2150 }
 0x325   : > { %v1869_v62 = vpop.permute.xlu1 %1868 }
 0x326   : > { %3072 = vmatmul.mubr.msk.bf16.vlgmr.msra.gmra.mxu1 %vm597_vm2, %v3647_v19  ;;  %3078 = vmatmul.mubr.msk.bf16.vlgmr.msra.gmra.mxu0 %vm597_vm2, %v3661_v24  ;;  %v3833_v19 = vld [vmem:[%s4389_s7 + $0x20] sm:$0xff] }
 0x327   : > { %3082 = vmatpush3.bf16.xpose.msra.mxu1 %v1141_v53  ;;  %3088 = vmatpush3.bf16.xpose.msra.mxu0 %v1190_v54 }
 0x328   : > { %3083 = vmatprep.mubr.msk.bf16.mxu1 %vm3461_vm1, %v3460_v9  ;;  %3089 = vmatprep.mubr.msk.bf16.mxu0 %vm3461_vm1, %v3460_v9 }
 0x329   : > { %3093 = vmatprep.subr.bf16.mxu1 %v3460_v9  ;;  %3099 = vmatprep.subr.bf16.mxu0 %v3460_v9 }
 0x32e   : > { %3084 = vmatmul.mubr.msk.bf16.vlgmr.msra.gmra.mxu1 %vm597_vm2, %v3655_v23  ;;  %3090 = vmatmul.mubr.msk.bf16.vlgmr.msra.gmra.mxu0 %vm597_vm2, %v3629_v13 }
 0x32f   : > { %3094 = vmatpush3.bf16.xpose.msra.mxu1 %v1239_v39  ;;  %3100 = vmatpush3.bf16.xpose.msra.mxu0 %v1288_v48 }
 0x330   : > { %3095 = vmatprep.mubr.msk.bf16.mxu1 %vm3461_vm1, %v3460_v9  ;;  %3101 = vmatprep.mubr.msk.bf16.mxu0 %vm3461_vm1, %v3460_v9 }
 0x331   : > { %3105 = vmatprep.subr.bf16.mxu1 %v3460_v9  ;;  %3111 = vmatprep.subr.bf16.mxu0 %v3460_v9 }
 0x336   : > { %3096 = vmatmul.mubr.msk.bf16.vlgmr.msra.gmra.mxu1 %vm597_vm2, %v3669_v27  ;;  %3102 = vmatmul.mubr.msk.bf16.vlgmr.msra.gmra.mxu0 %vm597_vm2, %v3675_v30 }
 0x337   : > { %3106 = vmatpush3.bf16.xpose.msra.mxu1 %v1337_v59  ;;  %3112 = vmatpush3.bf16.msra.mxu0 %v1822_v60 }
 0x338   : > { %3107 = vmatprep.mubr.msk.bf16.mxu1 %vm3461_vm1, %v3460_v9  ;;  %3117 = vmatprep.subr.bf16.mxu1 %v3460_v9 }
 0x339   : > { %3113 = vmatprep.mubr.msk.bf16.mxu0 %vm3461_vm1, %v3460_v9  ;;  %3123 = vmatprep.subr.bf16.mxu0 %v3460_v9 }
 0x33e   : > { %3108 = vmatmul.mubr.msk.bf16.vlgmr.msra.gmra.mxu1 %vm597_vm2, %v3685_v31 }
 0x33f   : > { %3118 = vmatpush3.bf16.msra.mxu1 %v1869_v62  ;;  %3119 = vmatprep.mubr.msk.bf16.mxu1 %vm3461_vm1, %v3460_v9 }
 0x340   : > { %3129 = vmatprep.subr.bf16.mxu1 %v3460_v9 }
 0x364   : > { %v638_v49 = vpop.f32.mrf.mxu1 }
 0x365   : > { %v1380_v0 = vmul.f32 0.35355338, %v638_v49 }
 0x366   : > { %v3019_v1 = vpop.f32.mrf.mxu1 }
 0x367   : > { %v3811_v2 = vadd.f32 %v3808_v63, %v1380_v0 }
 0x368   : > { %v641_v3 = vpop.f32.mrf.mxu1 }
 0x369   : > { %v1381_v5 = vmul.f32 0.35355338, %v641_v3  ;;  %v1453_v6 = vsel %vm1452_vm3, %v3811_v2, -inf }
 0x36a   : > { %1454 = vmax.xlane.f32.xlu0 %v1453_v6  ;;  %v3020_v7 = vpop.f32.mrf.mxu1 }
 0x36b   : > { %v3821_v8 = vadd.f32 %v3816_v4, %v1381_v5 }
 0x36d   : > { %v1456_v10 = vsel %vm1452_vm3, %v3821_v8, -inf }
 0x36e   : > { %1457 = vmax.xlane.f32.xlu1 %v1456_v10 }
 0x3c6   : > { %v687_v11 = vpop.f32.mrf.mxu1  ;;  %v736_v12 = vpop.f32.mrf.mxu0 }
 0x3c7   : > { %v1382_v15 = vmul.f32 0.35355338, %v687_v11  ;;  %v1384_v16 = vmul.f32 0.35355338, %v736_v12 }
 0x3c8   : > { %v3025_v17 = vpop.f32.mrf.mxu1  ;;  %v3031_v18 = vpop.f32.mrf.mxu0 }
 0x3c9   : > { %v3836_v22 = vadd.f32 %v3828_v14, %v1382_v15  ;;  %v3846_v20 = vadd.f32 %v3833_v19, %v1384_v16 }
 0x3ca   : > { %v690_v23 = vpop.f32.mrf.mxu1  ;;  %v739_v24 = vpop.f32.mrf.mxu0 }
 0x3cb   : > { %v1383_v26 = vmul.f32 0.35355338, %v690_v23  ;;  %v1385_v32 = vmul.f32 0.35355338, %v739_v24  ;;  %v1459_v33 = vsel %vm1452_vm3, %v3836_v22, -inf  ;;  %v1465_v42 = vsel %vm1452_vm3, %v3846_v20, -inf  ;;  %v3898_v23 = vpop.permute.xlu0 %2009 }
 0x3cc   : > { %1460 = vmax.xlane.f32.xlu0 %v1459_v33  ;;  %v3026_v34 = vpop.f32.mrf.mxu1  ;;  %v3032_v35 = vpop.f32.mrf.mxu0 }
 0x3cd   : > { %v3854_v37 = vadd.f32 %v3841_v25, %v1385_v32  ;;  %v3861_v44 = vadd.f32 %v3851_v36, %v1383_v26 }
 0x3ce   : > { %v785_v40 = vpop.f32.mrf.mxu1  ;;  %v834_v41 = vpop.f32.mrf.mxu0 }
 0x3cf   : > { %v1386_v28 = vmul.f32 0.35355338, %v785_v40  ;;  %v1468_v43 = vsel %vm1452_vm3, %v3854_v37, -inf  ;;  %v1388_v47 = vmul.f32 0.35355338, %v834_v41  ;;  %v1462_v53 = vsel %vm1452_vm3, %v3861_v44, -inf }
 0x3d0   : > { %v3037_v21 = vpop.f32.mrf.mxu1  ;;  %1466 = vmax.xlane.f32.xlu0 %v1465_v42  ;;  %1469 = vmax.xlane.f32.xlu1 %v1468_v43  ;;  %v3043_v45 = vpop.f32.mrf.mxu0 }
 0x3d1   : > { %v3876_v54 = vadd.f32 %v3866_v46, %v1386_v28  ;;  %v3882_v59 = vadd.f32 %v3808_v63, %v1388_v47  ;;  %v3913_v43 = vpop.permute.xlu1 %1962 }
 0x3d2   : > { %v788_v50 = vpop.f32.mrf.mxu1  ;;  %v837_v51 = vpop.f32.mrf.mxu0 }
 0x3d3   : > { %v1387_v38 = vmul.f32 0.35355338, %v788_v50  ;;  %v1389_v52 = vmul.f32 0.35355338, %v837_v51  ;;  %v1471_v62 = vsel %vm1452_vm3, %v3876_v54, -inf  ;;  %v1477_v10 = vsel %vm1452_vm3, %v3882_v59, -inf  ;;  %v3917_v51 = vpop.permute.xlu0 %2103 }
 0x3d4   : > { %v3038_v55 = vpop.f32.mrf.mxu1  ;;  %1463 = vmax.xlane.f32.xlu0 %v1462_v53  ;;  %v3044_v56 = vpop.f32.mrf.mxu0 }
 0x3d5   : > { %v3879_v57 = vadd.f32 %v3871_v29, %v1387_v38  ;;  %v3889_v0 = vadd.f32 %v3816_v4, %v1389_v52 }
 0x3d6   : > { %v883_v39 = vpop.f32.mrf.mxu1  ;;  %v932_v48 = vpop.f32.mrf.mxu0 }
 0x3d7   : > { %v1390_v60 = vmul.f32 0.35355338, %v883_v39  ;;  %v1474_v49 = vsel %vm1452_vm3, %v3879_v57, -inf  ;;  %v1392_v5 = vmul.f32 0.35355338, %v932_v48  ;;  %v1480_v15 = vsel %vm1452_vm3, %v3889_v0, -inf }
 0x3d8   : > { %v3049_v1 = vpop.f32.mrf.mxu1  ;;  %1472 = vmax.xlane.f32.xlu0 %v1471_v62  ;;  %1475 = vmax.xlane.f32.xlu1 %v1474_v49  ;;  %v3055_v3 = vpop.f32.mrf.mxu0 }
 0x3d9   : > { %v3896_v16 = vadd.f32 %v3828_v14, %v1390_v60  ;;  %v3904_v33 = vadd.f32 %v3833_v19, %v1392_v5  ;;  %v3930_v1 = vpop.permute.xlu1 %2244 }
 0x3da   : > { %v886_v6 = vpop.f32.mrf.mxu1  ;;  %v935_v7 = vpop.f32.mrf.mxu0 }
 0x3db   : > { %v1391_v11 = vmul.f32 0.35355338, %v886_v6  ;;  %v1393_v12 = vmul.f32 0.35355338, %v935_v7  ;;  %v1483_v35 = vsel %vm1452_vm3, %v3896_v16, -inf  ;;  %v1489_v50 = vsel %vm1452_vm3, %v3904_v33, -inf }
 0x3dc   : > { %v3050_v17 = vpop.f32.mrf.mxu1  ;;  %1478 = vmax.xlane.f32.xlu0 %v1477_v10  ;;  %1481 = vmax.xlane.f32.xlu1 %v1480_v15  ;;  %v3056_v18 = vpop.f32.mrf.mxu0 }
 0x3dd   : > { %v3901_v24 = vadd.f32 %v3851_v36, %v1391_v11  ;;  %v3911_v41 = vadd.f32 %v3841_v25, %v1393_v12  ;;  %v3939_v12 = vpop.permute.xlu0 %2197 }
 0x3de   : > { %v981_v26 = vpop.f32.mrf.mxu1  ;;  %v1030_v32 = vpop.f32.mrf.mxu0 }
 0x3df   : > { %v1394_v34 = vmul.f32 0.35355338, %v981_v26  ;;  %v1486_v40 = vsel %vm1452_vm3, %v3901_v24, -inf  ;;  %v1396_v21 = vmul.f32 0.35355338, %v1030_v32  ;;  %v1492_v53 = vsel %vm1452_vm3, %v3911_v41, -inf }
 0x3e0   : > { %v3061_v28 = vpop.f32.mrf.mxu1  ;;  %1484 = vmax.xlane.f32.xlu0 %v1483_v35  ;;  %1487 = vmax.xlane.f32.xlu1 %v1486_v40  ;;  %v3067_v42 = vpop.f32.mrf.mxu0 }
 0x3e1   : > { %v3922_v55 = vadd.f32 %v3866_v46, %v1394_v34  ;;  %v3928_v49 = vadd.f32 %v3808_v63, %v1396_v21  ;;  %v3948_v21 = vpop.permute.xlu1 %2291 }
 0x3e2   : > { %v984_v45 = vpop.f32.mrf.mxu1  ;;  %v1033_v47 = vpop.f32.mrf.mxu0 }
 0x3e3   : > { %v1395_v38 = vmul.f32 0.35355338, %v984_v45  ;;  %v1397_v52 = vmul.f32 0.35355338, %v1033_v47  ;;  %v1495_v5 = vsel %vm1452_vm3, %v3922_v55, -inf  ;;  %v1501_v26 = vsel %vm1452_vm3, %v3928_v49, -inf }
 0x3e4   : > { %v3062_v56 = vpop.f32.mrf.mxu1  ;;  %1490 = vmax.xlane.f32.xlu0 %v1489_v50  ;;  %1493 = vmax.xlane.f32.xlu1 %v1492_v53  ;;  %v3068_v39 = vpop.f32.mrf.mxu0 }
 0x3e5   : > { %v3925_v48 = vadd.f32 %v3871_v29, %v1395_v38  ;;  %v3937_v7 = vadd.f32 %v3816_v4, %v1397_v52  ;;  %v3956_v52 = vpop.permute.xlu0 %1915 }
 0x3e6   : > { %v1079_v60 = vpop.f32.mrf.mxu1  ;;  %v1128_v62 = vpop.f32.mrf.mxu0 }
 0x3e7   : > { %v1398_v3 = vmul.f32 0.35355338, %v1079_v60  ;;  %v1498_v6 = vsel %vm1452_vm3, %v3925_v48, -inf  ;;  %v1400_v15 = vmul.f32 0.35355338, %v1128_v62  ;;  %v1504_v35 = vsel %vm1452_vm3, %v3937_v7, -inf }
 0x3e8   : > { %v3073_v10 = vpop.f32.mrf.mxu1  ;;  %1496 = vmax.xlane.f32.xlu0 %v1495_v5  ;;  %1499 = vmax.xlane.f32.xlu1 %v1498_v6  ;;  %v3079_v11 = vpop.f32.mrf.mxu0 }
 0x3e9   : > { %v3946_v40 = vadd.f32 %v3828_v14, %v1398_v3  ;;  %v3954_v38 = vadd.f32 %v3833_v19, %v1400_v15  ;;  %v3967_v15 = vpop.permute.xlu1 %2338 }
 0x3ea   : > { %v1082_v17 = vpop.f32.mrf.mxu1  ;;  %v1131_v18 = vpop.f32.mrf.mxu0 }
 0x3eb   : > { %v1399_v32 = vmul.f32 0.35355338, %v1082_v17  ;;  %v1401_v34 = vmul.f32 0.35355338, %v1131_v18  ;;  %v1507_v56 = vsel %vm1452_vm3, %v3946_v40, -inf  ;;  %v1513_v11 = vsel %vm1452_vm3, %v3954_v38, -inf }
 0x3ec   : > { %v3074_v28 = vpop.f32.mrf.mxu1  ;;  %1502 = vmax.xlane.f32.xlu0 %v1501_v26  ;;  %1505 = vmax.xlane.f32.xlu1 %v1504_v35  ;;  %v3080_v42 = vpop.f32.mrf.mxu0 }
 0x3ed   : > { %v3951_v45 = vadd.f32 %v3851_v36, %v1399_v32  ;;  %v3963_v60 = vadd.f32 %v3841_v25, %v1401_v34 }
 0x3ee   : > { %v1177_v47 = vpop.f32.mrf.mxu1  ;;  %v1226_v50 = vpop.f32.mrf.mxu0 }
 0x3ef   : > { %v1402_v53 = vmul.f32 0.35355338, %v1177_v47  ;;  %v1510_v39 = vsel %vm1452_vm3, %v3951_v45, -inf  ;;  %v1404_v5 = vmul.f32 0.35355338, %v1226_v50  ;;  %v1516_v32 = vsel %vm1452_vm3, %v3963_v60, -inf }
 0x3f0   : > { %v3085_v62 = vpop.f32.mrf.mxu1  ;;  %1508 = vmax.xlane.f32.xlu0 %v1507_v56  ;;  %1511 = vmax.xlane.f32.xlu1 %v1510_v39  ;;  %v3091_v3 = vpop.f32.mrf.mxu0 }
 0x3f1   : > { %v3972_v34 = vadd.f32 %v3866_v46, %v1402_v53 }
 0x3f2   : > { %v1180_v6 = vpop.f32.mrf.mxu1  ;;  %v1229_v10 = vpop.f32.mrf.mxu0 }
 0x3f3   : > { %v1403_v17 = vmul.f32 0.35355338, %v1180_v6  ;;  %v1405_v18 = vmul.f32 0.35355338, %v1229_v10  ;;  %v1455_v26 = vpop.xlane.xlu0 %1454  ;;  %v1519_v3 = vsel %vm1452_vm3, %v3972_v34, -inf  ;;  %v3983_v6 = vadd.f32 %v3808_v63, %v1404_v5 }
 0x3f4   : > { %v1549_v35 = vsub.f32 %v3811_v2, %v1455_v26  ;;  %v3086_v28 = vpop.f32.mrf.mxu1  ;;  %1514 = vmax.xlane.f32.xlu0 %v1513_v11  ;;  %1517 = vmax.xlane.f32.xlu1 %v1516_v32  ;;  %v3092_v42 = vpop.f32.mrf.mxu0 }
 0x3f5   : > { %v3976_v47 = vadd.f32 %v3871_v29, %v1403_v17  ;;  %v3986_v2 = vadd.f32 %v3816_v4, %v1405_v18  ;;  %v1525_v28 = vsel %vm1452_vm3, %v3983_v6, -inf }
 0x3f6   : > { %v1581_v50 = vmul.f32 1.442695, %v1549_v35  ;;  %v1275_v56 = vpop.f32.mrf.mxu1  ;;  %v1324_v39 = vpop.f32.mrf.mxu0 }
 0x3f7   : > { %v1458_v62 = vpop.xlane.xlu1 %1457  ;;  %v1522_v53 = vsel %vm1452_vm3, %v3976_v47, -inf  ;;  %v1528_v63 = vsel %vm1452_vm3, %v3986_v2, -inf  ;;  %v1406_v42 = vmul.f32 0.35355338, %v1275_v56 }
 0x3f8   : > { %3321 = vpow2.f32 %v1581_v50  ;;  %v1550_v10 = vsub.f32 %v3821_v8, %v1458_v62  ;;  %v3097_v11 = vpop.f32.mrf.mxu1  ;;  %1520 = vmax.xlane.f32.xlu0 %v1519_v3  ;;  %1523 = vmax.xlane.f32.xlu1 %v1522_v53  ;;  %v3103_v17 = vpop.f32.mrf.mxu0  ;;  %v1408_v53 = vmul.f32 0.35355338, %v1324_v39 }
 0x3f9   : > { %v3998_v17 = vadd.f32 %v3828_v14, %v1406_v42 }
 0x3fa   : > { %v1583_v26 = vmul.f32 1.442695, %v1550_v10  ;;  %v1278_v32 = vpop.f32.mrf.mxu1  ;;  %v1327_v35 = vpop.f32.mrf.mxu0 }
 0x3fb   : > { %v1407_v10 = vmul.f32 0.35355338, %v1278_v32  ;;  %v1531_v39 = vsel %vm1452_vm3, %v3998_v17, -inf }
 0x3fc   : > { %3323 = vpow2.f32 %v1583_v26  ;;  %v3098_v5 = vpop.f32.mrf.mxu1  ;;  %1526 = vmax.xlane.f32.xlu0 %v1525_v28  ;;  %1529 = vmax.xlane.f32.xlu1 %v1528_v63  ;;  %v3104_v4 = vpop.f32.mrf.mxu0  ;;  %v1409_v28 = vmul.f32 0.35355338, %v1327_v35  ;;  %v4003_v63 = vadd.f32 %v3833_v19, %v1408_v53 }
 0x3fd   : > { %v4010_v32 = vadd.f32 %v3851_v36, %v1407_v10 }
 0x3fe   : > { %v1373_v18 = vpop.f32.mrf.mxu1  ;;  %v1537_v14 = vsel %vm1452_vm3, %v4003_v63, -inf  ;;  %v4017_v35 = vadd.f32 %v3841_v25, %v1409_v28 }
 0x3ff   : > { %v1410_v56 = vmul.f32 0.35355338, %v1373_v18  ;;  %v1534_v19 = vsel %vm1452_vm3, %v4010_v32, -inf }
 0x400   : > { %v3109_v8 = vpop.f32.mrf.mxu1  ;;  %v1540_v36 = vsel %vm1452_vm3, %v4017_v35, -inf }
 0x401   : > { %v4020_v18 = vadd.f32 %v3866_v46, %v1410_v56 }
 0x402   : > { %v1376_v50 = vpop.f32.mrf.mxu1 }
 0x403   : > { %v1411_v4 = vmul.f32 0.35355338, %v1376_v50  ;;  %v1543_v8 = vsel %vm1452_vm3, %v4020_v18, -inf }
 0x404   : > { %v3110_v62 = vpop.f32.mrf.mxu1 }
 0x405   : > { %v3993_v3 = vpop.eup %3321  ;;  %v4027_v42 = vadd.f32 %v3871_v29, %v1411_v4 }
 0x406   : > { %v1645_v11 = vsel %vm1452_vm3, %v3993_v3, 0.0 }
 0x407   : > { %1646 = vadd.xlane.f32.xlu0 %v1645_v11  ;;  %v1546_v25 = vsel %vm1452_vm3, %v4027_v42, -inf }
 0x409   : > { %v4000_v26 = vpop.eup %3323 }
 0x40a   : > { %v1648_v5 = vsel %vm1452_vm3, %v4000_v26, 0.0 }
 0x40b   : > { %1649 = vadd.xlane.f32.xlu1 %v1648_v5  ;;  %1532 = vmax.xlane.f32.xlu0 %v1531_v39 }
 0x40f   : > { %1535 = vmax.xlane.f32.xlu1 %v1534_v19  ;;  %1538 = vmax.xlane.f32.xlu0 %v1537_v14 }
 0x413   : > { %1541 = vmax.xlane.f32.xlu1 %v1540_v36  ;;  %1544 = vmax.xlane.f32.xlu0 %v1543_v8 }
 0x417   : > { %1547 = vmax.xlane.f32.xlu1 %v1546_v25 }
 0x428   : > { %2432 = vrot.lane.b32.xlu1 %v3669_v27, %s3463_s26 }
 0x429   : > { %2385 = vrot.lane.b32.xlu0 %v3629_v13, %s3463_s26 }
 0x455   : > { %v1461_v46 = vpop.xlane.xlu0 %1460 }
 0x456   : > { %v1551_v50 = vsub.f32 %v3836_v22, %v1461_v46 }
 0x458   : > { %v1585_v62 = vmul.f32 1.442695, %v1551_v50 }
 0x459   : > { %v1470_v53 = vpop.xlane.xlu1 %1469  ;;  %v1467_v10 = vpop.xlane.xlu0 %1466 }
 0x45a   : > { %3325 = vpow2.f32 %v1585_v62  ;;  %v1553_v29 = vsub.f32 %v3846_v20, %v1467_v10  ;;  %v1554_v11 = vsub.f32 %v3854_v37, %v1470_v53 }
 0x45c   : > { %v1589_v28 = vmul.f32 1.442695, %v1553_v29  ;;  %v1591_v27 = vmul.f32 1.442695, %v1554_v11 }
 0x45d   : > { %v1464_v56 = vpop.xlane.xlu0 %1463 }
 0x45e   : > { %v1552_v5 = vsub.f32 %v3861_v44, %v1464_v56  ;;  %3327 = vpow2.f32 %v1589_v28 }
 0x460   : > { %v1587_v39 = vmul.f32 1.442695, %v1552_v5 }
 0x461   : > { %v1476_v14 = vpop.xlane.xlu1 %1475  ;;  %v1473_v13 = vpop.xlane.xlu0 %1472 }
 0x462   : > { %3329 = vpow2.f32 %v1587_v39  ;;  %v1556_v22 = vsub.f32 %v3879_v57, %v1476_v14  ;;  %v1555_v4 = vsub.f32 %v3876_v54, %v1473_v13 }
 0x463   : > { %3331 = vpow2.f32 %v1591_v27 }
 0x464   : > { %v1595_v19 = vmul.f32 1.442695, %v1556_v22  ;;  %v1593_v36 = vmul.f32 1.442695, %v1555_v4 }
 0x465   : > { %v1482_v20 = vpop.xlane.xlu1 %1481  ;;  %v1479_v8 = vpop.xlane.xlu0 %1478 }
 0x466   : > { %v1558_v37 = vsub.f32 %v3889_v0, %v1482_v20  ;;  %v1557_v25 = vsub.f32 %v3882_v59, %v1479_v8  ;;  %3333 = vpow2.f32 %v1593_v36 }
 0x467   : > { %v4043_v44 = vpop.eup %3325  ;;  %3335 = vpow2.f32 %v1595_v19 }
 0x468   : > { %v1599_v46 = vmul.f32 1.442695, %v1558_v37  ;;  %v1597_v50 = vmul.f32 1.442695, %v1557_v25  ;;  %v1651_v57 = vsel %vm1452_vm3, %v4043_v44, 0.0 }
 0x469   : > { %v1488_v62 = vpop.xlane.xlu1 %1487  ;;  %1652 = vadd.xlane.f32.xlu0 %v1651_v57  ;;  %v1485_v54 = vpop.xlane.xlu0 %1484 }
 0x46a   : > { %v1560_v53 = vsub.f32 %v3901_v24, %v1488_v62  ;;  %v1559_v10 = vsub.f32 %v3896_v16, %v1485_v54  ;;  %3337 = vpow2.f32 %v1597_v50 }
 0x46b   : > { %v4049_v0 = vpop.eup %3327  ;;  %3339 = vpow2.f32 %v1599_v46 }
 0x46c   : > { %v1603_v59 = vmul.f32 1.442695, %v1560_v53  ;;  %v1601_v29 = vmul.f32 1.442695, %v1559_v10  ;;  %v1657_v28 = vsel %vm1452_vm3, %v4049_v0, 0.0 }
 0x46d   : > { %v1494_v11 = vpop.xlane.xlu1 %1493  ;;  %v1491_v56 = vpop.xlane.xlu0 %1490  ;;  %1658 = vadd.xlane.f32.xlu0 %v1657_v28 }
 0x46e   : > { %v1562_v5 = vsub.f32 %v3911_v41, %v1494_v11  ;;  %v1561_v27 = vsub.f32 %v3904_v33, %v1491_v56  ;;  %3341 = vpow2.f32 %v1601_v29 }
 0x46f   : > { %v4055_v39 = vpop.eup %3329  ;;  %3343 = vpow2.f32 %v1603_v59 }
 0x470   : > { %v1607_v16 = vmul.f32 1.442695, %v1562_v5  ;;  %v1605_v24 = vmul.f32 1.442695, %v1561_v27  ;;  %v1654_v14 = vsel %vm1452_vm3, %v4055_v39, 0.0  ;;  %v4059_v13 = vpop.eup %3331 }
 0x471   : > { %v1500_v22 = vpop.xlane.xlu1 %1499  ;;  %1655 = vadd.xlane.f32.xlu1 %v1654_v14  ;;  %v1497_v4 = vpop.xlane.xlu0 %1496  ;;  %v1660_v36 = vsel %vm1452_vm3, %v4059_v13, 0.0 }
 0x472   : > { %v1563_v19 = vsub.f32 %v3922_v55, %v1497_v4  ;;  %3345 = vpow2.f32 %v1605_v24  ;;  %v1564_v8 = vsub.f32 %v3925_v48, %v1500_v22 }
 0x473   : > { %v4062_v41 = vpop.eup %3333  ;;  %3347 = vpow2.f32 %v1607_v16 }
 0x474   : > { %v1609_v33 = vmul.f32 1.442695, %v1563_v19  ;;  %v4066_v20 = vpop.eup %3335  ;;  %v1663_v25 = vsel %vm1452_vm3, %v4062_v41, 0.0  ;;  %v1611_v10 = vmul.f32 1.442695, %v1564_v8 }
 0x475   : > { %v1506_v37 = vpop.xlane.xlu1 %1505  ;;  %1661 = vadd.xlane.f32.xlu1 %v1660_v36  ;;  %v1503_v46 = vpop.xlane.xlu0 %1502  ;;  %1664 = vadd.xlane.f32.xlu0 %v1663_v25  ;;  %v1666_v53 = vsel %vm1452_vm3, %v4066_v20, 0.0 }
 0x476   : > { %v1566_v55 = vsub.f32 %v3937_v7, %v1506_v37  ;;  %v1565_v50 = vsub.f32 %v3928_v49, %v1503_v46  ;;  %3349 = vpow2.f32 %v1609_v33 }
 0x477   : > { %v4073_v57 = vpop.eup %3337 }
 0x478   : > { %v1615_v62 = vmul.f32 1.442695, %v1566_v55  ;;  %v1613_v54 = vmul.f32 1.442695, %v1565_v50  ;;  %v4077_v48 = vpop.eup %3339  ;;  %v1669_v29 = vsel %vm1452_vm3, %v4073_v57, 0.0 }
 0x479   : > { %v1512_v59 = vpop.xlane.xlu1 %1511  ;;  %1667 = vadd.xlane.f32.xlu1 %v1666_v53  ;;  %v1509_v7 = vpop.xlane.xlu0 %1508  ;;  %1670 = vadd.xlane.f32.xlu0 %v1669_v29  ;;  %v1672_v56 = vsel %vm1452_vm3, %v4077_v48, 0.0 }
 0x47a   : > { %3351 = vpow2.f32 %v1615_v62  ;;  %v1567_v49 = vsub.f32 %v3946_v40, %v1509_v7  ;;  %v1568_v27 = vsub.f32 %v3951_v45, %v1512_v59 }
 0x47b   : > { %3353 = vpow2.f32 %v1613_v54  ;;  %v4082_v11 = vpop.eup %3341 }
 0x47c   : > { %v1617_v28 = vmul.f32 1.442695, %v1567_v49  ;;  %v4086_v5 = vpop.eup %3343  ;;  %3355 = vpow2.f32 %v1611_v10  ;;  %v1675_v24 = vsel %vm1452_vm3, %v4082_v11, 0.0  ;;  %v1619_v8 = vmul.f32 1.442695, %v1568_v27 }
 0x47d   : > { %v1518_v16 = vpop.xlane.xlu1 %1517  ;;  %1673 = vadd.xlane.f32.xlu1 %v1672_v56  ;;  %v1515_v14 = vpop.xlane.xlu0 %1514  ;;  %1676 = vadd.xlane.f32.xlu0 %v1675_v24  ;;  %v1678_v36 = vsel %vm1452_vm3, %v4086_v5, 0.0 }
 0x47e   : > { %v1570_v40 = vsub.f32 %v3963_v60, %v1518_v16  ;;  %v1569_v22 = vsub.f32 %v3954_v38, %v1515_v14  ;;  %3357 = vpow2.f32 %v1617_v28 }
 0x47f   : > { %v4093_v4 = vpop.eup %3345 }
 0x480   : > { %v1623_v19 = vmul.f32 1.442695, %v1570_v40  ;;  %v1621_v33 = vmul.f32 1.442695, %v1569_v22  ;;  %v4097_v45 = vpop.eup %3347  ;;  %v1681_v25 = vsel %vm1452_vm3, %v4093_v4, 0.0 }
 0x481   : > { %v1524_v37 = vpop.xlane.xlu1 %1523  ;;  %1679 = vadd.xlane.f32.xlu1 %v1678_v36  ;;  %v1521_v60 = vpop.xlane.xlu0 %1520  ;;  %1682 = vadd.xlane.f32.xlu0 %v1681_v25  ;;  %v1684_v50 = vsel %vm1452_vm3, %v4097_v45, 0.0 }
 0x482   : > { %3359 = vpow2.f32 %v1623_v19  ;;  %v1571_v38 = vsub.f32 %v3972_v34, %v1521_v60  ;;  %v1572_v62 = vsub.f32 %v3976_v47, %v1524_v37 }
 0x483   : > { %3361 = vpow2.f32 %v1621_v33  ;;  %v4102_v46 = vpop.eup %3349 }
 0x484   : > { %v1625_v55 = vmul.f32 1.442695, %v1571_v38  ;;  %3363 = vpow2.f32 %v1619_v8  ;;  %v1687_v53 = vsel %vm1452_vm3, %v4102_v46, 0.0  ;;  %v1627_v56 = vmul.f32 1.442695, %v1572_v62 }
 0x485   : > { %v1530_v54 = vpop.xlane.xlu1 %1529  ;;  %1685 = vadd.xlane.f32.xlu1 %v1684_v50  ;;  %v1527_v10 = vpop.xlane.xlu0 %1526  ;;  %1688 = vadd.xlane.f32.xlu0 %v1687_v53 }
 0x486   : > { %v1574_v59 = vsub.f32 %v3986_v2, %v1530_v54  ;;  %v1573_v34 = vsub.f32 %v3983_v6, %v1527_v10  ;;  %3365 = vpow2.f32 %v1625_v55 }
 0x487   : > { %v4111_v29 = vpop.eup %3351 }
 0x488   : > { %v4113_v7 = vpop.eup %3353  ;;  %v1631_v49 = vmul.f32 1.442695, %v1574_v59  ;;  %v1629_v28 = vmul.f32 1.442695, %v1573_v34  ;;  %v1696_v47 = vsel %vm1452_vm3, %v4111_v29, 0.0 }
 0x489   : > { %v1693_v27 = vsel %vm1452_vm3, %v4113_v7, 0.0  ;;  %v4119_v16 = vpop.eup %3355  ;;  %1697 = vadd.xlane.f32.xlu0 %v1696_v47 }
 0x48a   : > { %3367 = vpow2.f32 %v1631_v49  ;;  %1694 = vadd.xlane.f32.xlu1 %v1693_v27  ;;  %v1690_v2 = vsel %vm1452_vm3, %v4119_v16, 0.0 }
 0x48b   : > { %3369 = vpow2.f32 %v1629_v28  ;;  %v4121_v6 = vpop.eup %3357 }
 0x48c   : > { %3371 = vpow2.f32 %v1627_v56  ;;  %v1699_v24 = vsel %vm1452_vm3, %v4121_v6, 0.0 }
 0x48d   : > { %1700 = vadd.xlane.f32.xlu0 %v1699_v24 }
 0x48e   : > { %1691 = vadd.xlane.f32.xlu1 %v1690_v2 }
 0x48f   : > { %v4127_v14 = vpop.eup %3359 }
 0x490   : > { %v4129_v40 = vpop.eup %3361  ;;  %v1647_v22 = vpop.xlane.xlu0 %1646  ;;  %v1708_v19 = vsel %vm1452_vm3, %v4127_v14, 0.0 }
 0x491   : > { %v1705_v33 = vsel %vm1452_vm3, %v4129_v40, 0.0  ;;  %v4135_v36 = vpop.eup %3363  ;;  %1709 = vadd.xlane.f32.xlu0 %v1708_v19  ;;  %3373 = vrcp.f32 %v1647_v22 }
 0x492   : > { %1706 = vadd.xlane.f32.xlu1 %v1705_v33  ;;  %v1702_v38 = vsel %vm1452_vm3, %v4135_v36, 0.0 }
 0x493   : > { %v4137_v8 = vpop.eup %3365 }
 0x494   : > { %v1650_v37 = vpop.xlane.xlu1 %1649  ;;  %v1533_v25 = vpop.xlane.xlu0 %1532  ;;  %v1711_v55 = vsel %vm1452_vm3, %v4137_v8, 0.0 }
 0x495   : > { %3375 = vrcp.f32 %v1650_v37  ;;  %v1575_v60 = vsub.f32 %v3998_v17, %v1533_v25  ;;  %1712 = vadd.xlane.f32.xlu0 %v1711_v55 }
 0x496   : > { %1703 = vadd.xlane.f32.xlu1 %v1702_v38 }
 0x497   : > { %v4144_v50 = vpop.eup %3367  ;;  %v1633_v62 = vmul.f32 1.442695, %v1575_v60 }
 0x498   : > { %v4146_v54 = vpop.eup %3369  ;;  %v1536_v53 = vpop.xlane.xlu1 %1535  ;;  %v1720_v59 = vsel %vm1452_vm3, %v4144_v50, 0.0 }
 0x499   : > { %v1539_v10 = vpop.xlane.xlu0 %1538  ;;  %3377 = vpow2.f32 %v1633_v62  ;;  %v1576_v17 = vsub.f32 %v4010_v32, %v1536_v53  ;;  %v1717_v49 = vsel %vm1452_vm3, %v4146_v54, 0.0  ;;  %v4154_v28 = vpop.eup %3371  ;;  %1721 = vadd.xlane.f32.xlu0 %v1720_v59 }
 0x49a   : > { %v1577_v34 = vsub.f32 %v4003_v63, %v1539_v10  ;;  %1718 = vadd.xlane.f32.xlu1 %v1717_v49  ;;  %v1714_v32 = vsel %vm1452_vm3, %v4154_v28, 0.0 }
 0x49b   : > { %v1635_v56 = vmul.f32 1.442695, %v1576_v17 }
 0x49c   : > { %v1637_v47 = vmul.f32 1.442695, %v1577_v34  ;;  %v1542_v27 = vpop.xlane.xlu1 %1541 }
 0x49d   : > { %v1545_v2 = vpop.xlane.xlu0 %1544  ;;  %v1578_v24 = vsub.f32 %v4017_v35, %v1542_v27 }
 0x49e   : > { %v1579_v22 = vsub.f32 %v4020_v18, %v1545_v2  ;;  %3379 = vpow2.f32 %v1637_v47  ;;  %1715 = vadd.xlane.f32.xlu1 %v1714_v32  ;;  %v3374_v33 = vpop.eup %3373 }
 0x49f   : > { %v1639_v63 = vmul.f32 1.442695, %v1578_v24  ;;  %3381 = vpow2.f32 %v1635_v56  ;;  %v1773_v35 = vmul.f32 %v3374_v33, %v3993_v3 }
 0x4a0   : > { %v1641_v19 = vmul.f32 1.442695, %v1579_v22  ;;  %v1548_v37 = vpop.xlane.xlu1 %1547 }
 0x4a1   : > { %3383 = vpow2.f32 %v1639_v63  ;;  %v1580_v25 = vsub.f32 %v4027_v42, %v1548_v37  ;;  %v4196_v56 = vpop.permute.xlu0 %2385 }
 0x4a2   : > { %v3376_v60 = vpop.eup %3375  ;;  %3385 = vpow2.f32 %v1641_v19 }
 0x4a3   : > { %v1643_v38 = vmul.f32 1.442695, %v1580_v25  ;;  %v1774_v18 = vmul.f32 %v3376_v60, %v4000_v26 }
 0x4a4   : > { %v4198_v2 = vpop.permute.xlu1 %2432 }
 0x4a5   : > { %3387 = vpow2.f32 %v1643_v38  ;;  %v1805_v55 = vpack.c.bf16 %v1774_v18, %v1773_v35 }
 0x4a6   : > { %v4163_v62 = vpop.eup %3377 }
 0x4a7   : > { %3114 = vmatmul.mubr.msk.bf16.vlgmr.msra.gmra.mxu0 %vm1452_vm3, %v1805_v55  ;;  %v1723_v53 = vsel %vm1452_vm3, %v4163_v62, 0.0 }
 0x4a8   : > { %3124 = vmatpush3.bf16.msra.mxu0 %v3956_v52  ;;  %1724 = vadd.xlane.f32.xlu0 %v1723_v53 }
 0x4a9   : > { %3125 = vmatprep.mubr.msk.bf16.mxu0 %vm3461_vm1, %v3460_v9  ;;  %3135 = vmatprep.subr.bf16.mxu0 %v3460_v9 }
 0x4ab   : > { %v4172_v3 = vpop.eup %3379 }
 0x4ac   : > { %v1729_v26 = vsel %vm1452_vm3, %v4172_v3, 0.0  ;;  %v4176_v42 = vpop.eup %3381 }
 0x4ad   : > { %1730 = vadd.xlane.f32.xlu1 %v1729_v26  ;;  %v1726_v17 = vsel %vm1452_vm3, %v4176_v42, 0.0 }
 0x4ae   : > { %v4178_v10 = vpop.eup %3383 }
 0x4af   : > { %v1732_v59 = vsel %vm1452_vm3, %v4178_v10, 0.0  ;;  %v4182_v52 = vpop.eup %3385 }
 0x4b0   : > { %1733 = vadd.xlane.f32.xlu0 %v1732_v59  ;;  %v1735_v47 = vsel %vm1452_vm3, %v4182_v52, 0.0 }
 0x4b1   : > { %1727 = vadd.xlane.f32.xlu1 %v1726_v17 }
 0x4b2   : > { %v4186_v34 = vpop.eup %3387 }
 0x4b3   : > { %v1738_v49 = vsel %vm1452_vm3, %v4186_v34, 0.0 }
 0x4b4   : > { %1736 = vadd.xlane.f32.xlu0 %v1735_v47 }
 0x4b5   : > { %1739 = vadd.xlane.f32.xlu1 %v1738_v49 }
 0x4c6   : > { %2526 = vrot.lane.b32.xlu1 %v3685_v31, %s3463_s26 }
 0x4ca   : > { %2479 = vrot.lane.b32.xlu0 %v3675_v30, %s3463_s26  ;;  %s3466_s26 = smov 24  }
 0x4f2   : > { %v1653_v27 = vpop.xlane.xlu0 %1652 }
 0x4f3   : > { %3389 = vrcp.f32 %v1653_v27 }
 0x4f6   : > { %v1659_v24 = vpop.xlane.xlu0 %1658 }
 0x4fa   : > { %v1656_v22 = vpop.xlane.xlu1 %1655 }
 0x4fb   : > { %3391 = vrcp.f32 %v1656_v22 }
 0x4fc   : > { %3393 = vrcp.f32 %v1659_v24 }
 0x4fe   : > { %v1662_v32 = vpop.xlane.xlu1 %1661  ;;  %v1665_v63 = vpop.xlane.xlu0 %1664 }
 0x4ff   : > { %3395 = vrcp.f32 %v1662_v32 }
 0x500   : > { %3397 = vrcp.f32 %v1665_v63  ;;  %v3390_v33 = vpop.eup %3389 }
 0x501   : > { %v1775_v60 = vmul.f32 %v3390_v33, %v4043_v44 }
 0x502   : > { %v1668_v19 = vpop.xlane.xlu1 %1667  ;;  %v1671_v31 = vpop.xlane.xlu0 %1670 }
 0x503   : > { %3399 = vrcp.f32 %v1668_v19 }
 0x504   : > { %3401 = vrcp.f32 %v1671_v31 }
 0x506   : > { %v1674_v30 = vpop.xlane.xlu1 %1673  ;;  %v1677_v37 = vpop.xlane.xlu0 %1676 }
 0x507   : > { %3403 = vrcp.f32 %v1674_v30 }
 0x508   : > { %v3392_v25 = vpop.eup %3391  ;;  %3405 = vrcp.f32 %v1677_v37 }
 0x509   : > { %v1776_v38 = vmul.f32 %v3392_v25, %v4055_v39  ;;  %v3394_v35 = vpop.eup %3393 }
 0x50a   : > { %v1680_v18 = vpop.xlane.xlu1 %1679  ;;  %v1683_v55 = vpop.xlane.xlu0 %1682  ;;  %v1777_v59 = vmul.f32 %v3394_v35, %v4049_v0 }
 0x50b   : > { %3407 = vrcp.f32 %v1680_v18  ;;  %v1806_v53 = vpack.c.bf16 %v1776_v38, %v1775_v60 }
 0x50c   : > { %v3396_v26 = vpop.eup %3395  ;;  %3409 = vrcp.f32 %v1683_v55 }
 0x50d   : > { %3120 = vmatmul.mubr.msk.bf16.vlgmr.msra.gmra.mxu1 %vm1452_vm3, %v1806_v53  ;;  %v1778_v17 = vmul.f32 %v3396_v26, %v4059_v13  ;;  %v3398_v49 = vpop.eup %3397 }
 0x50e   : > { %3130 = vmatpush3.bf16.msra.mxu1 %v3913_v43  ;;  %v1686_v47 = vpop.xlane.xlu1 %1685  ;;  %3131 = vmatprep.mubr.msk.bf16.mxu1 %vm3461_vm1, %v3460_v9  ;;  %v1689_v44 = vpop.xlane.xlu0 %1688  ;;  %v1779_v24 = vmul.f32 %v3398_v49, %v4062_v41 }
 0x50f   : > { %3411 = vrcp.f32 %v1686_v47  ;;  %v1807_v39 = vpack.c.bf16 %v1778_v17, %v1777_v59  ;;  %3141 = vmatprep.subr.bf16.mxu1 %v3460_v9 }
 0x510   : > { %v3400_v27 = vpop.eup %3399 }
 0x511   : > { %3126 = vmatmul.mubr.msk.bf16.vlgmr.msra.gmra.mxu0 %vm1452_vm3, %v1807_v39  ;;  %v1780_v0 = vmul.f32 %v3400_v27, %v4066_v20  ;;  %v3402_v13 = vpop.eup %3401 }
 0x512   : > { %3136 = vmatpush3.bf16.msra.mxu0 %v3898_v23  ;;  %3137 = vmatprep.mubr.msk.bf16.mxu0 %vm3461_vm1, %v3460_v9  ;;  %v1698_v22 = vpop.xlane.xlu0 %1697  ;;  %v1781_v41 = vmul.f32 %v3402_v13, %v4073_v57 }
 0x513   : > { %v1695_v43 = vpop.xlane.xlu1 %1694  ;;  %v1808_v32 = vpack.c.bf16 %v1780_v0, %v1779_v24  ;;  %3147 = vmatprep.subr.bf16.mxu0 %v3460_v9 }
 0x514   : > { %v3404_v63 = vpop.eup %3403  ;;  %3413 = vrcp.f32 %v1695_v43 }
 0x515   : > { %3415 = vrcp.f32 %v1698_v22  ;;  %3132 = vmatmul.mubr.msk.bf16.vlgmr.msra.gmra.mxu1 %vm1452_vm3, %v1808_v32  ;;  %v1782_v20 = vmul.f32 %v3404_v63, %v4077_v48  ;;  %v3406_v19 = vpop.eup %3405 }
 0x516   : > { %3417 = vrcp.f32 %v1689_v44  ;;  %3142 = vmatpush3.bf16.msra.mxu1 %v3785_v58  ;;  %3143 = vmatprep.mubr.msk.bf16.mxu1 %vm3461_vm1, %v3460_v9  ;;  %v1701_v31 = vpop.xlane.xlu0 %1700  ;;  %v1783_v57 = vmul.f32 %v3406_v19, %v4082_v11 }
 0x517   : > { %v1692_v23 = vpop.xlane.xlu1 %1691  ;;  %v1809_v33 = vpack.c.bf16 %v1782_v20, %v1781_v41  ;;  %3153 = vmatprep.subr.bf16.mxu1 %v3460_v9 }
 0x518   : > { %v3408_v30 = vpop.eup %3407  ;;  %3419 = vrcp.f32 %v1692_v23 }
 0x519   : > { %3138 = vmatmul.mubr.msk.bf16.vlgmr.msra.gmra.mxu0 %vm1452_vm3, %v1809_v33  ;;  %v1784_v48 = vmul.f32 %v3408_v30, %v4086_v5  ;;  %v3410_v37 = vpop.eup %3409 }
 0x51a   : > { %3148 = vmatpush3.bf16.msra.mxu0 %v3917_v51  ;;  %3149 = vmatprep.mubr.msk.bf16.mxu0 %vm3461_vm1, %v3460_v9  ;;  %v1710_v25 = vpop.xlane.xlu0 %1709  ;;  %v1785_v11 = vmul.f32 %v3410_v37, %v4093_v4 }
 0x51b   : > { %v1707_v58 = vpop.xlane.xlu1 %1706  ;;  %v1810_v60 = vpack.c.bf16 %v1784_v48, %v1783_v57  ;;  %3159 = vmatprep.subr.bf16.mxu0 %v3460_v9 }
 0x51c   : > { %v3412_v38 = vpop.eup %3411  ;;  %3421 = vrcp.f32 %v1707_v58 }
 0x51d   : > { %3423 = vrcp.f32 %v1710_v25  ;;  %3144 = vmatmul.mubr.msk.bf16.vlgmr.msra.gmra.mxu1 %vm1452_vm3, %v1810_v60  ;;  %v1786_v5 = vmul.f32 %v3412_v38, %v4097_v45 }
 0x51e   : > { %3425 = vrcp.f32 %v1701_v31  ;;  %3154 = vmatpush3.bf16.msra.mxu1 %v3792_v61  ;;  %3155 = vmatprep.mubr.msk.bf16.mxu1 %vm3461_vm1, %v3460_v9  ;;  %v1713_v35 = vpop.xlane.xlu0 %1712 }
 0x51f   : > { %v1704_v51 = vpop.xlane.xlu1 %1703  ;;  %v1811_v18 = vpack.c.bf16 %v1786_v5, %v1785_v11  ;;  %3165 = vmatprep.subr.bf16.mxu1 %v3460_v9 }
 0x520   : > { %3427 = vrcp.f32 %v1704_v51 }
 0x521   : > { %v3414_v55 = vpop.eup %3413  ;;  %3150 = vmatmul.mubr.msk.bf16.vlgmr.msra.gmra.mxu0 %vm1452_vm3, %v1811_v18 }
 0x522   : > { %v3416_v53 = vpop.eup %3415  ;;  %3160 = vmatpush3.bf16.msra.mxu0 %v3939_v12  ;;  %3161 = vmatprep.mubr.msk.bf16.mxu0 %vm3461_vm1, %v3460_v9  ;;  %v1722_v45 = vpop.xlane.xlu0 %1721  ;;  %v1789_v26 = vmul.f32 %v3414_v55, %v4113_v7 }
 0x523   : > { %v3418_v4 = vpop.eup %3417  ;;  %v1719_v61 = vpop.xlane.xlu1 %1718  ;;  %3171 = vmatprep.subr.bf16.mxu0 %v3460_v9  ;;  %v1790_v59 = vmul.f32 %v3416_v53, %v4111_v29 }
 0x524   : > { %3429 = vrcp.f32 %v1719_v61  ;;  %v1787_v49 = vmul.f32 %v3418_v4, %v4102_v46 }
 0x525   : > { %v3420_v17 = vpop.eup %3419  ;;  %3431 = vrcp.f32 %v1722_v45  ;;  %v1813_v44 = vpack.c.bf16 %v1790_v59, %v1789_v26 }
 0x526   : > { %3433 = vrcp.f32 %v1713_v35  ;;  %v1788_v12 = vmul.f32 %v3420_v17, %v4119_v16 }
 0x527   : > { %v1716_v47 = vpop.xlane.xlu1 %1715 }
 0x528   : > { %3435 = vrcp.f32 %v1716_v47  ;;  %v1812_v39 = vpack.c.bf16 %v1788_v12, %v1787_v49 }
 0x529   : > { %v3422_v27 = vpop.eup %3421  ;;  %3162 = vmatmul.mubr.msk.bf16.vlgmr.msra.gmra.mxu0 %vm1452_vm3, %v1813_v44 }
 0x52a   : > { %v3424_v24 = vpop.eup %3423  ;;  %3156 = vmatmul.mubr.msk.bf16.vlgmr.msra.gmra.mxu1 %vm1452_vm3, %v1812_v39  ;;  %3172 = vmatpush3.bf16.msra.mxu0 %v3948_v21  ;;  %v1793_v46 = vmul.f32 %v3422_v27, %v4129_v40 }
 0x52b   : > { %v3426_v29 = vpop.eup %3425  ;;  %3166 = vmatpush3.bf16.msra.mxu1 %v3930_v1  ;;  %3167 = vmatprep.mubr.msk.bf16.mxu1 %vm3461_vm1, %v3460_v9  ;;  %v1794_v7 = vmul.f32 %v3424_v24, %v4127_v14 }
 0x52c   : > { %3173 = vmatprep.mubr.msk.bf16.mxu0 %vm3461_vm1, %v3460_v9  ;;  %3177 = vmatprep.subr.bf16.mxu1 %v3460_v9  ;;  %v1791_v21 = vmul.f32 %v3426_v29, %v4121_v6  ;;  %v3303_v29 = vld [vmem:[%s4387_s5 + $0x8] sm:$0xff]  }
 0x52d   : > { %v3428_v16 = vpop.eup %3427  ;;  %3183 = vmatprep.subr.bf16.mxu0 %v3460_v9  ;;  %v1815_v1 = vpack.c.bf16 %v1794_v7, %v1793_v46 }
 0x52e   : > { %v1792_v0 = vmul.f32 %v3428_v16, %v4135_v36 }
 0x530   : > { %v1814_v13 = vpack.c.bf16 %v1792_v0, %v1791_v21 }
 0x531   : > { %v3430_v43 = vpop.eup %3429  ;;  %3174 = vmatmul.mubr.msk.bf16.vlgmr.msra.gmra.mxu0 %vm1452_vm3, %v1815_v1  ;;  %v1725_v32 = vpop.xlane.xlu0 %1724 }
 0x532   : > { %v3432_v40 = vpop.eup %3431  ;;  %3168 = vmatmul.mubr.msk.bf16.vlgmr.msra.gmra.mxu1 %vm1452_vm3, %v1814_v13  ;;  %3184 = vmatpush3.bf16.msra.mxu0 %v4196_v56  ;;  %v1797_v6 = vmul.f32 %v3430_v43, %v4146_v54 }
 0x533   : > { %v3434_v14 = vpop.eup %3433  ;;  %3178 = vmatpush3.bf16.msra.mxu1 %v3967_v15  ;;  %3179 = vmatprep.mubr.msk.bf16.mxu1 %vm3461_vm1, %v3460_v9  ;;  %v1798_v36 = vmul.f32 %v3432_v40, %v4144_v50  ;;  %v3304_v40 = vld [vmem:[%s4387_s5] sm:$0xff]  }
 0x534   : > { %3185 = vmatprep.mubr.msk.bf16.mxu0 %vm3461_vm1, %v3460_v9  ;;  %3189 = vmatprep.subr.bf16.mxu1 %v3460_v9  ;;  %v1795_v63 = vmul.f32 %v3434_v14, %v4137_v8 }
 0x535   : > { %v3436_v22 = vpop.eup %3435  ;;  %3195 = vmatprep.subr.bf16.mxu0 %v3460_v9  ;;  %v1817_v41 = vpack.c.bf16 %v1798_v36, %v1797_v6 }
 0x536   : > { %v1731_v56 = vpop.xlane.xlu1 %1730  ;;  %v1796_v15 = vmul.f32 %v3436_v22, %v4154_v28 }
 0x537   : > { %3437 = vrcp.f32 %v1731_v56 }
 0x538   : > { %v1816_v20 = vpack.c.bf16 %v1796_v15, %v1795_v63  ;;  %3439 = vrcp.f32 %v1725_v32 }
 0x539   : > { %v1734_v54 = vpop.xlane.xlu0 %1733  ;;  %3186 = vmatmul.mubr.msk.bf16.vlgmr.msra.gmra.mxu0 %vm1452_vm3, %v1817_v41 }
 0x53a   : > { %v1728_v50 = vpop.xlane.xlu1 %1727  ;;  %3441 = vrcp.f32 %v1734_v54  ;;  %3180 = vmatmul.mubr.msk.bf16.vlgmr.msra.gmra.mxu1 %vm1452_vm3, %v1816_v20  ;;  %3197 = vmatprep.mubr.msk.bf16.mxu0 %vm3461_vm1, %v3460_v9 }
 0x53b   : > { %3443 = vrcp.f32 %v1728_v50  ;;  %3190 = vmatpush3.bf16.msra.mxu1 %v4198_v2  ;;  %3191 = vmatprep.mubr.msk.bf16.mxu1 %vm3461_vm1, %v3460_v9 }
 0x53c   : > { %3201 = vmatprep.subr.bf16.mxu1 %v3460_v9 }
 0x53d   : > { %v1737_v8 = vpop.xlane.xlu0 %1736 }
 0x53e   : > { %v1740_v28 = vpop.xlane.xlu1 %1739  ;;  %3445 = vrcp.f32 %v1737_v8 }
 0x53f   : > { %3447 = vrcp.f32 %v1740_v28 }
 0x541   : > { %v2480_v19 = vpop.permute.xlu0 %2479 }
 0x542   : > { %3196 = vmatpush3.bf16.msra.mxu0 %v2480_v19  ;;  %v2527_v11 = vpop.permute.xlu1 %2526 }
 0x543   : > { %3207 = vmatprep.subr.bf16.mxu0 %v3303_v29 }
 0x544   : > { %v3438_v23 = vpop.eup %3437 }
 0x545   : > { %v3440_v31 = vpop.eup %3439  ;;  %v1801_v57 = vmul.f32 %v3438_v23, %v4172_v3 }
 0x546   : > { %v1799_v2 = vmul.f32 %v3440_v31, %v4163_v62 }
 0x547   : > { %v3442_v33 = vpop.eup %3441 }
 0x548   : > { %v3444_v30 = vpop.eup %3443  ;;  %v1802_v48 = vmul.f32 %v3442_v33, %v4178_v10 }
 0x549   : > { %v1800_v37 = vmul.f32 %v3444_v30, %v4176_v42 }
 0x54a   : > { %v1819_v58 = vpack.c.bf16 %v1802_v48, %v1801_v57 }
 0x54b   : > { %v3446_v25 = vpop.eup %3445  ;;  %v1818_v60 = vpack.c.bf16 %v1800_v37, %v1799_v2 }
 0x54c   : > { %v3448_v38 = vpop.eup %3447  ;;  %3198 = vmatmul.mubr.msk.bf16.vlgmr.msra.gmra.mxu0 %vm1452_vm3, %v1819_v58  ;;  %v1803_v3 = vmul.f32 %v3446_v25, %v4182_v52 }
 0x54d   : > { %3192 = vmatmul.mubr.msk.bf16.vlgmr.msra.gmra.mxu1 %vm1452_vm3, %v1818_v60  ;;  %v1804_v10 = vmul.f32 %v3448_v38, %v4186_v34  ;;  %3208 = vmatpush3.bf16.msra.mxu0 %v3303_v29 }
 0x54e   : > { %3202 = vmatpush3.bf16.msra.mxu1 %v2527_v11  ;;  %3203 = vmatprep.mubr.msk.bf16.mxu1 %vm3461_vm1, %v3460_v9 }
 0x54f   : > { %v1820_v62 = vpack.c.bf16 %v1804_v10, %v1803_v3  ;;  %3209 = vmatprep.subr.bf16.mxu0 %v3304_v40 }
 0x551   : > { %3210 = vmatpush3.bf16.msra.mxu0 %v3304_v40 }
 0x555   : > { %3204 = vmatmul.mubr.msk.bf16.vlgmr.msra.gmra.mxu1 %vm1452_vm3, %v1820_v62 }
 0x567   : > { %v4293_v42 = vpop.f32.mrf.mxu0 }
 0x569   : > { %v3115_v5 = vpop.f32.mrf.mxu0 }
 0x56b   : > { %v4295_v51 = vpop.f32.mrf.mxu0 }
 0x56d   : > { %v3116_v35 = vpop.f32.mrf.mxu0 }
 0x5cd   : > { %v1908_v18 = vpop.f32.mrf.mxu1 }
 0x5cf   : > { %v3121_v55 = vpop.f32.mrf.mxu1 }
 0x5d1   : > { %v1911_v53 = vpop.f32.mrf.mxu1  ;;  %v1955_v4 = vpop.f32.mrf.mxu0 }
 0x5d2   : > { %v3241_v61 = vpack.i.bf16 %v1911_v53, %v1908_v18 }
 0x5d3   : > { %v3122_v45 = vpop.f32.mrf.mxu1  ;;  %v3127_v9 = vpop.f32.mrf.mxu0 }
 0x5d4   : > { %3242 = vrot.lane.b32.xlu0 %v3241_v61, %s3464_s24 }
 0x5d5   : > { %v1958_v52 = vpop.f32.mrf.mxu0  ;;  %v2002_v34 = vpop.f32.mrf.mxu1 }
 0x5d6   : > { %v3246_v26 = vpack.i.bf16 %v1958_v52, %v1955_v4 }
 0x5d7   : > { %v3128_v59 = vpop.f32.mrf.mxu0  ;;  %v3133_v17 = vpop.f32.mrf.mxu1 }
 0x5d8   : > { %3247 = vrot.lane.b32.xlu0 %v3246_v26, %s3465_s25 }
 0x5d9   : > { %v2005_v49 = vpop.f32.mrf.mxu1  ;;  %v4299_v12 = vpop.f32.mrf.mxu0 }
 0x5da   : > { %v3251_v47 = vpack.i.bf16 %v2005_v49, %v2002_v34 }
 0x5db   : > { %v3134_v44 = vpop.f32.mrf.mxu1  ;;  %v3139_v39 = vpop.f32.mrf.mxu0 }
 0x5dc   : > { %3252 = vrot.lane.b32.xlu0 %v3251_v47, %s3466_s26 }
 0x5dd   : > { %v4302_v27 = vpop.f32.mrf.mxu0  ;;  %v2096_v24 = vpop.f32.mrf.mxu1 }
 0x5df   : > { %v3140_v46 = vpop.f32.mrf.mxu0  ;;  %v3145_v7 = vpop.f32.mrf.mxu1 }
 0x5e1   : > { %v2099_v16 = vpop.f32.mrf.mxu1  ;;  %v2143_v21 = vpop.f32.mrf.mxu0 }
 0x5e2   : > { %v3256_v0 = vpack.i.bf16 %v2099_v16, %v2096_v24 }
 0x5e3   : > { %v3146_v1 = vpop.f32.mrf.mxu1  ;;  %v3151_v13 = vpop.f32.mrf.mxu0 }
 0x5e4   : > { %3257 = vrot.lane.b32.xlu1 %v3256_v0, %s3464_s24 }
 0x5e5   : > { %v2146_v43 = vpop.f32.mrf.mxu0 }
 0x5e6   : > { %v3261_v14 = vpack.i.bf16 %v2146_v43, %v2143_v21 }
 0x5e7   : > { %v3152_v6 = vpop.f32.mrf.mxu0 }
 0x5e8   : > { %3262 = vrot.lane.b32.xlu1 %v3261_v14, %s3465_s25 }
 0x5e9   : > { %v4312_v36 = vpop.f32.mrf.mxu0 }
 0x5ea   : > { %v2190_v22 = vpop.f32.mrf.mxu1 }
 0x5eb   : > { %v3163_v32 = vpop.f32.mrf.mxu0 }
 0x5ec   : > { %v3157_v56 = vpop.f32.mrf.mxu1 }
 0x5ed   : > { %v4314_v63 = vpop.f32.mrf.mxu0 }
 0x5ee   : > { %v2193_v15 = vpop.f32.mrf.mxu1 }
 0x5ef   : > { %v3266_v41 = vpack.i.bf16 %v2193_v15, %v2190_v22  ;;  %v3164_v20 = vpop.f32.mrf.mxu0 }
 0x5f0   : > { %v3158_v54 = vpop.f32.mrf.mxu1 }
 0x5f1   : > { %3267 = vrot.lane.b32.xlu1 %v3266_v41, %s3466_s26  ;;  %v2331_v50 = vpop.f32.mrf.mxu0 }
 0x5f2   : > { %v2284_v8 = vpop.f32.mrf.mxu1 }
 0x5f3   : > { %v3175_v28 = vpop.f32.mrf.mxu0 }
 0x5f4   : > { %v3169_v19 = vpop.f32.mrf.mxu1 }
 0x5f5   : > { %v2334_v23 = vpop.f32.mrf.mxu0 }
 0x5f6   : > { %v2287_v31 = vpop.f32.mrf.mxu1  ;;  %v3276_v37 = vpack.i.bf16 %v2334_v23, %v2331_v50 }
 0x5f7   : > { %v3271_v33 = vpack.i.bf16 %v2287_v31, %v2284_v8  ;;  %v3176_v30 = vpop.f32.mrf.mxu0 }
 0x5f8   : > { %v3170_v57 = vpop.f32.mrf.mxu1 }
 0x5f9   : > { %3272 = vrot.lane.b32.xlu0 %v3271_v33, %s3464_s24  ;;  %v4318_v48 = vpop.f32.mrf.mxu0 }
 0x5fa   : > { %v2378_v2 = vpop.f32.mrf.mxu1 }
 0x5fb   : > { %v3187_v58 = vpop.f32.mrf.mxu0 }
 0x5fc   : > { %v3181_v25 = vpop.f32.mrf.mxu1 }
 0x5fd   : > { %3277 = vrot.lane.b32.xlu0 %v3276_v37, %s3465_s25  ;;  %v4321_v60 = vpop.f32.mrf.mxu0 }
 0x5fe   : > { %v2381_v38 = vpop.f32.mrf.mxu1 }
 0x5ff   : > { %v3291_v11 = vpack.i.bf16 %v2381_v38, %v2378_v2  ;;  %v3188_v3 = vpop.f32.mrf.mxu0 }
 0x600   : > { %v3182_v10 = vpop.f32.mrf.mxu1 }
 0x601   : > { %3292 = vrot.lane.b32.xlu0 %v3291_v11, %s3466_s26 }
 0x60c   : > { %v2519_v62 = vpop.f32.mrf.mxu0 }
 0x60d   : > { %v2472_v5 = vpop.f32.mrf.mxu1 }
 0x60e   : > { %v3199_v35 = vpop.f32.mrf.mxu0 }
 0x60f   : > { %v3193_v18 = vpop.f32.mrf.mxu1 }
 0x610   : > { %v2522_v55 = vpop.f32.mrf.mxu0 }
 0x611   : > { %v2475_v53 = vpop.f32.mrf.mxu1  ;;  %v3286_v52 = vpack.i.bf16 %v2522_v55, %v2519_v62 }
 0x612   : > { %v3281_v4 = vpack.i.bf16 %v2475_v53, %v2472_v5  ;;  %v3200_v61 = vpop.f32.mrf.mxu0 }
 0x613   : > { %v3194_v45 = vpop.f32.mrf.mxu1 }
 0x614   : > { %3282 = vrot.lane.b32.xlu1 %v3281_v4, %s3464_s24 }
 0x615   : > { %v2566_v9 = vpop.f32.mrf.mxu1 }
 0x617   : > { %v3205_v34 = vpop.f32.mrf.mxu1 }
 0x618   : > { %3287 = vrot.lane.b32.xlu1 %v3286_v52, %s3465_s25 }
 0x619   : > { %v2569_v26 = vpop.f32.mrf.mxu1 }
 0x61a   : > { %v3296_v59 = vpack.i.bf16 %v2569_v26, %v2566_v9 }
 0x61b   : > { %v3206_v17 = vpop.f32.mrf.mxu1 }
 0x61c   : > { %3297 = vrot.lane.b32.xlu1 %v3296_v59, %s3466_s26 }
 0x646   : > { %v3243_v49 = vpop.permute.xlu0 %3242 }
 0x647   : > { %v3245_v44 = vunpack.i.h.bf16 %v3243_v49  ;;  %v3244_v39 = vunpack.i.l.bf16 %v3243_v49 }
 0x649   : > { %v2670_v7 = vsel %vm597_vm2, %v4295_v51, %v3245_v44  ;;  %v2669_v16 = vsel %vm597_vm2, %v4293_v42, %v3244_v39 }
 0x64a   : > { %v3248_v47 = vpop.permute.xlu0 %3247 }
 0x64b   : > { %v3250_v24 = vunpack.i.h.bf16 %v3248_v47  ;;  %v3249_v29 = vunpack.i.l.bf16 %v3248_v47 }
 0x64d   : > { %v2677_v1 = vsel %vm1452_vm3, %v2669_v16, %v3249_v29  ;;  %v2678_v13 = vsel %vm1452_vm3, %v2670_v7, %v3250_v24 }
 0x64e   : > { %v3253_v46 = vpop.permute.xlu0 %3252 }
 0x64f   : > { %v3255_v21 = vunpack.i.h.bf16 %v3253_v46  ;;  %v3254_v0 = vunpack.i.l.bf16 %v3253_v46 }
 0x651   : > { %v2686_v43 = vsel %vm2685_vm4, %v2677_v1, %v3254_v0  ;;  %v2687_v40 = vsel %vm2685_vm4, %v2678_v13, %v3255_v21 }
 0x652   : > { %v2694_v14 = vpack.c.bf16 %v2687_v40, %v2686_v43 }
 0x654   : > { %3211 = vmatprep.mubr.msk.bf16.mxu0 %vm323_vm0, %v2694_v14 }
 0x656   : > { %v3258_v6 = vpop.permute.xlu1 %3257 }
 0x657   : > { %v3260_v32 = vunpack.i.h.bf16 %v3258_v6  ;;  %v3259_v51 = vunpack.i.l.bf16 %v3258_v6 }
 0x659   : > { %v2672_v41 = vsel %vm597_vm2, %v4302_v27, %v3260_v32  ;;  %v2671_v20 = vsel %vm597_vm2, %v4299_v12, %v3259_v51 }
 0x65a   : > { %v3263_v22 = vpop.permute.xlu1 %3262 }
 0x65b   : > { %v3265_v56 = vunpack.i.h.bf16 %v3263_v22  ;;  %v3264_v15 = vunpack.i.l.bf16 %v3263_v22 }
 0x65d   : > { %v2680_v8 = vsel %vm1452_vm3, %v2672_v41, %v3265_v56  ;;  %v2679_v28 = vsel %vm1452_vm3, %v2671_v20, %v3264_v15 }
 0x663   : > { %v3268_v42 = vpop.permute.xlu1 %3267 }
 0x664   : > { %v3270_v54 = vunpack.i.h.bf16 %v3268_v42  ;;  %v3269_v50 = vunpack.i.l.bf16 %v3268_v42 }
 0x666   : > { %v2689_v19 = vsel %vm2685_vm4, %v2680_v8, %v3270_v54  ;;  %v2688_v23 = vsel %vm2685_vm4, %v2679_v28, %v3269_v50 }
 0x667   : > { %v2695_v31 = vpack.c.bf16 %v2689_v19, %v2688_v23 }
 0x669   : > { %3212 = vmatmul.mubr.msk.bf16.vlgmr.msra.gmra.mxu0 %vm323_vm0, %v2695_v31 }
 0x66b   : > { %v3273_v33 = vpop.permute.xlu0 %3272 }
 0x66c   : > { %v3275_v57 = vunpack.i.h.bf16 %v3273_v33  ;;  %v3274_v27 = vunpack.i.l.bf16 %v3273_v33 }
 0x66e   : > { %v2674_v58 = vsel %vm597_vm2, %v4314_v63, %v3275_v57  ;;  %v2673_v25 = vsel %vm597_vm2, %v4312_v36, %v3274_v27 }
 0x66f   : > { %v3278_v30 = vpop.permute.xlu0 %3277 }
 0x670   : > { %v3280_v2 = vunpack.i.h.bf16 %v3278_v30  ;;  %v3279_v37 = vunpack.i.l.bf16 %v3278_v30 }
 0x672   : > { %v2681_v3 = vsel %vm1452_vm3, %v2673_v25, %v3279_v37  ;;  %v2682_v10 = vsel %vm1452_vm3, %v2674_v58, %v3280_v2 }
 0x673   : > { %v3293_v12 = vpop.permute.xlu0 %3292 }
 0x674   : > { %v3295_v38 = vunpack.i.h.bf16 %v3293_v12  ;;  %v3294_v11 = vunpack.i.l.bf16 %v3293_v12 }
 0x676   : > { %v2690_v62 = vsel %vm2685_vm4, %v2681_v3, %v3294_v11  ;;  %v2691_v5 = vsel %vm2685_vm4, %v2682_v10, %v3295_v38 }
 0x677   : > { %v2696_v35 = vpack.c.bf16 %v2691_v5, %v2690_v62 }
 0x679   : > { %3215 = vmatprep.mubr.msk.bf16.mxu0 %vm323_vm0, %v2696_v35 }
 0x686   : > { %v3283_v18 = vpop.permute.xlu1 %3282 }
 0x687   : > { %v3285_v53 = vunpack.i.h.bf16 %v3283_v18  ;;  %v3284_v63 = vunpack.i.l.bf16 %v3283_v18 }
 0x689   : > { %v2676_v45 = vsel %vm597_vm2, %v4321_v60, %v3285_v53  ;;  %v2675_v9 = vsel %vm597_vm2, %v4318_v48, %v3284_v63  ;;  %v2916_v60 = vld [vmem:[%s4388_s6] ss:$0 sm:$0xff] }
 0x68a   : > { %v3288_v55 = vpop.permute.xlu1 %3287 }
 0x68b   : > { %v3290_v4 = vunpack.i.h.bf16 %v3288_v55  ;;  %v3289_v36 = vunpack.i.l.bf16 %v3288_v55 }
 0x68d   : > { %v2684_v26 = vsel %vm1452_vm3, %v2676_v45, %v3290_v4  ;;  %v2683_v59 = vsel %vm1452_vm3, %v2675_v9, %v3289_v36 }
 0x68e   : > { %v3298_v61 = vpop.permute.xlu1 %3297 }
 0x68f   : > { %v3300_v52 = vunpack.i.h.bf16 %v3298_v61  ;;  %v3299_v34 = vunpack.i.l.bf16 %v3298_v61 }
 0x691   : > { %v2692_v17 = vsel %vm2685_vm4, %v2683_v59, %v3299_v34  ;;  %v2693_v49 = vsel %vm2685_vm4, %v2684_v26, %v3300_v52 }
 0x692   : > { %v2697_v47 = vpack.c.bf16 %v2693_v49, %v2692_v17 }
 0x694   : > { %3216 = vmatmul.mubr.msk.bf16.gmra.mxu0 %vm323_vm0, %v2697_v47 }
 0x729   : > { %v3213_v44 = vpop.f32.mrf.mxu0 }
 0x72a   : > { %v2776_v24 = vadd.f32 %v3213_v44, %v2916_v60 }
 0x72b   : > { %v2767_v48 = vpop.f32.mrf.mxu0 }
 0x72c   : > { %v2768_v39 = vadd.f32 %v2916_v60, %v2767_v48  ;;  %2800 = vst.msk [vmem:[%s312_s16 + $0x10] sm:$0xff] %vm323_vm0, %v2776_v24 }
 0x72d   : > { %v3214_v29 = vpop.f32.mrf.mxu0 }
 0x72e   : > { %2798 = vst.msk [vmem:[%s312_s16] sm:$0xff] %vm323_vm0, %v2768_v39  ;;  %v2779_v16 = vadd.f32 %v3214_v29, %v2916_v60 }
 0x72f   : > { %v2770_v46 = vpop.f32.mrf.mxu0 }
 0x730   : > { %v2771_v7 = vadd.f32 %v2916_v60, %v2770_v46  ;;  %2801 = vst.msk [vmem:[%s312_s16 + $0x18] sm:$0xff] %vm323_vm0, %v2779_v16 }
 0x732   : > { %2799 = vst.msk [vmem:[%s312_s16 + $0x8] sm:$0xff] %vm323_vm0, %v2771_v7 }
 0x754   : > { %v3217_v21 = vpop.f32.mrf.mxu0 }
 0x755   : > { %v2792_v13 = vadd.f32 %v3217_v21, %v2916_v60 }
 0x756   : > { %v2783_v0 = vpop.f32.mrf.mxu0 }
 0x757   : > { %v2784_v1 = vadd.f32 %v2916_v60, %v2783_v0  ;;  %2804 = vst.msk [vmem:[%s312_s16 + $0x30] sm:$0xff] %vm323_vm0, %v2792_v13 }
 0x758   : > { %v3218_v43 = vpop.f32.mrf.mxu0 }
 0x759   : > { %2802 = vst.msk [vmem:[%s312_s16 + $0x20] sm:$0xff] %vm323_vm0, %v2784_v1  ;;  %v2795_v6 = vadd.f32 %v3218_v43, %v2916_v60 }
 0x75a   : > { %v2786_v40 = vpop.f32.mrf.mxu0 }
 0x75b   : > { %v2787_v14 = vadd.f32 %v2916_v60, %v2786_v40  ;;  %2805 = vst.msk [vmem:[%s312_s16 + $0x38] sm:$0xff] %vm323_vm0, %v2795_v6 }
 0x75d   : > { %2803 = vst.msk [vmem:[%s312_s16 + $0x28] sm:$0xff] %vm323_vm0, %v2787_v14 }
 0x75e PF: > { %s18_s27 = sadd.s32 1, %s3455_s27  }
 0x75f   : > { %p15_p4 = scmp.ge.s32.totalorder %s18_s27, 4  }
 0x761   :  { %17 = sbr.rel (!%p15_p4) target bundleno = 1 (0x1), region = 82 }

// kernel: run.6
= control target key start
LH: loop header
LB: loop body
LE: loop exit
PB: predicated region body
PF: predicated region fallthrough
CT: control target
= control target key end

     0   :  { %s3584_s30 = smov 0   ;;  %s4508_s0 = inlined_call_operand.vmem [shape: f32[8,16,32], index: 0, kind: input, shape index: {}]   ;;  %s4509_s1 = inlined_call_operand.vmem [shape: f32[1,32], index: 1, kind: input, shape index: {}]   ;;  %s4510_s2 = inlined_call_operand.vmem [shape: f32[1,32], index: 2, kind: input, shape index: {}]   ;;  %s4511_s3 = inlined_call_operand.vmem [shape: bf16[32,96], index: 3, kind: input, shape index: {}]   ;;  %s4512_s4 = inlined_call_operand.vmem [shape: f32[1,96], index: 4, kind: input, shape index: {}]   ;;  %s4513_s5 = inlined_call_operand.vmem [shape: bf16[32,32], index: 5, kind: input, shape index: {}]   ;;  %s4514_s6 = inlined_call_operand.vmem [shape: f32[1,32], index: 6, kind: input, shape index: {}]   ;;  %s4515_s7 = inlined_call_operand.vmem [shape: f32[4,16,16], index: 7, kind: input, shape index: {}]   ;;  %s4516_s8 = inlined_call_operand.vmem [shape: f32[4,16,16], index: 8, kind: input, shape index: {}]   ;;  %s4517_s9 = inlined_call_operand.vmem [shape: f32[8,16,32], index: 9, kind: output, shape index: {}]  }
   0x1 LB: > { %s2931_s10 = sadd.s32 4294967295, %s3522_s30   ;;  %p2935_p0 = scmp.ge.s32.totalorder %s3522_s30, 1  ;;  %s3522_s30 = sphi %s3584_s30, %s19_s30  }
   0x2   : > { %p289_p1 = scmp.lt.s32.totalorder %s3522_s30, 3 }
   0x4   : > { %p290_p2 = pnand %p2935_p0, %p289_p1 }
   0x6   : > { %293 = sbr.rel (%p290_p2) target bundleno = 1891 (0x763), region = 56 }
   0xb   : > { %s2936_s11 = sshll.u32 %s2931_s10, 2  ;;  %vm350_vm0 = vcmask 261120   ;;  %v3368_v56 = vld [vmem:[%s4511_s3 + $0x8] sm:$0xff]   ;;  %v3369_v57 = vld [vmem:[%s4511_s3] sm:$0xff]   ;;  %s3524_s26 = smov 112   ;;  %vm3528_vm1 = vmmov 0  }
   0xc   : > { %p328_p3 = scmp.lt.s32.totalorder %s2936_s11, 7  ;;  %3070 = vmatprep.subr.bf16.mxu0 %v3368_v56  ;;  %3286 = vmatprep.subr.bf16.mxu1 %v3368_v56  ;;  %s3525_s27 = smov 120   ;;  %vm624_vm2 = vcmask 64512   ;;  %vm1519_vm3 = vcmask 130048   ;;  %vm2752_vm4 = vcmask 195584  }
   0xd   : > { %3071 = vmatpush3.bf16.msra.mxu0 %v3368_v56  ;;  %3288 = vmatpush3.bf16.msra.mxu1 %v3368_v56  ;;  %s3526_s28 = smov 104   ;;  %s3529_s29 = smov 96  }
   0xe   : > { %s4526_s11 = smov (!%p328_p3, %s2936_s11), 7  ;;  %3072 = vmatprep.subr.bf16.mxu0 %v3369_v57  ;;  %3287 = vmatprep.subr.bf16.mxu1 %v3369_v57  ;;  %s3530_s10 = smov 64  }
   0xf   : > { %s2992_s12 = sshll.u32 %s4526_s11, 4 }
  0x10   : > { %s332_s15 = scalar_lea.vmem %s4508_s0, %s2992_s12  ;;  %s339_s21 = scalar_lea.vmem %s4517_s9, %s2992_s12 }
  0x11   : > { %v342_v0 = vld [vmem:[%s332_s15] sm:$0xff]  ;;  %v344_v1 = vld [vmem:[%s332_s15 + $0x10] sm:$0xff]  ;;  %v343_v2 = vld [vmem:[%s332_s15 + $0x8] sm:$0xff]  ;;  %3073 = vmatpush3.bf16.msra.mxu0 %v3369_v57  ;;  %3289 = vmatpush3.bf16.msra.mxu1 %v3369_v57 }
  0x12   : > { %v351_v3 = vsel %vm350_vm0, %v342_v0, 0.0  ;;  %v357_v4 = vsel %vm350_vm0, %v344_v1, 0.0  ;;  %v345_v5 = vld [vmem:[%s332_s15 + $0x18] sm:$0xff]  ;;  %v354_v6 = vsel %vm350_vm0, %v343_v2, 0.0  ;;  %v346_v8 = vld [vmem:[%s332_s15 + $0x20] sm:$0xff]  ;;  %v347_v9 = vld [vmem:[%s332_s15 + $0x28] sm:$0xff] }
  0x13   : > { %352 = vadd.xlane.f32.xlu0 %v351_v3  ;;  %358 = vadd.xlane.f32.xlu1 %v357_v4  ;;  %v360_v7 = vsel %vm350_vm0, %v345_v5, 0.0  ;;  %v363_v10 = vsel %vm350_vm0, %v346_v8, 0.0  ;;  %v366_v11 = vsel %vm350_vm0, %v347_v9, 0.0  ;;  %v348_v12 = vld [vmem:[%s332_s15 + $0x30] sm:$0xff]  ;;  %v349_v13 = vld [vmem:[%s332_s15 + $0x38] sm:$0xff] }
  0x14   : > { %v369_v14 = vsel %vm350_vm0, %v348_v12, 0.0  ;;  %v372_v15 = vsel %vm350_vm0, %v349_v13, 0.0 }
  0x17   : > { %355 = vadd.xlane.f32.xlu0 %v354_v6  ;;  %361 = vadd.xlane.f32.xlu1 %v360_v7 }
  0x1b   : > { %364 = vadd.xlane.f32.xlu0 %v363_v10  ;;  %367 = vadd.xlane.f32.xlu1 %v366_v11 }
  0x1f   : > { %370 = vadd.xlane.f32.xlu0 %v369_v14  ;;  %373 = vadd.xlane.f32.xlu1 %v372_v15 }
  0x9c   : > { %v353_v16 = vpop.xlane.xlu0 %352  ;;  %v359_v17 = vpop.xlane.xlu1 %358 }
  0x9d   : > { %v376_v18 = vmul.f32 0.03125, %v353_v16  ;;  %v378_v19 = vmul.f32 0.03125, %v359_v17 }
  0x9f   : > { %v3608_v20 = vsub.f32 %v342_v0, %v376_v18  ;;  %v3610_v21 = vsub.f32 %v344_v1, %v378_v19 }
  0xa0   : > { %v356_v22 = vpop.xlane.xlu0 %355  ;;  %v362_v23 = vpop.xlane.xlu1 %361 }
  0xa1   : > { %v377_v24 = vmul.f32 0.03125, %v356_v22  ;;  %v379_v25 = vmul.f32 0.03125, %v362_v23  ;;  %v392_v26 = vmul.f32 %v3608_v20, %v3608_v20  ;;  %v394_v27 = vmul.f32 %v3610_v21, %v3610_v21  ;;  %v2942_v22 = vld [vmem:[%s4509_s1] ss:$0 sm:$0xff] }
  0xa3   : > { %v3616_v28 = vsub.f32 %v343_v2, %v377_v24  ;;  %v3618_v29 = vsub.f32 %v345_v5, %v379_v25  ;;  %v400_v30 = vsel %vm350_vm0, %v392_v26, 0.0  ;;  %v406_v33 = vsel %vm350_vm0, %v394_v27, 0.0  ;;  %v2943_v27 = vld [vmem:[%s4510_s2] ss:$0 sm:$0xff] }
  0xa4   : > { %401 = vadd.xlane.f32.xlu0 %v400_v30  ;;  %v365_v31 = vpop.xlane.xlu0 %364  ;;  %v368_v32 = vpop.xlane.xlu1 %367 }
  0xa5   : > { %v380_v34 = vmul.f32 0.03125, %v365_v31  ;;  %v381_v35 = vmul.f32 0.03125, %v368_v32  ;;  %v393_v36 = vmul.f32 %v3616_v28, %v3616_v28  ;;  %v395_v37 = vmul.f32 %v3618_v29, %v3618_v29 }
  0xa7   : > { %v3626_v38 = vsub.f32 %v346_v8, %v380_v34  ;;  %v3628_v39 = vsub.f32 %v347_v9, %v381_v35  ;;  %v403_v40 = vsel %vm350_vm0, %v393_v36, 0.0  ;;  %v409_v43 = vsel %vm350_vm0, %v395_v37, 0.0 }
  0xa8   : > { %407 = vadd.xlane.f32.xlu0 %v406_v33  ;;  %404 = vadd.xlane.f32.xlu1 %v403_v40  ;;  %v371_v41 = vpop.xlane.xlu0 %370  ;;  %v374_v42 = vpop.xlane.xlu1 %373 }
  0xa9   : > { %v382_v44 = vmul.f32 0.03125, %v371_v41  ;;  %v383_v45 = vmul.f32 0.03125, %v374_v42  ;;  %v396_v46 = vmul.f32 %v3626_v38, %v3626_v38  ;;  %v397_v47 = vmul.f32 %v3628_v39, %v3628_v39 }
  0xab   : > { %v3636_v48 = vsub.f32 %v348_v12, %v382_v44  ;;  %v3638_v49 = vsub.f32 %v349_v13, %v383_v45  ;;  %v412_v50 = vsel %vm350_vm0, %v396_v46, 0.0  ;;  %v415_v51 = vsel %vm350_vm0, %v397_v47, 0.0 }
  0xac   : > { %410 = vadd.xlane.f32.xlu1 %v409_v43  ;;  %413 = vadd.xlane.f32.xlu0 %v412_v50 }
  0xad   : > { %v398_v52 = vmul.f32 %v3636_v48, %v3636_v48  ;;  %v399_v53 = vmul.f32 %v3638_v49, %v3638_v49 }
  0xaf   : > { %v418_v54 = vsel %vm350_vm0, %v398_v52, 0.0  ;;  %v421_v55 = vsel %vm350_vm0, %v399_v53, 0.0 }
  0xb0   : > { %416 = vadd.xlane.f32.xlu1 %v415_v51  ;;  %419 = vadd.xlane.f32.xlu0 %v418_v54 }
  0xb4   : > { %422 = vadd.xlane.f32.xlu1 %v421_v55 }
 0x12d   : > { %v402_v58 = vpop.xlane.xlu0 %401 }
 0x12e   : > { %v424_v59 = vmul.f32 0.03125, %v402_v58 }
 0x130   : > { %v432_v60 = vadd.f32 1e-05, %v424_v59 }
 0x131   : > { %v405_v61 = vpop.xlane.xlu1 %404  ;;  %v408_v62 = vpop.xlane.xlu0 %407 }
 0x132   : > { %3372 = vrsqrt.f32 %v432_v60  ;;  %v425_v63 = vmul.f32 0.03125, %v405_v61  ;;  %v426_v0 = vmul.f32 0.03125, %v408_v62  ;;  %v2944_v60 = vld [vmem:[%s4512_s4] ss:$0 sm:$0xff] }
 0x134   : > { %v433_v1 = vadd.f32 1e-05, %v425_v63  ;;  %v434_v2 = vadd.f32 1e-05, %v426_v0 }
 0x135   : > { %v411_v3 = vpop.xlane.xlu1 %410  ;;  %v414_v4 = vpop.xlane.xlu0 %413 }
 0x136   : > { %3374 = vrsqrt.f32 %v433_v1  ;;  %v427_v5 = vmul.f32 0.03125, %v411_v3  ;;  %v428_v6 = vmul.f32 0.03125, %v414_v4 }
 0x137   : > { %3376 = vrsqrt.f32 %v434_v2 }
 0x138   : > { %v435_v7 = vadd.f32 1e-05, %v427_v5  ;;  %v436_v8 = vadd.f32 1e-05, %v428_v6 }
 0x139   : > { %v417_v9 = vpop.xlane.xlu1 %416  ;;  %v420_v10 = vpop.xlane.xlu0 %419 }
 0x13a   : > { %3378 = vrsqrt.f32 %v435_v7  ;;  %v429_v11 = vmul.f32 0.03125, %v417_v9  ;;  %v430_v12 = vmul.f32 0.03125, %v420_v10  ;;  %v4518_v9 = vmov 0.0  }
 0x13b   : > { %3380 = vrsqrt.f32 %v436_v8  ;;  %3082 = vmatprep.subr.bf16.mxu1 %v4518_v9  ;;  %3094 = vmatprep.subr.bf16.mxu0 %v4518_v9 }
 0x13c   : > { %v437_v13 = vadd.f32 1e-05, %v429_v11  ;;  %v438_v14 = vadd.f32 1e-05, %v430_v12 }
 0x13d   : > { %v423_v15 = vpop.xlane.xlu1 %422 }
 0x13e   : > { %3382 = vrsqrt.f32 %v437_v13  ;;  %v431_v16 = vmul.f32 0.03125, %v423_v15 }
 0x13f   : > { %v3373_v17 = vpop.eup %3372  ;;  %3384 = vrsqrt.f32 %v438_v14 }
 0x140   : > { %v439_v18 = vadd.f32 1e-05, %v431_v16  ;;  %v448_v19 = vmul.f32 %v3373_v17, %v3608_v20 }
 0x142   : > { %3386 = vrsqrt.f32 %v439_v18  ;;  %v463_v26 = vmul.f32 %v2942_v22, %v448_v19 }
 0x143   : > { %v3375_v23 = vpop.eup %3374 }
 0x144   : > { %v3377_v24 = vpop.eup %3376  ;;  %v449_v25 = vmul.f32 %v3375_v23, %v3616_v28  ;;  %v478_v20 = vadd.f32 %v2943_v27, %v463_v26 }
 0x145   : > { %v450_v30 = vmul.f32 %v3377_v24, %v3610_v21 }
 0x146   : > { %v464_v31 = vmul.f32 %v2942_v22, %v449_v25 }
 0x147   : > { %v3379_v32 = vpop.eup %3378  ;;  %v465_v36 = vmul.f32 %v2942_v22, %v450_v30 }
 0x148   : > { %v3381_v33 = vpop.eup %3380  ;;  %v479_v34 = vadd.f32 %v2943_v27, %v464_v31  ;;  %v451_v35 = vmul.f32 %v3379_v32, %v3618_v29 }
 0x149   : > { %v452_v37 = vmul.f32 %v3381_v33, %v3626_v38  ;;  %v480_v43 = vadd.f32 %v2943_v27, %v465_v36 }
 0x14a   : > { %v486_v40 = vpack.c.bf16 %v479_v34, %v478_v20  ;;  %v466_v41 = vmul.f32 %v2942_v22, %v451_v35 }
 0x14b   : > { %v3383_v28 = vpop.eup %3382  ;;  %v467_v45 = vmul.f32 %v2942_v22, %v452_v37 }
 0x14c   : > { %v3385_v42 = vpop.eup %3384  ;;  %3074 = vmatprep.mubr.msk.bf16.mxu0 %vm350_vm0, %v486_v40  ;;  %v481_v44 = vadd.f32 %v2943_v27, %v466_v41  ;;  %v453_v21 = vmul.f32 %v3383_v28, %v3628_v39 }
 0x14d   : > { %v454_v46 = vmul.f32 %v3385_v42, %v3636_v48  ;;  %v482_v29 = vadd.f32 %v2943_v27, %v467_v45 }
 0x14e   : > { %v487_v47 = vpack.c.bf16 %v481_v44, %v480_v43  ;;  %v468_v50 = vmul.f32 %v2942_v22, %v453_v21 }
 0x14f   : > { %v3387_v51 = vpop.eup %3386  ;;  %v469_v53 = vmul.f32 %v2942_v22, %v454_v46 }
 0x150   : > { %3075 = vmatmul.mubr.msk.bf16.vlgmr.msra.gmra.mxu0 %vm350_vm0, %v487_v47  ;;  %v483_v38 = vadd.f32 %v2943_v27, %v468_v50  ;;  %v455_v52 = vmul.f32 %v3387_v51, %v3638_v49 }
 0x151   : > { %v484_v56 = vadd.f32 %v2943_v27, %v469_v53  ;;  %3096 = vmatprep.mubr.msk.bf16.mxu0 %vm3528_vm1, %v4518_v9 }
 0x152   : > { %v488_v54 = vpack.c.bf16 %v483_v38, %v482_v29  ;;  %v470_v55 = vmul.f32 %v2942_v22, %v455_v52 }
 0x154   : > { %3078 = vmatprep.mubr.msk.bf16.mxu1 %vm350_vm0, %v488_v54  ;;  %v485_v57 = vadd.f32 %v2943_v27, %v470_v55 }
 0x156   : > { %v489_v39 = vpack.c.bf16 %v485_v57, %v484_v56 }
 0x158   : > { %3079 = vmatmul.mubr.msk.bf16.vlgmr.msra.gmra.mxu1 %vm350_vm0, %v489_v39 }
 0x159   : > { %3084 = vmatprep.mubr.msk.bf16.mxu1 %vm3528_vm1, %v4518_v9 }
 0x210   : > { %v3076_v48 = vpop.f32.mrf.mxu0 }
 0x211   : > { %v568_v3 = vadd.f32 %v3076_v48, %v2944_v60 }
 0x212   : > { %v559_v58 = vpop.f32.mrf.mxu0 }
 0x213   : > { %v560_v62 = vadd.f32 %v2944_v60, %v559_v58 }
 0x214   : > { %v3077_v59 = vpop.f32.mrf.mxu0 }
 0x215   : > { %v571_v0 = vadd.f32 %v3077_v59, %v2944_v60 }
 0x216   : > { %v562_v61 = vpop.f32.mrf.mxu0 }
 0x217   : > { %v563_v49 = vadd.f32 %v2944_v60, %v562_v61  ;;  %v3680_v5 = vpack.c.bf16 %v571_v0, %v568_v3 }
 0x218   : > { %v3080_v63 = vpop.f32.mrf.mxu1 }
 0x219   : > { %v3675_v1 = vpack.c.bf16 %v563_v49, %v560_v62  ;;  %v584_v12 = vadd.f32 %v3080_v63, %v2944_v60  ;;  %v3880_v63 = vld [vmem:[%s4515_s7] sm:$0xff] }
 0x21a   : > { %v575_v2 = vpop.f32.mrf.mxu1 }
 0x21b   : > { %606 = vrot.lane.b32.xlu1 %v3675_v1, %s3524_s26  ;;  %598 = vrot.lane.b32.xlu0 %v3675_v1, %s3525_s27  ;;  %v576_v7 = vadd.f32 %v2944_v60, %v575_v2  ;;  %v3885_v2 = vld [vmem:[%s4516_s8] sm:$0xff] }
 0x21c   : > { %v3081_v4 = vpop.f32.mrf.mxu1 }
 0x21d   : > { %v587_v11 = vadd.f32 %v3081_v4, %v2944_v60 }
 0x21e   : > { %v578_v6 = vpop.f32.mrf.mxu1 }
 0x21f   : > { %v579_v8 = vadd.f32 %v2944_v60, %v578_v6  ;;  %614 = vrot.lane.b32.xlu1 %v3675_v1, %s3526_s28  ;;  %608 = vrot.lane.b32.xlu0 %v3680_v5, %s3524_s26  ;;  %v3701_v13 = vpack.c.bf16 %v587_v11, %v584_v12 }
 0x221   : > { %v3687_v10 = vpack.c.bf16 %v579_v8, %v576_v7 }
 0x223   : > { %600 = vrot.lane.b32.xlu1 %v3680_v5, %s3525_s27  ;;  %602 = vrot.lane.b32.xlu0 %v3687_v10, %s3525_s27 }
 0x227   : > { %616 = vrot.lane.b32.xlu1 %v3680_v5, %s3526_s28  ;;  %618 = vrot.lane.b32.xlu0 %v3687_v10, %s3526_s28 }
 0x22b   : > { %610 = vrot.lane.b32.xlu1 %v3687_v10, %s3524_s26  ;;  %622 = vrot.lane.b32.xlu0 %v3675_v1, %s3529_s29 }
 0x22f   : > { %604 = vrot.lane.b32.xlu1 %v3701_v13, %s3525_s27  ;;  %620 = vrot.lane.b32.xlu0 %v3701_v13, %s3526_s28  ;;  %s3532_s28 = smov 16  }
 0x233   : > { %612 = vrot.lane.b32.xlu1 %v3701_v13, %s3524_s26 }
 0x28d   : > { %v607_v14 = vpop.permute.xlu1 %606  ;;  %v599_v15 = vpop.permute.xlu0 %598 }
 0x28e   : > { %721 = vrot.lane.b32.xlu0 %v607_v14, %s3529_s29  ;;  %672 = vrot.lane.b32.xlu1 %v599_v15, %s3529_s29 }
 0x291   : > { %v3709_v16 = vpop.permute.xlu1 %614  ;;  %v3711_v17 = vpop.permute.xlu0 %608 }
 0x292   : > { %819 = vrot.lane.b32.xlu0 %v3680_v5, %s3529_s29  ;;  %770 = vrot.lane.b32.xlu1 %v3709_v16, %s3529_s29 }
 0x295   : > { %v3717_v18 = vpop.permute.xlu1 %600  ;;  %v3719_v19 = vpop.permute.xlu0 %602 }
 0x296   : > { %868 = vrot.lane.b32.xlu1 %v3717_v18, %s3529_s29  ;;  %917 = vrot.lane.b32.xlu0 %v3711_v17, %s3529_s29 }
 0x299   : > { %v3725_v22 = vpop.permute.xlu1 %616  ;;  %v3727_v23 = vpop.permute.xlu0 %618 }
 0x29a   : > { %966 = vrot.lane.b32.xlu1 %v3725_v22, %s3529_s29  ;;  %1015 = vrot.lane.b32.xlu0 %v3687_v10, %s3529_s29 }
 0x29d   : > { %v3733_v24 = vpop.permute.xlu1 %610  ;;  %v623_v25 = vpop.permute.xlu0 %622 }
 0x29e   : > { %v629_v26 = vsel %vm624_vm2, %v623_v25, 0  ;;  %1113 = vrot.lane.b32.xlu0 %v3733_v24, %s3529_s29  ;;  %1064 = vrot.lane.b32.xlu1 %v3719_v19, %s3529_s29 }
 0x29f   : > { %3083 = vmatpush3.bf16.xpose.msra.mxu1 %v629_v26 }
 0x2a0   : > { %3088 = vmatprep.subr.bf16.mxu1 %v4518_v9 }
 0x2a1   : > { %v3741_v27 = vpop.permute.xlu1 %604  ;;  %v3757_v31 = vpop.permute.xlu0 %620 }
 0x2a2   : > { %1211 = vrot.lane.b32.xlu0 %v3701_v13, %s3529_s29  ;;  %1162 = vrot.lane.b32.xlu1 %v3727_v23, %s3529_s29 }
 0x2a5   : > { %v3747_v30 = vpop.permute.xlu1 %612 }
 0x2a6   : > { %1309 = vrot.lane.b32.xlu0 %v3747_v30, %s3529_s29  ;;  %1260 = vrot.lane.b32.xlu1 %v3741_v27, %s3529_s29 }
 0x2a7   : > { %3085 = vmatmul.mubr.msk.bf16.vlgmr.msra.gmra.mxu1 %vm624_vm2, %v3675_v1 }
 0x2a8   : > { %3090 = vmatprep.mubr.msk.bf16.mxu1 %vm3528_vm1, %v4518_v9 }
 0x2aa   : > { %1888 = vrot.lane.b32.xlu0 %v3675_v1, %s3530_s10  ;;  %1358 = vrot.lane.b32.xlu1 %v3757_v31, %s3529_s29  ;;  %s3533_s29 = smov 24  }
 0x2ae   : > { %2076 = vrot.lane.b32.xlu0 %v3680_v5, %s3530_s10  ;;  %2123 = vrot.lane.b32.xlu1 %v3717_v18, %s3530_s10 }
 0x2b2   : > { %2170 = vrot.lane.b32.xlu0 %v3711_v17, %s3530_s10  ;;  %2217 = vrot.lane.b32.xlu1 %v3725_v22, %s3530_s10 }
 0x2b6   : > { %2264 = vrot.lane.b32.xlu0 %v3687_v10, %s3530_s10  ;;  %1935 = vrot.lane.b32.xlu1 %v599_v15, %s3530_s10 }
 0x2ba   : > { %1982 = vrot.lane.b32.xlu0 %v607_v14, %s3530_s10  ;;  %2029 = vrot.lane.b32.xlu1 %v3709_v16, %s3530_s10 }
 0x2be   : > { %2311 = vrot.lane.b32.xlu1 %v3719_v19, %s3530_s10 }
 0x2c2   : > { %2358 = vrot.lane.b32.xlu1 %v3733_v24, %s3530_s10 }
 0x2c6   : > { %2405 = vrot.lane.b32.xlu1 %v3727_v23, %s3530_s10 }
 0x300   : > { %v673_v32 = vpop.permute.xlu1 %672  ;;  %v722_v33 = vpop.permute.xlu0 %721 }
 0x301   : > { %v678_v20 = vsel %vm624_vm2, %v673_v32, 0  ;;  %v727_v34 = vsel %vm624_vm2, %v722_v33, 0 }
 0x302   : > { %3089 = vmatpush3.bf16.xpose.msra.mxu1 %v678_v20  ;;  %3095 = vmatpush3.bf16.xpose.msra.mxu0 %v727_v34  ;;  %v3924_v20 = vld [vmem:[%s4515_s7 + $0x18] sm:$0xff] }
 0x303   : > { %3100 = vmatprep.subr.bf16.mxu1 %v4518_v9  ;;  %3106 = vmatprep.subr.bf16.mxu0 %v4518_v9 }
 0x304   : > { %v771_v35 = vpop.permute.xlu1 %770  ;;  %v820_v36 = vpop.permute.xlu0 %819 }
 0x305   : > { %v776_v37 = vsel %vm624_vm2, %v771_v35, 0  ;;  %v825_v40 = vsel %vm624_vm2, %v820_v36, 0  ;;  %v3929_v35 = vld [vmem:[%s4515_s7 + $0x28] sm:$0xff] }
 0x308   : > { %v869_v41 = vpop.permute.xlu1 %868  ;;  %v918_v28 = vpop.permute.xlu0 %917 }
 0x309   : > { %3091 = vmatmul.mubr.msk.bf16.vlgmr.msra.gmra.mxu1 %vm624_vm2, %v599_v15  ;;  %3097 = vmatmul.mubr.msk.bf16.vlgmr.msra.gmra.mxu0 %vm624_vm2, %v607_v14  ;;  %v874_v42 = vsel %vm624_vm2, %v869_v41, 0  ;;  %v923_v43 = vsel %vm624_vm2, %v918_v28, 0 }
 0x30a   : > { %3101 = vmatpush3.bf16.xpose.msra.mxu1 %v776_v37  ;;  %3107 = vmatpush3.bf16.xpose.msra.mxu0 %v825_v40 }
 0x30b   : > { %3102 = vmatprep.mubr.msk.bf16.mxu1 %vm3528_vm1, %v4518_v9  ;;  %3108 = vmatprep.mubr.msk.bf16.mxu0 %vm3528_vm1, %v4518_v9 }
 0x30c   : > { %3112 = vmatprep.subr.bf16.mxu1 %v4518_v9  ;;  %3118 = vmatprep.subr.bf16.mxu0 %v4518_v9  ;;  %v967_v44 = vpop.permute.xlu1 %966  ;;  %v1016_v21 = vpop.permute.xlu0 %1015 }
 0x30d   : > { %v972_v45 = vsel %vm624_vm2, %v967_v44, 0  ;;  %v1021_v46 = vsel %vm624_vm2, %v1016_v21, 0 }
 0x310   : > { %v1065_v47 = vpop.permute.xlu1 %1064  ;;  %v1114_v50 = vpop.permute.xlu0 %1113 }
 0x311   : > { %3103 = vmatmul.mubr.msk.bf16.vlgmr.msra.gmra.mxu1 %vm624_vm2, %v3709_v16  ;;  %3109 = vmatmul.mubr.msk.bf16.vlgmr.msra.gmra.mxu0 %vm624_vm2, %v3680_v5  ;;  %v1070_v51 = vsel %vm624_vm2, %v1065_v47, 0  ;;  %v1119_v29 = vsel %vm624_vm2, %v1114_v50, 0  ;;  %v3891_v5 = vld [vmem:[%s4515_s7 + $0x8] sm:$0xff] }
 0x312   : > { %3113 = vmatpush3.bf16.xpose.msra.mxu1 %v874_v42  ;;  %3119 = vmatpush3.bf16.xpose.msra.mxu0 %v923_v43 }
 0x313   : > { %3114 = vmatprep.mubr.msk.bf16.mxu1 %vm3528_vm1, %v4518_v9  ;;  %3120 = vmatprep.mubr.msk.bf16.mxu0 %vm3528_vm1, %v4518_v9 }
 0x314   : > { %3124 = vmatprep.subr.bf16.mxu1 %v4518_v9  ;;  %3130 = vmatprep.subr.bf16.mxu0 %v4518_v9  ;;  %v1163_v38 = vpop.permute.xlu1 %1162  ;;  %v1212_v52 = vpop.permute.xlu0 %1211 }
 0x315   : > { %v1168_v53 = vsel %vm624_vm2, %v1163_v38, 0  ;;  %v1217_v54 = vsel %vm624_vm2, %v1212_v52, 0 }
 0x318   : > { %v1261_v55 = vpop.permute.xlu1 %1260  ;;  %v1310_v56 = vpop.permute.xlu0 %1309 }
 0x319   : > { %3115 = vmatmul.mubr.msk.bf16.vlgmr.msra.gmra.mxu1 %vm624_vm2, %v3717_v18  ;;  %3121 = vmatmul.mubr.msk.bf16.vlgmr.msra.gmra.mxu0 %vm624_vm2, %v3711_v17  ;;  %v1266_v39 = vsel %vm624_vm2, %v1261_v55, 0  ;;  %v1315_v48 = vsel %vm624_vm2, %v1310_v56, 0  ;;  %v3912_v17 = vld [vmem:[%s4515_s7 + $0x10] sm:$0xff] }
 0x31a   : > { %3125 = vmatpush3.bf16.xpose.msra.mxu1 %v972_v45  ;;  %3131 = vmatpush3.bf16.xpose.msra.mxu0 %v1021_v46  ;;  %v3944_v46 = vld [vmem:[%s4515_s7 + $0x30] sm:$0xff] }
 0x31b   : > { %3126 = vmatprep.mubr.msk.bf16.mxu1 %vm3528_vm1, %v4518_v9  ;;  %3132 = vmatprep.mubr.msk.bf16.mxu0 %vm3528_vm1, %v4518_v9 }
 0x31c   : > { %3136 = vmatprep.subr.bf16.mxu1 %v4518_v9  ;;  %3142 = vmatprep.subr.bf16.mxu0 %v4518_v9  ;;  %v1359_v57 = vpop.permute.xlu1 %1358  ;;  %v1889_v60 = vpop.permute.xlu0 %1888 }
 0x31d   : > { %v1364_v59 = vsel %vm624_vm2, %v1359_v57, 0 }
 0x320   : > { %v3857_v58 = vpop.permute.xlu1 %2123 }
 0x321   : > { %3127 = vmatmul.mubr.msk.bf16.vlgmr.msra.gmra.mxu1 %vm624_vm2, %v3725_v22  ;;  %3133 = vmatmul.mubr.msk.bf16.vlgmr.msra.gmra.mxu0 %vm624_vm2, %v3687_v10  ;;  %v3899_v10 = vld [vmem:[%s4516_s8 + $0x8] sm:$0xff] }
 0x322   : > { %3137 = vmatpush3.bf16.xpose.msra.mxu1 %v1070_v51  ;;  %3143 = vmatpush3.bf16.xpose.msra.mxu0 %v1119_v29 }
 0x323   : > { %3138 = vmatprep.mubr.msk.bf16.mxu1 %vm3528_vm1, %v4518_v9  ;;  %3144 = vmatprep.mubr.msk.bf16.mxu0 %vm3528_vm1, %v4518_v9 }
 0x324   : > { %3148 = vmatprep.subr.bf16.mxu1 %v4518_v9  ;;  %3154 = vmatprep.subr.bf16.mxu0 %v4518_v9  ;;  %v3864_v61 = vpop.permute.xlu1 %2217 }
 0x328   : > { %v1936_v62 = vpop.permute.xlu1 %1935 }
 0x329   : > { %3139 = vmatmul.mubr.msk.bf16.vlgmr.msra.gmra.mxu1 %vm624_vm2, %v3719_v19  ;;  %3145 = vmatmul.mubr.msk.bf16.vlgmr.msra.gmra.mxu0 %vm624_vm2, %v3733_v24  ;;  %v3917_v19 = vld [vmem:[%s4515_s7 + $0x20] sm:$0xff] }
 0x32a   : > { %3149 = vmatpush3.bf16.xpose.msra.mxu1 %v1168_v53  ;;  %3155 = vmatpush3.bf16.xpose.msra.mxu0 %v1217_v54 }
 0x32b   : > { %3150 = vmatprep.mubr.msk.bf16.mxu1 %vm3528_vm1, %v4518_v9  ;;  %3156 = vmatprep.mubr.msk.bf16.mxu0 %vm3528_vm1, %v4518_v9 }
 0x32c   : > { %3160 = vmatprep.subr.bf16.mxu1 %v4518_v9  ;;  %3166 = vmatprep.subr.bf16.mxu0 %v4518_v9 }
 0x331   : > { %3151 = vmatmul.mubr.msk.bf16.vlgmr.msra.gmra.mxu1 %vm624_vm2, %v3727_v23  ;;  %3157 = vmatmul.mubr.msk.bf16.vlgmr.msra.gmra.mxu0 %vm624_vm2, %v3701_v13 }
 0x332   : > { %3161 = vmatpush3.bf16.xpose.msra.mxu1 %v1266_v39  ;;  %3167 = vmatpush3.bf16.xpose.msra.mxu0 %v1315_v48  ;;  %v3960_v39 = vld [vmem:[%s4515_s7 + $0x38] sm:$0xff] }
 0x333   : > { %3162 = vmatprep.mubr.msk.bf16.mxu1 %vm3528_vm1, %v4518_v9  ;;  %3168 = vmatprep.mubr.msk.bf16.mxu0 %vm3528_vm1, %v4518_v9 }
 0x334   : > { %3172 = vmatprep.subr.bf16.mxu1 %v4518_v9  ;;  %3178 = vmatprep.subr.bf16.mxu0 %v4518_v9 }
 0x339   : > { %3163 = vmatmul.mubr.msk.bf16.vlgmr.msra.gmra.mxu1 %vm624_vm2, %v3741_v27  ;;  %3169 = vmatmul.mubr.msk.bf16.vlgmr.msra.gmra.mxu0 %vm624_vm2, %v3747_v30 }
 0x33a   : > { %3173 = vmatpush3.bf16.xpose.msra.mxu1 %v1364_v59  ;;  %3179 = vmatpush3.bf16.msra.mxu0 %v1889_v60 }
 0x33b   : > { %3174 = vmatprep.mubr.msk.bf16.mxu1 %vm3528_vm1, %v4518_v9  ;;  %3184 = vmatprep.subr.bf16.mxu1 %v4518_v9 }
 0x33c   : > { %3180 = vmatprep.mubr.msk.bf16.mxu0 %vm3528_vm1, %v4518_v9  ;;  %3190 = vmatprep.subr.bf16.mxu0 %v4518_v9 }
 0x341   : > { %3175 = vmatmul.mubr.msk.bf16.vlgmr.msra.gmra.mxu1 %vm624_vm2, %v3757_v31 }
 0x342   : > { %3185 = vmatpush3.bf16.msra.mxu1 %v1936_v62  ;;  %3186 = vmatprep.mubr.msk.bf16.mxu1 %vm3528_vm1, %v4518_v9 }
 0x343   : > { %3196 = vmatprep.subr.bf16.mxu1 %v4518_v9 }
 0x367   : > { %v665_v49 = vpop.f32.mrf.mxu1 }
 0x368   : > { %v1407_v0 = vmul.f32 0.35355338, %v665_v49 }
 0x369   : > { %v3086_v1 = vpop.f32.mrf.mxu1 }
 0x36a   : > { %v1447_v3 = vadd.f32 %v3880_v63, %v1407_v0 }
 0x36b   : > { %v668_v4 = vpop.f32.mrf.mxu1 }
 0x36c   : > { %v1408_v6 = vmul.f32 0.35355338, %v668_v4  ;;  %v3894_v7 = vadd.f32 %v3885_v2, %v1447_v3 }
 0x36d   : > { %v3087_v8 = vpop.f32.mrf.mxu1 }
 0x36e   : > { %v1448_v11 = vadd.f32 %v3891_v5, %v1408_v6  ;;  %v1520_v12 = vsel %vm1519_vm3, %v3894_v7, -inf  ;;  %v1481_v8 = vld [vmem:[%s4516_s8 + $0x10] sm:$0xff] }
 0x36f   : > { %1521 = vmax.xlane.f32.xlu0 %v1520_v12 }
 0x370   : > { %v3905_v14 = vadd.f32 %v3899_v10, %v1448_v11 }
 0x372   : > { %v1523_v15 = vsel %vm1519_vm3, %v3905_v14, -inf }
 0x373   : > { %1524 = vmax.xlane.f32.xlu1 %v1523_v15  ;;  %v3976_v15 = vld [vmem:[%s4516_s8 + $0x18] sm:$0xff] }
 0x3c9   : > { %v714_v16 = vpop.f32.mrf.mxu1  ;;  %v763_v18 = vpop.f32.mrf.mxu0 }
 0x3ca   : > { %v1409_v22 = vmul.f32 0.35355338, %v714_v16  ;;  %v1411_v23 = vmul.f32 0.35355338, %v763_v18 }
 0x3cb   : > { %v3092_v24 = vpop.f32.mrf.mxu1  ;;  %v3098_v25 = vpop.f32.mrf.mxu0 }
 0x3cc   : > { %v1449_v26 = vadd.f32 %v3912_v17, %v1409_v22  ;;  %v1451_v32 = vadd.f32 %v3917_v19, %v1411_v23 }
 0x3cd   : > { %v717_v33 = vpop.f32.mrf.mxu1  ;;  %v766_v34 = vpop.f32.mrf.mxu0 }
 0x3ce   : > { %v1410_v36 = vmul.f32 0.35355338, %v717_v33  ;;  %v1412_v37 = vmul.f32 0.35355338, %v766_v34  ;;  %v3932_v40 = vadd.f32 %v3885_v2, %v1449_v26  ;;  %v3939_v21 = vadd.f32 %v3885_v2, %v1451_v32 }
 0x3cf   : > { %v3093_v41 = vpop.f32.mrf.mxu1  ;;  %v3099_v28 = vpop.f32.mrf.mxu0 }
 0x3d0   : > { %v1450_v42 = vadd.f32 %v3924_v20, %v1410_v36  ;;  %v1452_v43 = vadd.f32 %v3929_v35, %v1412_v37  ;;  %v1526_v44 = vsel %vm1519_vm3, %v3932_v40, -inf  ;;  %v1532_v54 = vsel %vm1519_vm3, %v3939_v21, -inf }
 0x3d1   : > { %1527 = vmax.xlane.f32.xlu0 %v1526_v44  ;;  %v812_v45 = vpop.f32.mrf.mxu1  ;;  %v861_v47 = vpop.f32.mrf.mxu0 }
 0x3d2   : > { %v1413_v50 = vmul.f32 0.35355338, %v812_v45  ;;  %v3947_v51 = vadd.f32 %v3899_v10, %v1452_v43  ;;  %v1415_v29 = vmul.f32 0.35355338, %v861_v47  ;;  %v3955_v56 = vadd.f32 %v3899_v10, %v1450_v42 }
 0x3d3   : > { %v3104_v38 = vpop.f32.mrf.mxu1  ;;  %v3110_v52 = vpop.f32.mrf.mxu0 }
 0x3d4   : > { %v1453_v53 = vadd.f32 %v3944_v46, %v1413_v50  ;;  %v1535_v55 = vsel %vm1519_vm3, %v3947_v51, -inf  ;;  %v1455_v62 = vadd.f32 %v3880_v63, %v1415_v29  ;;  %v1529_v4 = vsel %vm1519_vm3, %v3955_v56, -inf  ;;  %v4000_v52 = vpop.permute.xlu0 %2076 }
 0x3d5   : > { %v815_v57 = vpop.f32.mrf.mxu1  ;;  %1533 = vmax.xlane.f32.xlu0 %v1532_v54  ;;  %1536 = vmax.xlane.f32.xlu1 %v1535_v55  ;;  %v864_v48 = vpop.f32.mrf.mxu0 }
 0x3d6   : > { %v1414_v59 = vmul.f32 0.35355338, %v815_v57  ;;  %v1416_v60 = vmul.f32 0.35355338, %v864_v48  ;;  %v3968_v6 = vadd.f32 %v3885_v2, %v1453_v53  ;;  %v3981_v24 = vadd.f32 %v1481_v8, %v1455_v62 }
 0x3d7   : > { %v3105_v49 = vpop.f32.mrf.mxu1  ;;  %v3111_v0 = vpop.f32.mrf.mxu0 }
 0x3d8   : > { %v1454_v1 = vadd.f32 %v3960_v39, %v1414_v59  ;;  %v1456_v3 = vadd.f32 %v3891_v5, %v1416_v60  ;;  %v1538_v26 = vsel %vm1519_vm3, %v3968_v6, -inf  ;;  %v1544_v43 = vsel %vm1519_vm3, %v3981_v24, -inf }
 0x3d9   : > { %v910_v11 = vpop.f32.mrf.mxu1  ;;  %1530 = vmax.xlane.f32.xlu0 %v1529_v4  ;;  %v959_v12 = vpop.f32.mrf.mxu0 }
 0x3da   : > { %v1417_v16 = vmul.f32 0.35355338, %v910_v11  ;;  %v3979_v18 = vadd.f32 %v3899_v10, %v1454_v1  ;;  %v1419_v22 = vmul.f32 0.35355338, %v959_v12  ;;  %v3989_v33 = vadd.f32 %v3976_v15, %v1456_v3  ;;  %v4015_v4 = vpop.permute.xlu1 %2029 }
 0x3db   : > { %v3116_v23 = vpop.f32.mrf.mxu1  ;;  %v3122_v2 = vpop.f32.mrf.mxu0 }
 0x3dc   : > { %v1457_v25 = vadd.f32 %v3912_v17, %v1417_v16  ;;  %v1541_v32 = vsel %vm1519_vm3, %v3979_v18, -inf  ;;  %v1459_v41 = vadd.f32 %v3917_v19, %v1419_v22  ;;  %v1547_v47 = vsel %vm1519_vm3, %v3989_v33, -inf }
 0x3dd   : > { %v913_v34 = vpop.f32.mrf.mxu1  ;;  %1539 = vmax.xlane.f32.xlu0 %v1538_v26  ;;  %1542 = vmax.xlane.f32.xlu1 %v1541_v32  ;;  %v962_v10 = vpop.f32.mrf.mxu0 }
 0x3de   : > { %v1418_v36 = vmul.f32 0.35355338, %v913_v34  ;;  %v1420_v37 = vmul.f32 0.35355338, %v962_v10  ;;  %v3998_v50 = vadd.f32 %v1481_v8, %v1457_v25  ;;  %v4005_v59 = vadd.f32 %v1481_v8, %v1459_v41  ;;  %v4020_v25 = vpop.permute.xlu0 %2170 }
 0x3df   : > { %v3117_v28 = vpop.f32.mrf.mxu1  ;;  %v3123_v42 = vpop.f32.mrf.mxu0 }
 0x3e0   : > { %v1458_v44 = vadd.f32 %v3924_v20, %v1418_v36  ;;  %v1460_v45 = vadd.f32 %v3929_v35, %v1420_v37  ;;  %v1550_v62 = vsel %vm1519_vm3, %v3998_v50, -inf  ;;  %v1556_v2 = vsel %vm1519_vm3, %v4005_v59, -inf  ;;  %v4031_v36 = vld [vmem:[%s4516_s8 + $0x20] sm:$0xff]  ;;  %v4036_v28 = vld [vmem:[%s4516_s8 + $0x28] sm:$0xff] }
 0x3e1   : > { %v1008_v29 = vpop.f32.mrf.mxu1  ;;  %1545 = vmax.xlane.f32.xlu0 %v1544_v43  ;;  %1548 = vmax.xlane.f32.xlu1 %v1547_v47  ;;  %v1057_v38 = vpop.f32.mrf.mxu0 }
 0x3e2   : > { %v1421_v53 = vmul.f32 0.35355338, %v1008_v29  ;;  %v4003_v54 = vadd.f32 %v3976_v15, %v1458_v44  ;;  %v1423_v55 = vmul.f32 0.35355338, %v1057_v38  ;;  %v4013_v0 = vadd.f32 %v3976_v15, %v1460_v45  ;;  %v4044_v29 = vpop.permute.xlu1 %2311 }
 0x3e3   : > { %v3128_v57 = vpop.f32.mrf.mxu1  ;;  %v3134_v48 = vpop.f32.mrf.mxu0  ;;  %4520 = vst [vmem:[#allocation2_spill] sm:$0xff] %v4044_v29 }
 0x3e4   : > { %v1461_v60 = vadd.f32 %v3944_v46, %v1421_v53  ;;  %v1553_v49 = vsel %vm1519_vm3, %v4003_v54, -inf  ;;  %v1463_v16 = vadd.f32 %v3880_v63, %v1423_v55  ;;  %v1559_v34 = vsel %vm1519_vm3, %v4013_v0, -inf }
 0x3e5   : > { %v1011_v1 = vpop.f32.mrf.mxu1  ;;  %1551 = vmax.xlane.f32.xlu0 %v1550_v62  ;;  %1554 = vmax.xlane.f32.xlu1 %v1553_v49  ;;  %v1060_v3 = vpop.f32.mrf.mxu0 }
 0x3e6   : > { %v1422_v11 = vmul.f32 0.35355338, %v1011_v1  ;;  %v1424_v12 = vmul.f32 0.35355338, %v1060_v3  ;;  %v4026_v10 = vadd.f32 %v1481_v8, %v1461_v60  ;;  %v4042_v47 = vadd.f32 %v4031_v36, %v1463_v16  ;;  %v4054_v60 = vpop.permute.xlu0 %2264 }
 0x3e7   : > { %v3129_v22 = vpop.f32.mrf.mxu1  ;;  %v3135_v23 = vpop.f32.mrf.mxu0 }
 0x3e8   : > { %v1462_v26 = vadd.f32 %v3960_v39, %v1422_v11  ;;  %v1464_v32 = vadd.f32 %v3891_v5, %v1424_v12  ;;  %v1562_v53 = vsel %vm1519_vm3, %v4026_v10, -inf  ;;  %v1568_v12 = vsel %vm1519_vm3, %v4042_v47, -inf }
 0x3e9   : > { %v1106_v37 = vpop.f32.mrf.mxu1  ;;  %1557 = vmax.xlane.f32.xlu0 %v1556_v2  ;;  %1560 = vmax.xlane.f32.xlu1 %v1559_v34  ;;  %v1155_v41 = vpop.f32.mrf.mxu0 }
 0x3ea   : > { %v1425_v42 = vmul.f32 0.35355338, %v1106_v37  ;;  %v4039_v43 = vadd.f32 %v3976_v15, %v1462_v26  ;;  %v1427_v8 = vmul.f32 0.35355338, %v1155_v41  ;;  %v4052_v57 = vadd.f32 %v4036_v28, %v1464_v32  ;;  %v4066_v34 = vpop.permute.xlu1 %2358 }
 0x3eb   : > { %v3140_v44 = vpop.f32.mrf.mxu1  ;;  %v3146_v45 = vpop.f32.mrf.mxu0 }
 0x3ec   : > { %v1465_v38 = vadd.f32 %v3912_v17, %v1425_v42  ;;  %v1565_v55 = vsel %vm1519_vm3, %v4039_v43, -inf  ;;  %v1467_v1 = vadd.f32 %v3917_v19, %v1427_v8  ;;  %v1571_v23 = vsel %vm1519_vm3, %v4052_v57, -inf }
 0x3ed   : > { %v1109_v15 = vpop.f32.mrf.mxu1  ;;  %1563 = vmax.xlane.f32.xlu0 %v1562_v53  ;;  %1566 = vmax.xlane.f32.xlu1 %v1565_v55  ;;  %v1158_v48 = vpop.f32.mrf.mxu0 }
 0x3ee   : > { %v1426_v62 = vmul.f32 0.35355338, %v1109_v15  ;;  %v1428_v49 = vmul.f32 0.35355338, %v1158_v48  ;;  %v4064_v2 = vadd.f32 %v4031_v36, %v1465_v38  ;;  %v4072_v45 = vadd.f32 %v4031_v36, %v1467_v1  ;;  %v4074_v53 = vpop.permute.xlu0 %1982 }
 0x3ef   : > { %v3141_v3 = vpop.f32.mrf.mxu1  ;;  %v3147_v11 = vpop.f32.mrf.mxu0 }
 0x3f0   : > { %v1466_v16 = vadd.f32 %v3924_v20, %v1426_v62  ;;  %v1468_v22 = vadd.f32 %v3929_v35, %v1428_v49  ;;  %v1574_v55 = vsel %vm1519_vm3, %v4064_v2, -inf }
 0x3f1   : > { %v1204_v26 = vpop.f32.mrf.mxu1  ;;  %1569 = vmax.xlane.f32.xlu0 %v1568_v12  ;;  %1572 = vmax.xlane.f32.xlu1 %v1571_v23  ;;  %v1253_v32 = vpop.f32.mrf.mxu0  ;;  %v1580_v23 = vsel %vm1519_vm3, %v4072_v45, -inf }
 0x3f2   : > { %v1429_v37 = vmul.f32 0.35355338, %v1204_v26  ;;  %v4069_v41 = vadd.f32 %v4036_v28, %v1466_v16  ;;  %v1431_v42 = vmul.f32 0.35355338, %v1253_v32  ;;  %v4082_v48 = vadd.f32 %v4036_v28, %v1468_v22  ;;  %v4087_v26 = vpop.permute.xlu1 %2405 }
 0x3f3   : > { %v3152_v8 = vpop.f32.mrf.mxu1  ;;  %v3158_v44 = vpop.f32.mrf.mxu0  ;;  %4521 = vst [vmem:[#allocation3_spill] sm:$0xff] %v4087_v26 }
 0x3f4   : > { %v1469_v38 = vadd.f32 %v3944_v46, %v1429_v37  ;;  %v1577_v15 = vsel %vm1519_vm3, %v4069_v41, -inf  ;;  %v1471_v11 = vadd.f32 %v3880_v63, %v1431_v42  ;;  %v1583_v8 = vsel %vm1519_vm3, %v4082_v48, -inf }
 0x3f5   : > { %v1207_v62 = vpop.f32.mrf.mxu1  ;;  %1575 = vmax.xlane.f32.xlu0 %v1574_v55  ;;  %1578 = vmax.xlane.f32.xlu1 %v1577_v15  ;;  %v1256_v49 = vpop.f32.mrf.mxu0  ;;  %v1485_v15 = vld [vmem:[%s4516_s8 + $0x30] sm:$0xff] }
 0x3f6   : > { %v1430_v3 = vmul.f32 0.35355338, %v1207_v62  ;;  %v1432_v1 = vmul.f32 0.35355338, %v1256_v49  ;;  %v4094_v44 = vadd.f32 %v4031_v36, %v1469_v38 }
 0x3f7   : > { %v3153_v12 = vpop.f32.mrf.mxu1  ;;  %v3159_v16 = vpop.f32.mrf.mxu0 }
 0x3f8   : > { %v1470_v32 = vadd.f32 %v3960_v39, %v1430_v3  ;;  %v1472_v22 = vadd.f32 %v3891_v5, %v1432_v1  ;;  %v1522_v37 = vpop.xlane.xlu0 %1521  ;;  %v1486_v5 = vld [vmem:[%s4516_s8 + $0x38] sm:$0xff]  ;;  %v4110_v12 = vadd.f32 %v1485_v15, %v1471_v11 }
 0x3f9   : > { %v1616_v63 = vsub.f32 %v3894_v7, %v1522_v37  ;;  %v1302_v42 = vpop.f32.mrf.mxu1  ;;  %1581 = vmax.xlane.f32.xlu0 %v1580_v23  ;;  %1584 = vmax.xlane.f32.xlu1 %v1583_v8  ;;  %v1351_v55 = vpop.f32.mrf.mxu0  ;;  %v1586_v7 = vsel %vm1519_vm3, %v4094_v44, -inf }
 0x3fa   : > { %v4104_v62 = vadd.f32 %v4036_v28, %v1470_v32  ;;  %v4112_v16 = vadd.f32 %v1486_v5, %v1472_v22  ;;  %v1433_v22 = vmul.f32 0.35355338, %v1302_v42 }
 0x3fb   : > { %v1648_v49 = vmul.f32 1.442695, %v1616_v63  ;;  %v3164_v36 = vpop.f32.mrf.mxu1  ;;  %v3170_v38 = vpop.f32.mrf.mxu0 }
 0x3fc   : > { %v1525_v3 = vpop.xlane.xlu1 %1524  ;;  %v1589_v1 = vsel %vm1519_vm3, %v4104_v62, -inf  ;;  %v1592_v36 = vsel %vm1519_vm3, %v4110_v12, -inf  ;;  %v1595_v38 = vsel %vm1519_vm3, %v4112_v16, -inf }
 0x3fd   : > { %3388 = vpow2.f32 %v1648_v49  ;;  %v1617_v23 = vsub.f32 %v3905_v14, %v1525_v3  ;;  %v1305_v37 = vpop.f32.mrf.mxu1  ;;  %1587 = vmax.xlane.f32.xlu0 %v1586_v7  ;;  %1590 = vmax.xlane.f32.xlu1 %v1589_v1  ;;  %v1354_v28 = vpop.f32.mrf.mxu0  ;;  %v1473_v3 = vadd.f32 %v3912_v17, %v1433_v22  ;;  %v1435_v7 = vmul.f32 0.35355338, %v1351_v55 }
 0x3fe   : > { %v1434_v1 = vmul.f32 0.35355338, %v1305_v37  ;;  %v1436_v9 = vmul.f32 0.35355338, %v1354_v28 }
 0x3ff   : > { %v1650_v32 = vmul.f32 1.442695, %v1617_v23  ;;  %v3165_v8 = vpop.f32.mrf.mxu1  ;;  %v3171_v63 = vpop.f32.mrf.mxu0  ;;  %v4123_v26 = vadd.f32 %v1485_v15, %v1473_v3 }
 0x400   : > { %v1475_v63 = vadd.f32 %v3917_v19, %v1435_v7  ;;  %v1476_v17 = vadd.f32 %v3929_v35, %v1436_v9 }
 0x401   : > { %3390 = vpow2.f32 %v1650_v32  ;;  %v1400_v11 = vpop.f32.mrf.mxu1  ;;  %1593 = vmax.xlane.f32.xlu0 %v1592_v36  ;;  %1596 = vmax.xlane.f32.xlu1 %v1595_v38  ;;  %v1474_v32 = vadd.f32 %v3924_v20, %v1434_v1  ;;  %v1598_v55 = vsel %vm1519_vm3, %v4123_v26, -inf }
 0x402   : > { %v1437_v29 = vmul.f32 0.35355338, %v1400_v11  ;;  %v4133_v37 = vadd.f32 %v1485_v15, %v1475_v63  ;;  %v4145_v22 = vadd.f32 %v1486_v5, %v1476_v17 }
 0x403   : > { %v3176_v49 = vpop.f32.mrf.mxu1  ;;  %v4138_v38 = vadd.f32 %v1486_v5, %v1474_v32 }
 0x404   : > { %v1477_v19 = vadd.f32 %v3944_v46, %v1437_v29  ;;  %v1604_v11 = vsel %vm1519_vm3, %v4133_v37, -inf  ;;  %v1607_v46 = vsel %vm1519_vm3, %v4145_v22, -inf }
 0x405   : > { %v1403_v14 = vpop.f32.mrf.mxu1  ;;  %v1601_v35 = vsel %vm1519_vm3, %v4138_v38, -inf }
 0x406   : > { %v1438_v28 = vmul.f32 0.35355338, %v1403_v14  ;;  %v4147_v49 = vadd.f32 %v1485_v15, %v1477_v19 }
 0x407   : > { %v3177_v23 = vpop.f32.mrf.mxu1 }
 0x408   : > { %v1478_v9 = vadd.f32 %v3960_v39, %v1438_v28  ;;  %v1610_v29 = vsel %vm1519_vm3, %v4147_v49, -inf }
 0x40a   : > { %v4120_v8 = vpop.eup %3388  ;;  %v4153_v14 = vadd.f32 %v1486_v5, %v1478_v9 }
 0x40b   : > { %v1712_v42 = vsel %vm1519_vm3, %v4120_v8, 0.0 }
 0x40c   : > { %1713 = vadd.xlane.f32.xlu0 %v1712_v42  ;;  %v1613_v39 = vsel %vm1519_vm3, %v4153_v14, -inf }
 0x40e   : > { %v4128_v36 = vpop.eup %3390 }
 0x40f   : > { %v1715_v20 = vsel %vm1519_vm3, %v4128_v36, 0.0 }
 0x410   : > { %1716 = vadd.xlane.f32.xlu1 %v1715_v20  ;;  %1599 = vmax.xlane.f32.xlu0 %v1598_v55 }
 0x414   : > { %1602 = vmax.xlane.f32.xlu1 %v1601_v35  ;;  %1605 = vmax.xlane.f32.xlu0 %v1604_v11 }
 0x418   : > { %1608 = vmax.xlane.f32.xlu1 %v1607_v46  ;;  %1611 = vmax.xlane.f32.xlu0 %v1610_v29 }
 0x41c   : > { %1614 = vmax.xlane.f32.xlu1 %v1613_v39 }
 0x42d   : > { %2499 = vrot.lane.b32.xlu1 %v3741_v27, %s3530_s10 }
 0x42e   : > { %2452 = vrot.lane.b32.xlu0 %v3701_v13, %s3530_s10 }
 0x45a   : > { %v1528_v15 = vpop.xlane.xlu0 %1527 }
 0x45b   : > { %v1618_v3 = vsub.f32 %v3932_v40, %v1528_v15 }
 0x45d   : > { %v1652_v7 = vmul.f32 1.442695, %v1618_v3 }
 0x45e   : > { %v1537_v1 = vpop.xlane.xlu1 %1536  ;;  %v1534_v23 = vpop.xlane.xlu0 %1533 }
 0x45f   : > { %3392 = vpow2.f32 %v1652_v7  ;;  %v1620_v5 = vsub.f32 %v3939_v21, %v1534_v23  ;;  %v1621_v63 = vsub.f32 %v3947_v51, %v1537_v1 }
 0x461   : > { %v1656_v32 = vmul.f32 1.442695, %v1620_v5  ;;  %v1658_v27 = vmul.f32 1.442695, %v1621_v63 }
 0x462   : > { %v1531_v42 = vpop.xlane.xlu0 %1530 }
 0x463   : > { %v1619_v17 = vsub.f32 %v3955_v56, %v1531_v42  ;;  %3394 = vpow2.f32 %v1656_v32 }
 0x465   : > { %v1654_v55 = vmul.f32 1.442695, %v1619_v17 }
 0x466   : > { %v1543_v19 = vpop.xlane.xlu1 %1542  ;;  %v1540_v13 = vpop.xlane.xlu0 %1539 }
 0x467   : > { %3396 = vpow2.f32 %v1654_v55  ;;  %v1623_v40 = vsub.f32 %v3979_v18, %v1543_v19  ;;  %v1622_v28 = vsub.f32 %v3968_v6, %v1540_v13 }
 0x468   : > { %3398 = vpow2.f32 %v1658_v27 }
 0x469   : > { %v1662_v20 = vmul.f32 1.442695, %v1623_v40  ;;  %v1660_v11 = vmul.f32 1.442695, %v1622_v28 }
 0x46a   : > { %v1549_v21 = vpop.xlane.xlu1 %1548  ;;  %v1546_v9 = vpop.xlane.xlu0 %1545 }
 0x46b   : > { %v1625_v51 = vsub.f32 %v3989_v33, %v1549_v21  ;;  %v1624_v35 = vsub.f32 %v3981_v24, %v1546_v9  ;;  %3400 = vpow2.f32 %v1660_v11 }
 0x46c   : > { %v4169_v56 = vpop.eup %3392  ;;  %3402 = vpow2.f32 %v1662_v20 }
 0x46d   : > { %v1666_v46 = vmul.f32 1.442695, %v1625_v51  ;;  %v1664_v29 = vmul.f32 1.442695, %v1624_v35  ;;  %v1718_v18 = vsel %vm1519_vm3, %v4169_v56, 0.0 }
 0x46e   : > { %v1555_v39 = vpop.xlane.xlu1 %1554  ;;  %1719 = vadd.xlane.f32.xlu0 %v1718_v18  ;;  %v1552_v6 = vpop.xlane.xlu0 %1551 }
 0x46f   : > { %v1627_v15 = vsub.f32 %v4003_v54, %v1555_v39  ;;  %v1626_v3 = vsub.f32 %v3998_v50, %v1552_v6  ;;  %3404 = vpow2.f32 %v1664_v29 }
 0x470   : > { %v4175_v33 = vpop.eup %3394  ;;  %3406 = vpow2.f32 %v1666_v46 }
 0x471   : > { %v1670_v24 = vmul.f32 1.442695, %v1627_v15  ;;  %v1668_v7 = vmul.f32 1.442695, %v1626_v3  ;;  %v1724_v23 = vsel %vm1519_vm3, %v4175_v33, 0.0 }
 0x472   : > { %v1561_v1 = vpop.xlane.xlu1 %1560  ;;  %v1558_v5 = vpop.xlane.xlu0 %1557  ;;  %1725 = vadd.xlane.f32.xlu0 %v1724_v23 }
 0x473   : > { %v1629_v63 = vsub.f32 %v4013_v0, %v1561_v1  ;;  %v1628_v32 = vsub.f32 %v4005_v59, %v1558_v5  ;;  %3408 = vpow2.f32 %v1668_v7 }
 0x474   : > { %v4181_v42 = vpop.eup %3396  ;;  %3410 = vpow2.f32 %v1670_v24 }
 0x475   : > { %v1674_v50 = vmul.f32 1.442695, %v1629_v63  ;;  %v1672_v54 = vmul.f32 1.442695, %v1628_v32  ;;  %v1721_v17 = vsel %vm1519_vm3, %v4181_v42, 0.0  ;;  %v4185_v27 = vpop.eup %3398 }
 0x476   : > { %v1567_v55 = vpop.xlane.xlu1 %1566  ;;  %1722 = vadd.xlane.f32.xlu1 %v1721_v17  ;;  %v1564_v19 = vpop.xlane.xlu0 %1563  ;;  %v1727_v40 = vsel %vm1519_vm3, %v4185_v27, 0.0 }
 0x477   : > { %v1630_v13 = vsub.f32 %v4026_v10, %v1564_v19  ;;  %3412 = vpow2.f32 %v1672_v54  ;;  %v1631_v20 = vsub.f32 %v4039_v43, %v1567_v55 }
 0x478   : > { %v4188_v0 = vpop.eup %3400  ;;  %3414 = vpow2.f32 %v1674_v50 }
 0x479   : > { %v1676_v59 = vmul.f32 1.442695, %v1630_v13  ;;  %v4192_v28 = vpop.eup %3402  ;;  %v1730_v21 = vsel %vm1519_vm3, %v4188_v0, 0.0  ;;  %v1678_v39 = vmul.f32 1.442695, %v1631_v20 }
 0x47a   : > { %v1573_v11 = vpop.xlane.xlu1 %1572  ;;  %1728 = vadd.xlane.f32.xlu1 %v1727_v40  ;;  %v1570_v9 = vpop.xlane.xlu0 %1569  ;;  %1731 = vadd.xlane.f32.xlu0 %v1730_v21  ;;  %v1733_v18 = vsel %vm1519_vm3, %v4192_v28, 0.0 }
 0x47b   : > { %v1633_v10 = vsub.f32 %v4052_v57, %v1573_v11  ;;  %v1632_v51 = vsub.f32 %v4042_v47, %v1570_v9  ;;  %3416 = vpow2.f32 %v1676_v59 }
 0x47c   : > { %v4199_v35 = vpop.eup %3404 }
 0x47d   : > { %v1682_v46 = vmul.f32 1.442695, %v1633_v10  ;;  %v1680_v29 = vmul.f32 1.442695, %v1632_v51  ;;  %v4203_v43 = vpop.eup %3406  ;;  %v1736_v15 = vsel %vm1519_vm3, %v4199_v35, 0.0 }
 0x47e   : > { %v1579_v6 = vpop.xlane.xlu1 %1578  ;;  %1734 = vadd.xlane.f32.xlu1 %v1733_v18  ;;  %v1576_v57 = vpop.xlane.xlu0 %1575  ;;  %1737 = vadd.xlane.f32.xlu0 %v1736_v15  ;;  %v1739_v7 = vsel %vm1519_vm3, %v4203_v43, 0.0 }
 0x47f   : > { %3418 = vpow2.f32 %v1682_v46  ;;  %v1634_v47 = vsub.f32 %v4064_v2, %v1576_v57  ;;  %v1635_v23 = vsub.f32 %v4069_v41, %v1579_v6 }
 0x480   : > { %3420 = vpow2.f32 %v1680_v29  ;;  %v4208_v3 = vpop.eup %3408 }
 0x481   : > { %v1684_v24 = vmul.f32 1.442695, %v1634_v47  ;;  %v4212_v1 = vpop.eup %3410  ;;  %3422 = vpow2.f32 %v1678_v39  ;;  %v1742_v63 = vsel %vm1519_vm3, %v4208_v3, 0.0  ;;  %v1686_v13 = vmul.f32 1.442695, %v1635_v23 }
 0x482   : > { %v1585_v5 = vpop.xlane.xlu1 %1584  ;;  %1740 = vadd.xlane.f32.xlu1 %v1739_v7  ;;  %v1582_v32 = vpop.xlane.xlu0 %1581  ;;  %1743 = vadd.xlane.f32.xlu0 %v1742_v63  ;;  %v1745_v19 = vsel %vm1519_vm3, %v4212_v1, 0.0 }
 0x483   : > { %v1637_v2 = vsub.f32 %v4082_v48, %v1585_v5  ;;  %v1636_v50 = vsub.f32 %v4072_v45, %v1582_v32  ;;  %3424 = vpow2.f32 %v1684_v24 }
 0x484   : > { %v4219_v54 = vpop.eup %3412 }
 0x485   : > { %v1690_v17 = vmul.f32 1.442695, %v1637_v2  ;;  %v1688_v55 = vmul.f32 1.442695, %v1636_v50  ;;  %v4223_v41 = vpop.eup %3414  ;;  %v1748_v40 = vsel %vm1519_vm3, %v4219_v54, 0.0 }
 0x486   : > { %v1591_v59 = vpop.xlane.xlu1 %1590  ;;  %1746 = vadd.xlane.f32.xlu1 %v1745_v19  ;;  %v1588_v48 = vpop.xlane.xlu0 %1587  ;;  %1749 = vadd.xlane.f32.xlu0 %v1748_v40  ;;  %v1751_v21 = vsel %vm1519_vm3, %v4223_v41, 0.0 }
 0x487   : > { %3426 = vpow2.f32 %v1690_v17  ;;  %v1638_v45 = vsub.f32 %v4094_v44, %v1588_v48  ;;  %v1639_v9 = vsub.f32 %v4104_v62, %v1591_v59 }
 0x488   : > { %3428 = vpow2.f32 %v1688_v55  ;;  %v4228_v20 = vpop.eup %3416 }
 0x489   : > { %v1692_v11 = vmul.f32 1.442695, %v1638_v45  ;;  %3430 = vpow2.f32 %v1686_v13  ;;  %v1754_v51 = vsel %vm1519_vm3, %v4228_v20, 0.0  ;;  %v1694_v57 = vmul.f32 1.442695, %v1639_v9 }
 0x48a   : > { %v1597_v10 = vpop.xlane.xlu1 %1596  ;;  %1752 = vadd.xlane.f32.xlu1 %v1751_v21  ;;  %v1594_v46 = vpop.xlane.xlu0 %1593  ;;  %1755 = vadd.xlane.f32.xlu0 %v1754_v51 }
 0x48b   : > { %v1641_v29 = vsub.f32 %v4112_v16, %v1597_v10  ;;  %v1640_v44 = vsub.f32 %v4110_v12, %v1594_v46  ;;  %3432 = vpow2.f32 %v1692_v11 }
 0x48c   : > { %v4237_v18 = vpop.eup %3418 }
 0x48d   : > { %v4239_v39 = vpop.eup %3420  ;;  %v1698_v6 = vmul.f32 1.442695, %v1641_v29  ;;  %v1696_v15 = vmul.f32 1.442695, %v1640_v44  ;;  %v1763_v62 = vsel %vm1519_vm3, %v4237_v18, 0.0 }
 0x48e   : > { %v1760_v47 = vsel %vm1519_vm3, %v4239_v39, 0.0  ;;  %v4245_v24 = vpop.eup %3422  ;;  %1764 = vadd.xlane.f32.xlu0 %v1763_v62 }
 0x48f   : > { %3434 = vpow2.f32 %v1698_v6  ;;  %1761 = vadd.xlane.f32.xlu1 %v1760_v47  ;;  %v1757_v16 = vsel %vm1519_vm3, %v4245_v24, 0.0 }
 0x490   : > { %3436 = vpow2.f32 %v1696_v15  ;;  %v4247_v12 = vpop.eup %3424 }
 0x491   : > { %3438 = vpow2.f32 %v1694_v57  ;;  %v1766_v7 = vsel %vm1519_vm3, %v4247_v12, 0.0 }
 0x492   : > { %1767 = vadd.xlane.f32.xlu0 %v1766_v7 }
 0x493   : > { %1758 = vadd.xlane.f32.xlu1 %v1757_v16 }
 0x494   : > { %v4253_v23 = vpop.eup %3426 }
 0x495   : > { %v4255_v5 = vpop.eup %3428  ;;  %v1714_v63 = vpop.xlane.xlu0 %1713  ;;  %v1775_v32 = vsel %vm1519_vm3, %v4253_v23, 0.0 }
 0x496   : > { %v1772_v2 = vsel %vm1519_vm3, %v4255_v5, 0.0  ;;  %v4261_v50 = vpop.eup %3430  ;;  %1776 = vadd.xlane.f32.xlu0 %v1775_v32  ;;  %3440 = vrcp.f32 %v1714_v63 }
 0x497   : > { %1773 = vadd.xlane.f32.xlu1 %v1772_v2  ;;  %v1769_v59 = vsel %vm1519_vm3, %v4261_v50, 0.0 }
 0x498   : > { %v4263_v17 = vpop.eup %3432 }
 0x499   : > { %v1717_v55 = vpop.xlane.xlu1 %1716  ;;  %v1600_v19 = vpop.xlane.xlu0 %1599  ;;  %v1778_v40 = vsel %vm1519_vm3, %v4263_v17, 0.0 }
 0x49a   : > { %3442 = vrcp.f32 %v1717_v55  ;;  %v1642_v13 = vsub.f32 %v4123_v26, %v1600_v19  ;;  %1779 = vadd.xlane.f32.xlu0 %v1778_v40 }
 0x49b   : > { %1770 = vadd.xlane.f32.xlu1 %v1769_v59 }
 0x49c   : > { %v4270_v48 = vpop.eup %3434  ;;  %v1700_v45 = vmul.f32 1.442695, %v1642_v13 }
 0x49d   : > { %v4272_v11 = vpop.eup %3436  ;;  %v1603_v21 = vpop.xlane.xlu1 %1602  ;;  %v1787_v10 = vsel %vm1519_vm3, %v4270_v48, 0.0 }
 0x49e   : > { %v1606_v9 = vpop.xlane.xlu0 %1605  ;;  %3444 = vpow2.f32 %v1700_v45  ;;  %v1643_v26 = vsub.f32 %v4138_v38, %v1603_v21  ;;  %v1784_v46 = vsel %vm1519_vm3, %v4272_v11, 0.0  ;;  %v4280_v29 = vpop.eup %3438  ;;  %1788 = vadd.xlane.f32.xlu0 %v1787_v10 }
 0x49f   : > { %v1644_v51 = vsub.f32 %v4133_v37, %v1606_v9  ;;  %1785 = vadd.xlane.f32.xlu1 %v1784_v46  ;;  %v1781_v38 = vsel %vm1519_vm3, %v4280_v29, 0.0 }
 0x4a0   : > { %v1702_v6 = vmul.f32 1.442695, %v1643_v26 }
 0x4a1   : > { %v1704_v44 = vmul.f32 1.442695, %v1644_v51  ;;  %v1609_v15 = vpop.xlane.xlu1 %1608 }
 0x4a2   : > { %v1612_v62 = vpop.xlane.xlu0 %1611  ;;  %v1645_v57 = vsub.f32 %v4145_v22, %v1609_v15 }
 0x4a3   : > { %v1646_v47 = vsub.f32 %v4147_v49, %v1612_v62  ;;  %3446 = vpow2.f32 %v1704_v44  ;;  %1782 = vadd.xlane.f32.xlu1 %v1781_v38  ;;  %v3441_v7 = vpop.eup %3440 }
 0x4a4   : > { %v1706_v37 = vmul.f32 1.442695, %v1645_v57  ;;  %3448 = vpow2.f32 %v1702_v6  ;;  %v1840_v22 = vmul.f32 %v3441_v7, %v4120_v8 }
 0x4a5   : > { %v1708_v16 = vmul.f32 1.442695, %v1646_v47  ;;  %v1615_v63 = vpop.xlane.xlu1 %1614 }
 0x4a6   : > { %3450 = vpow2.f32 %v1706_v37  ;;  %v1647_v32 = vsub.f32 %v4153_v14, %v1615_v63  ;;  %v4522_v14 = vmov 0.0   ;;  %v4322_v46 = vpop.permute.xlu0 %2452 }
 0x4a7   : > { %v3443_v2 = vpop.eup %3442  ;;  %3452 = vpow2.f32 %v1708_v16 }
 0x4a8   : > { %v1710_v55 = vmul.f32 1.442695, %v1647_v32  ;;  %v1841_v49 = vmul.f32 %v3443_v2, %v4128_v36 }
 0x4a9   : > { %v4324_v6 = vpop.permute.xlu1 %2499 }
 0x4aa   : > { %3454 = vpow2.f32 %v1710_v55  ;;  %v1872_v19 = vpack.c.bf16 %v1841_v49, %v1840_v22 }
 0x4ab   : > { %v4289_v13 = vpop.eup %3444 }
 0x4ac   : > { %3181 = vmatmul.mubr.msk.bf16.vlgmr.msra.gmra.mxu0 %vm1519_vm3, %v1872_v19  ;;  %v1790_v59 = vsel %vm1519_vm3, %v4289_v13, 0.0 }
 0x4ad   : > { %3191 = vmatpush3.bf16.msra.mxu0 %v4074_v53  ;;  %1791 = vadd.xlane.f32.xlu0 %v1790_v59 }
 0x4ae   : > { %3192 = vmatprep.mubr.msk.bf16.mxu0 %vm3528_vm1, %v4522_v14  ;;  %3202 = vmatprep.subr.bf16.mxu0 %v4522_v14 }
 0x4b0   : > { %v4298_v8 = vpop.eup %3446 }
 0x4b1   : > { %v1796_v36 = vsel %vm1519_vm3, %v4298_v8, 0.0  ;;  %v4302_v40 = vpop.eup %3448 }
 0x4b2   : > { %1797 = vadd.xlane.f32.xlu1 %v1796_v36  ;;  %v1793_v9 = vsel %vm1519_vm3, %v4302_v40, 0.0 }
 0x4b3   : > { %v4304_v45 = vpop.eup %3450 }
 0x4b4   : > { %v1799_v21 = vsel %vm1519_vm3, %v4304_v45, 0.0  ;;  %v4308_v53 = vpop.eup %3452 }
 0x4b5   : > { %1800 = vadd.xlane.f32.xlu0 %v1799_v21  ;;  %v1802_v51 = vsel %vm1519_vm3, %v4308_v53, 0.0 }
 0x4b6   : > { %1794 = vadd.xlane.f32.xlu1 %v1793_v9 }
 0x4b7   : > { %v4312_v10 = vpop.eup %3454 }
 0x4b8   : > { %v1805_v26 = vsel %vm1519_vm3, %v4312_v10, 0.0 }
 0x4b9   : > { %1803 = vadd.xlane.f32.xlu0 %v1802_v51 }
 0x4ba   : > { %1806 = vadd.xlane.f32.xlu1 %v1805_v26 }
 0x4cb   : > { %2593 = vrot.lane.b32.xlu1 %v3757_v31, %s3530_s10 }
 0x4cf   : > { %2546 = vrot.lane.b32.xlu0 %v3747_v30, %s3530_s10  ;;  %s3531_s10 = smov 8  }
 0x4f7   : > { %v1720_v44 = vpop.xlane.xlu0 %1719 }
 0x4f8   : > { %3456 = vrcp.f32 %v1720_v44 }
 0x4fb   : > { %v1726_v15 = vpop.xlane.xlu0 %1725 }
 0x4ff   : > { %v1723_v62 = vpop.xlane.xlu1 %1722 }
 0x500   : > { %3458 = vrcp.f32 %v1723_v62 }
 0x501   : > { %3460 = vrcp.f32 %v1726_v15 }
 0x503   : > { %v1729_v57 = vpop.xlane.xlu1 %1728  ;;  %v1732_v47 = vpop.xlane.xlu0 %1731 }
 0x504   : > { %3462 = vrcp.f32 %v1729_v57 }
 0x505   : > { %3464 = vrcp.f32 %v1732_v47  ;;  %v3457_v37 = vpop.eup %3456 }
 0x506   : > { %v1842_v63 = vmul.f32 %v3457_v37, %v4169_v56 }
 0x507   : > { %v1735_v38 = vpop.xlane.xlu1 %1734  ;;  %v1738_v31 = vpop.xlane.xlu0 %1737 }
 0x508   : > { %3466 = vrcp.f32 %v1735_v38 }
 0x509   : > { %3468 = vrcp.f32 %v1738_v31 }
 0x50b   : > { %v1741_v30 = vpop.xlane.xlu1 %1740  ;;  %v1744_v16 = vpop.xlane.xlu0 %1743 }
 0x50c   : > { %3470 = vrcp.f32 %v1741_v30 }
 0x50d   : > { %v3459_v7 = vpop.eup %3458  ;;  %3472 = vrcp.f32 %v1744_v16 }
 0x50e   : > { %v1843_v32 = vmul.f32 %v3459_v7, %v4181_v42  ;;  %v3461_v2 = vpop.eup %3460 }
 0x50f   : > { %v1747_v55 = vpop.xlane.xlu1 %1746  ;;  %v1750_v22 = vpop.xlane.xlu0 %1749  ;;  %v1844_v59 = vmul.f32 %v3461_v2, %v4175_v33 }
 0x510   : > { %3474 = vrcp.f32 %v1747_v55  ;;  %v1873_v49 = vpack.c.bf16 %v1843_v32, %v1842_v63 }
 0x511   : > { %v3463_v19 = vpop.eup %3462  ;;  %3476 = vrcp.f32 %v1750_v22 }
 0x512   : > { %3187 = vmatmul.mubr.msk.bf16.vlgmr.msra.gmra.mxu1 %vm1519_vm3, %v1873_v49  ;;  %v1845_v36 = vmul.f32 %v3463_v19, %v4185_v27  ;;  %v3465_v21 = vpop.eup %3464 }
 0x513   : > { %3197 = vmatpush3.bf16.msra.mxu1 %v4015_v4  ;;  %v1753_v9 = vpop.xlane.xlu1 %1752  ;;  %3198 = vmatprep.mubr.msk.bf16.mxu1 %vm3528_vm1, %v4522_v14  ;;  %v1756_v56 = vpop.xlane.xlu0 %1755  ;;  %v1846_v51 = vmul.f32 %v3465_v21, %v4188_v0 }
 0x514   : > { %3478 = vrcp.f32 %v1753_v9  ;;  %v1874_v42 = vpack.c.bf16 %v1845_v36, %v1844_v59  ;;  %3208 = vmatprep.subr.bf16.mxu1 %v4522_v14 }
 0x515   : > { %v3467_v26 = vpop.eup %3466 }
 0x516   : > { %3193 = vmatmul.mubr.msk.bf16.vlgmr.msra.gmra.mxu0 %vm1519_vm3, %v1874_v42  ;;  %v1847_v33 = vmul.f32 %v3467_v26, %v4192_v28  ;;  %v3469_v27 = vpop.eup %3468 }
 0x517   : > { %3203 = vmatpush3.bf16.msra.mxu0 %v4000_v52  ;;  %3204 = vmatprep.mubr.msk.bf16.mxu0 %vm3528_vm1, %v4522_v14  ;;  %v1765_v44 = vpop.xlane.xlu0 %1764  ;;  %v1848_v0 = vmul.f32 %v3469_v27, %v4199_v35 }
 0x518   : > { %v1762_v4 = vpop.xlane.xlu1 %1761  ;;  %v1875_v15 = vpack.c.bf16 %v1847_v33, %v1846_v51  ;;  %3214 = vmatprep.subr.bf16.mxu0 %v4522_v14 }
 0x519   : > { %v3471_v62 = vpop.eup %3470  ;;  %3480 = vrcp.f32 %v1762_v4 }
 0x51a   : > { %3482 = vrcp.f32 %v1765_v44  ;;  %3199 = vmatmul.mubr.msk.bf16.vlgmr.msra.gmra.mxu1 %vm1519_vm3, %v1875_v15  ;;  %v1849_v28 = vmul.f32 %v3471_v62, %v4203_v43  ;;  %v3473_v57 = vpop.eup %3472  ;;  %v4524_v44 = vld [vmem:[#allocation3_spill] sm:$0xff] }
 0x51b   : > { %3484 = vrcp.f32 %v1756_v56  ;;  %3209 = vmatpush3.bf16.msra.mxu1 %v3857_v58  ;;  %3210 = vmatprep.mubr.msk.bf16.mxu1 %vm3528_vm1, %v4522_v14  ;;  %v1768_v47 = vpop.xlane.xlu0 %1767  ;;  %v1850_v35 = vmul.f32 %v3473_v57, %v4208_v3 }
 0x51c   : > { %v1759_v52 = vpop.xlane.xlu1 %1758  ;;  %v1876_v38 = vpack.c.bf16 %v1849_v28, %v1848_v0  ;;  %3220 = vmatprep.subr.bf16.mxu1 %v4522_v14 }
 0x51d   : > { %v3475_v31 = vpop.eup %3474  ;;  %3486 = vrcp.f32 %v1759_v52 }
 0x51e   : > { %3205 = vmatmul.mubr.msk.bf16.vlgmr.msra.gmra.mxu0 %vm1519_vm3, %v1876_v38  ;;  %v1851_v43 = vmul.f32 %v3475_v31, %v4212_v1  ;;  %v3477_v37 = vpop.eup %3476 }
 0x51f   : > { %3215 = vmatpush3.bf16.msra.mxu0 %v4020_v25  ;;  %3216 = vmatprep.mubr.msk.bf16.mxu0 %vm3528_vm1, %v4522_v14  ;;  %v1777_v30 = vpop.xlane.xlu0 %1776  ;;  %v1852_v3 = vmul.f32 %v3477_v37, %v4219_v54 }
 0x520   : > { %v1774_v58 = vpop.xlane.xlu1 %1773  ;;  %v1877_v16 = vpack.c.bf16 %v1851_v43, %v1850_v35  ;;  %3226 = vmatprep.subr.bf16.mxu0 %v4522_v14 }
 0x521   : > { %v3479_v7 = vpop.eup %3478  ;;  %3488 = vrcp.f32 %v1774_v58 }
 0x522   : > { %3490 = vrcp.f32 %v1777_v30  ;;  %3211 = vmatmul.mubr.msk.bf16.vlgmr.msra.gmra.mxu1 %vm1519_vm3, %v1877_v16  ;;  %v1853_v1 = vmul.f32 %v3479_v7, %v4223_v41 }
 0x523   : > { %3492 = vrcp.f32 %v1768_v47  ;;  %3221 = vmatpush3.bf16.msra.mxu1 %v3864_v61  ;;  %3222 = vmatprep.mubr.msk.bf16.mxu1 %vm3528_vm1, %v4522_v14  ;;  %v1780_v63 = vpop.xlane.xlu0 %1779 }
 0x524   : > { %v1771_v25 = vpop.xlane.xlu1 %1770  ;;  %v1878_v32 = vpack.c.bf16 %v1853_v1, %v1852_v3  ;;  %3232 = vmatprep.subr.bf16.mxu1 %v4522_v14 }
 0x525   : > { %3494 = vrcp.f32 %v1771_v25 }
 0x526   : > { %v3481_v2 = vpop.eup %3480  ;;  %3217 = vmatmul.mubr.msk.bf16.vlgmr.msra.gmra.mxu0 %vm1519_vm3, %v1878_v32 }
 0x527   : > { %v3483_v55 = vpop.eup %3482  ;;  %3227 = vmatpush3.bf16.msra.mxu0 %v4054_v60  ;;  %3228 = vmatprep.mubr.msk.bf16.mxu0 %vm3528_vm1, %v4522_v14  ;;  %v1789_v41 = vpop.xlane.xlu0 %1788  ;;  %v1856_v22 = vmul.f32 %v3481_v2, %v4239_v39  ;;  %v4523_v39 = vld [vmem:[#allocation2_spill] sm:$0xff] }
 0x528   : > { %v3485_v54 = vpop.eup %3484  ;;  %v1786_v61 = vpop.xlane.xlu1 %1785  ;;  %3238 = vmatprep.subr.bf16.mxu0 %v4522_v14  ;;  %v1857_v49 = vmul.f32 %v3483_v55, %v4237_v18 }
 0x529   : > { %3496 = vrcp.f32 %v1786_v61  ;;  %v1854_v59 = vmul.f32 %v3485_v54, %v4228_v20 }
 0x52a   : > { %v3487_v19 = vpop.eup %3486  ;;  %3498 = vrcp.f32 %v1789_v41  ;;  %v1880_v21 = vpack.c.bf16 %v1857_v49, %v1856_v22 }
 0x52b   : > { %3500 = vrcp.f32 %v1780_v63  ;;  %v1855_v60 = vmul.f32 %v3487_v19, %v4245_v24 }
 0x52c   : > { %v1783_v36 = vpop.xlane.xlu1 %1782 }
 0x52d   : > { %3502 = vrcp.f32 %v1783_v36  ;;  %v1879_v9 = vpack.c.bf16 %v1855_v60, %v1854_v59 }
 0x52e   : > { %v3489_v56 = vpop.eup %3488  ;;  %3229 = vmatmul.mubr.msk.bf16.vlgmr.msra.gmra.mxu0 %vm1519_vm3, %v1880_v21 }
 0x52f   : > { %v3491_v42 = vpop.eup %3490  ;;  %3223 = vmatmul.mubr.msk.bf16.vlgmr.msra.gmra.mxu1 %vm1519_vm3, %v1879_v9  ;;  %3239 = vmatpush3.bf16.msra.mxu0 %v4066_v34  ;;  %v1860_v20 = vmul.f32 %v3489_v56, %v4255_v5 }
 0x530   : > { %v3493_v18 = vpop.eup %3492  ;;  %3233 = vmatpush3.bf16.msra.mxu1 %v4523_v39  ;;  %3234 = vmatprep.mubr.msk.bf16.mxu1 %vm3528_vm1, %v4522_v14  ;;  %v1861_v24 = vmul.f32 %v3491_v42, %v4253_v23 }
 0x531   : > { %3240 = vmatprep.mubr.msk.bf16.mxu0 %vm3528_vm1, %v4522_v14  ;;  %3244 = vmatprep.subr.bf16.mxu1 %v4522_v14  ;;  %v1858_v34 = vmul.f32 %v3493_v18, %v4247_v12 }
 0x532   : > { %v3495_v26 = vpop.eup %3494  ;;  %3250 = vmatprep.subr.bf16.mxu0 %v4522_v14  ;;  %v1882_v33 = vpack.c.bf16 %v1861_v24, %v1860_v20  ;;  %v3370_v20 = vld [vmem:[%s4513_s5 + $0x8] sm:$0xff]  }
 0x533   : > { %v1859_v51 = vmul.f32 %v3495_v26, %v4261_v50 }
 0x535   : > { %v1881_v27 = vpack.c.bf16 %v1859_v51, %v1858_v34 }
 0x536   : > { %v3497_v4 = vpop.eup %3496  ;;  %3241 = vmatmul.mubr.msk.bf16.vlgmr.msra.gmra.mxu0 %vm1519_vm3, %v1882_v33  ;;  %v1792_v62 = vpop.xlane.xlu0 %1791 }
 0x537   : > { %v3499_v5 = vpop.eup %3498  ;;  %3235 = vmatmul.mubr.msk.bf16.vlgmr.msra.gmra.mxu1 %vm1519_vm3, %v1881_v27  ;;  %3251 = vmatpush3.bf16.msra.mxu0 %v4322_v46  ;;  %v1864_v12 = vmul.f32 %v3497_v4, %v4272_v11 }
 0x538   : > { %v3501_v23 = vpop.eup %3500  ;;  %3245 = vmatpush3.bf16.msra.mxu1 %v4524_v44  ;;  %3246 = vmatprep.mubr.msk.bf16.mxu1 %vm3528_vm1, %v4522_v14  ;;  %v1865_v50 = vmul.f32 %v3499_v5, %v4270_v48 }
 0x539   : > { %3252 = vmatprep.mubr.msk.bf16.mxu0 %vm3528_vm1, %v4522_v14  ;;  %3256 = vmatprep.subr.bf16.mxu1 %v4522_v14  ;;  %v1862_v0 = vmul.f32 %v3501_v23, %v4263_v17  ;;  %v3371_v23 = vld [vmem:[%s4513_s5] sm:$0xff]  }
 0x53a   : > { %v3503_v15 = vpop.eup %3502  ;;  %3262 = vmatprep.subr.bf16.mxu0 %v4522_v14  ;;  %v1884_v57 = vpack.c.bf16 %v1865_v50, %v1864_v12 }
 0x53b   : > { %v1798_v46 = vpop.xlane.xlu1 %1797  ;;  %v1863_v28 = vmul.f32 %v3503_v15, %v4280_v29 }
 0x53c   : > { %3504 = vrcp.f32 %v1798_v46 }
 0x53d   : > { %v1883_v52 = vpack.c.bf16 %v1863_v28, %v1862_v0  ;;  %3506 = vrcp.f32 %v1792_v62 }
 0x53e   : > { %v1801_v11 = vpop.xlane.xlu0 %1800  ;;  %3253 = vmatmul.mubr.msk.bf16.vlgmr.msra.gmra.mxu0 %vm1519_vm3, %v1884_v57 }
 0x53f   : > { %v1795_v48 = vpop.xlane.xlu1 %1794  ;;  %3508 = vrcp.f32 %v1801_v11  ;;  %3247 = vmatmul.mubr.msk.bf16.vlgmr.msra.gmra.mxu1 %vm1519_vm3, %v1883_v52  ;;  %3264 = vmatprep.mubr.msk.bf16.mxu0 %vm3528_vm1, %v4522_v14 }
 0x540   : > { %3510 = vrcp.f32 %v1795_v48  ;;  %3257 = vmatpush3.bf16.msra.mxu1 %v4324_v6  ;;  %3258 = vmatprep.mubr.msk.bf16.mxu1 %vm3528_vm1, %v4522_v14 }
 0x541   : > { %3268 = vmatprep.subr.bf16.mxu1 %v4522_v14 }
 0x542   : > { %v1804_v17 = vpop.xlane.xlu0 %1803 }
 0x543   : > { %v1807_v29 = vpop.xlane.xlu1 %1806  ;;  %3512 = vrcp.f32 %v1804_v17 }
 0x544   : > { %3514 = vrcp.f32 %v1807_v29 }
 0x546   : > { %v2547_v47 = vpop.permute.xlu0 %2546 }
 0x547   : > { %3263 = vmatpush3.bf16.msra.mxu0 %v2547_v47  ;;  %v2594_v25 = vpop.permute.xlu1 %2593 }
 0x548   : > { %3274 = vmatprep.subr.bf16.mxu0 %v3370_v20 }
 0x549   : > { %v3505_v38 = vpop.eup %3504 }
 0x54a   : > { %v3507_v31 = vpop.eup %3506  ;;  %v1868_v37 = vmul.f32 %v3505_v38, %v4298_v8 }
 0x54b   : > { %v1866_v6 = vmul.f32 %v3507_v31, %v4289_v13 }
 0x54c   : > { %v3509_v35 = vpop.eup %3508 }
 0x54d   : > { %v3511_v43 = vpop.eup %3510  ;;  %v1869_v58 = vmul.f32 %v3509_v35, %v4304_v45 }
 0x54e   : > { %v1867_v30 = vmul.f32 %v3511_v43, %v4302_v40 }
 0x54f   : > { %v1886_v16 = vpack.c.bf16 %v1869_v58, %v1868_v37 }
 0x550   : > { %v3513_v7 = vpop.eup %3512  ;;  %v1885_v3 = vpack.c.bf16 %v1867_v30, %v1866_v6 }
 0x551   : > { %v3515_v1 = vpop.eup %3514  ;;  %3265 = vmatmul.mubr.msk.bf16.vlgmr.msra.gmra.mxu0 %vm1519_vm3, %v1886_v16  ;;  %v1870_v8 = vmul.f32 %v3513_v7, %v4308_v53 }
 0x552   : > { %3259 = vmatmul.mubr.msk.bf16.vlgmr.msra.gmra.mxu1 %vm1519_vm3, %v1885_v3  ;;  %v1871_v45 = vmul.f32 %v3515_v1, %v4312_v10  ;;  %3275 = vmatpush3.bf16.msra.mxu0 %v3370_v20 }
 0x553   : > { %3269 = vmatpush3.bf16.msra.mxu1 %v2594_v25  ;;  %3270 = vmatprep.mubr.msk.bf16.mxu1 %vm3528_vm1, %v4522_v14 }
 0x554   : > { %v1887_v13 = vpack.c.bf16 %v1871_v45, %v1870_v8  ;;  %3276 = vmatprep.subr.bf16.mxu0 %v3371_v23 }
 0x556   : > { %3277 = vmatpush3.bf16.msra.mxu0 %v3371_v23 }
 0x55a   : > { %3271 = vmatmul.mubr.msk.bf16.vlgmr.msra.gmra.mxu1 %vm1519_vm3, %v1887_v13 }
 0x56c   : > { %v4419_v40 = vpop.f32.mrf.mxu0 }
 0x56e   : > { %v3182_v63 = vpop.f32.mrf.mxu0 }
 0x570   : > { %v4421_v32 = vpop.f32.mrf.mxu0 }
 0x572   : > { %v3183_v2 = vpop.f32.mrf.mxu0 }
 0x5d2   : > { %v1975_v55 = vpop.f32.mrf.mxu1 }
 0x5d4   : > { %v3188_v54 = vpop.f32.mrf.mxu1 }
 0x5d6   : > { %v1978_v61 = vpop.f32.mrf.mxu1  ;;  %v2022_v41 = vpop.f32.mrf.mxu0 }
 0x5d7   : > { %v3308_v22 = vpack.i.bf16 %v1978_v61, %v1975_v55 }
 0x5d8   : > { %v3189_v49 = vpop.f32.mrf.mxu1  ;;  %v3194_v14 = vpop.f32.mrf.mxu0 }
 0x5d9   : > { %3309 = vrot.lane.b32.xlu0 %v3308_v22, %s3531_s10 }
 0x5da   : > { %v2025_v53 = vpop.f32.mrf.mxu0  ;;  %v2069_v10 = vpop.f32.mrf.mxu1 }
 0x5db   : > { %v3313_v19 = vpack.i.bf16 %v2025_v53, %v2022_v41 }
 0x5dc   : > { %v3195_v59 = vpop.f32.mrf.mxu0  ;;  %v3200_v60 = vpop.f32.mrf.mxu1 }
 0x5dd   : > { %3314 = vrot.lane.b32.xlu0 %v3313_v19, %s3532_s28 }
 0x5de   : > { %v2072_v36 = vpop.f32.mrf.mxu1  ;;  %v4425_v21 = vpop.f32.mrf.mxu0 }
 0x5df   : > { %v3318_v9 = vpack.i.bf16 %v2072_v36, %v2069_v10 }
 0x5e0   : > { %v3201_v56 = vpop.f32.mrf.mxu1  ;;  %v3206_v42 = vpop.f32.mrf.mxu0 }
 0x5e1   : > { %3319 = vrot.lane.b32.xlu0 %v3318_v9, %s3533_s29 }
 0x5e2   : > { %v4428_v18 = vpop.f32.mrf.mxu0  ;;  %v2163_v39 = vpop.f32.mrf.mxu1 }
 0x5e4   : > { %v3207_v24 = vpop.f32.mrf.mxu0  ;;  %v3212_v26 = vpop.f32.mrf.mxu1 }
 0x5e6   : > { %v2166_v34 = vpop.f32.mrf.mxu1  ;;  %v2210_v51 = vpop.f32.mrf.mxu0 }
 0x5e7   : > { %v3323_v33 = vpack.i.bf16 %v2166_v34, %v2163_v39 }
 0x5e8   : > { %v3213_v27 = vpop.f32.mrf.mxu1  ;;  %v3218_v4 = vpop.f32.mrf.mxu0 }
 0x5e9   : > { %3324 = vrot.lane.b32.xlu1 %v3323_v33, %s3531_s10 }
 0x5ea   : > { %v2213_v5 = vpop.f32.mrf.mxu0 }
 0x5eb   : > { %v3328_v44 = vpack.i.bf16 %v2213_v5, %v2210_v51 }
 0x5ec   : > { %v3219_v12 = vpop.f32.mrf.mxu0 }
 0x5ed   : > { %3329 = vrot.lane.b32.xlu1 %v3328_v44, %s3532_s28 }
 0x5ee   : > { %v4438_v50 = vpop.f32.mrf.mxu0 }
 0x5ef   : > { %v2257_v15 = vpop.f32.mrf.mxu1 }
 0x5f0   : > { %v3230_v62 = vpop.f32.mrf.mxu0 }
 0x5f1   : > { %v3224_v46 = vpop.f32.mrf.mxu1 }
 0x5f2   : > { %v4440_v0 = vpop.f32.mrf.mxu0 }
 0x5f3   : > { %v2260_v28 = vpop.f32.mrf.mxu1 }
 0x5f4   : > { %v3333_v57 = vpack.i.bf16 %v2260_v28, %v2257_v15  ;;  %v3231_v52 = vpop.f32.mrf.mxu0 }
 0x5f5   : > { %v3225_v11 = vpop.f32.mrf.mxu1 }
 0x5f6   : > { %3334 = vrot.lane.b32.xlu1 %v3333_v57, %s3533_s29  ;;  %v2398_v48 = vpop.f32.mrf.mxu0 }
 0x5f7   : > { %v2351_v17 = vpop.f32.mrf.mxu1 }
 0x5f8   : > { %v3242_v29 = vpop.f32.mrf.mxu0 }
 0x5f9   : > { %v3236_v47 = vpop.f32.mrf.mxu1 }
 0x5fa   : > { %v2401_v38 = vpop.f32.mrf.mxu0 }
 0x5fb   : > { %v2354_v31 = vpop.f32.mrf.mxu1  ;;  %v3343_v30 = vpack.i.bf16 %v2401_v38, %v2398_v48 }
 0x5fc   : > { %v3338_v35 = vpack.i.bf16 %v2354_v31, %v2351_v17  ;;  %v3243_v43 = vpop.f32.mrf.mxu0 }
 0x5fd   : > { %v3237_v37 = vpop.f32.mrf.mxu1 }
 0x5fe   : > { %3339 = vrot.lane.b32.xlu0 %v3338_v35, %s3531_s10  ;;  %v4444_v58 = vpop.f32.mrf.mxu0 }
 0x5ff   : > { %v2445_v6 = vpop.f32.mrf.mxu1 }
 0x600   : > { %v3254_v16 = vpop.f32.mrf.mxu0 }
 0x601   : > { %v3248_v7 = vpop.f32.mrf.mxu1 }
 0x602   : > { %3344 = vrot.lane.b32.xlu0 %v3343_v30, %s3532_s28  ;;  %v4447_v3 = vpop.f32.mrf.mxu0 }
 0x603   : > { %v2448_v1 = vpop.f32.mrf.mxu1 }
 0x604   : > { %v3358_v25 = vpack.i.bf16 %v2448_v1, %v2445_v6  ;;  %v3255_v8 = vpop.f32.mrf.mxu0 }
 0x605   : > { %v3249_v45 = vpop.f32.mrf.mxu1 }
 0x606   : > { %3359 = vrot.lane.b32.xlu0 %v3358_v25, %s3533_s29 }
 0x611   : > { %v2586_v13 = vpop.f32.mrf.mxu0 }
 0x612   : > { %v2539_v63 = vpop.f32.mrf.mxu1 }
 0x613   : > { %v3266_v2 = vpop.f32.mrf.mxu0 }
 0x614   : > { %v3260_v55 = vpop.f32.mrf.mxu1 }
 0x615   : > { %v2589_v54 = vpop.f32.mrf.mxu0 }
 0x616   : > { %v2542_v61 = vpop.f32.mrf.mxu1  ;;  %v3353_v53 = vpack.i.bf16 %v2589_v54, %v2586_v13 }
 0x617   : > { %v3348_v41 = vpack.i.bf16 %v2542_v61, %v2539_v63  ;;  %v3267_v22 = vpop.f32.mrf.mxu0 }
 0x618   : > { %v3261_v49 = vpop.f32.mrf.mxu1 }
 0x619   : > { %3349 = vrot.lane.b32.xlu1 %v3348_v41, %s3531_s10 }
 0x61a   : > { %v2633_v14 = vpop.f32.mrf.mxu1 }
 0x61c   : > { %v3272_v10 = vpop.f32.mrf.mxu1 }
 0x61d   : > { %3354 = vrot.lane.b32.xlu1 %v3353_v53, %s3532_s28 }
 0x61e   : > { %v2636_v19 = vpop.f32.mrf.mxu1 }
 0x61f   : > { %v3363_v59 = vpack.i.bf16 %v2636_v19, %v2633_v14 }
 0x620   : > { %v3273_v60 = vpop.f32.mrf.mxu1 }
 0x621   : > { %3364 = vrot.lane.b32.xlu1 %v3363_v59, %s3533_s29 }
 0x64b   : > { %v3310_v36 = vpop.permute.xlu0 %3309 }
 0x64c   : > { %v3312_v56 = vunpack.i.h.bf16 %v3310_v36  ;;  %v3311_v42 = vunpack.i.l.bf16 %v3310_v36 }
 0x64e   : > { %v2737_v26 = vsel %vm624_vm2, %v4421_v32, %v3312_v56  ;;  %v2736_v34 = vsel %vm624_vm2, %v4419_v40, %v3311_v42 }
 0x64f   : > { %v3315_v9 = vpop.permute.xlu0 %3314 }
 0x650   : > { %v3317_v39 = vunpack.i.h.bf16 %v3315_v9  ;;  %v3316_v20 = vunpack.i.l.bf16 %v3315_v9 }
 0x652   : > { %v2744_v27 = vsel %vm1519_vm3, %v2736_v34, %v3316_v20  ;;  %v2745_v4 = vsel %vm1519_vm3, %v2737_v26, %v3317_v39 }
 0x653   : > { %v3320_v24 = vpop.permute.xlu0 %3319 }
 0x654   : > { %v3322_v51 = vunpack.i.h.bf16 %v3320_v24  ;;  %v3321_v33 = vunpack.i.l.bf16 %v3320_v24 }
 0x656   : > { %v2753_v5 = vsel %vm2752_vm4, %v2744_v27, %v3321_v33  ;;  %v2754_v23 = vsel %vm2752_vm4, %v2745_v4, %v3322_v51 }
 0x657   : > { %v2761_v44 = vpack.c.bf16 %v2754_v23, %v2753_v5 }
 0x659   : > { %3278 = vmatprep.mubr.msk.bf16.mxu0 %vm350_vm0, %v2761_v44 }
 0x65b   : > { %v3325_v12 = vpop.permute.xlu1 %3324 }
 0x65c   : > { %v3327_v62 = vunpack.i.h.bf16 %v3325_v12  ;;  %v3326_v32 = vunpack.i.l.bf16 %v3325_v12 }
 0x65e   : > { %v2739_v57 = vsel %vm624_vm2, %v4428_v18, %v3327_v62  ;;  %v2738_v52 = vsel %vm624_vm2, %v4425_v21, %v3326_v32 }
 0x65f   : > { %v3330_v15 = vpop.permute.xlu1 %3329 }
 0x660   : > { %v3332_v46 = vunpack.i.h.bf16 %v3330_v15  ;;  %v3331_v28 = vunpack.i.l.bf16 %v3330_v15 }
 0x662   : > { %v2747_v17 = vsel %vm1519_vm3, %v2739_v57, %v3332_v46  ;;  %v2746_v29 = vsel %vm1519_vm3, %v2738_v52, %v3331_v28 }
 0x668   : > { %v3335_v40 = vpop.permute.xlu1 %3334 }
 0x669   : > { %v3337_v11 = vunpack.i.h.bf16 %v3335_v40  ;;  %v3336_v48 = vunpack.i.l.bf16 %v3335_v40 }
 0x66b   : > { %v2756_v47 = vsel %vm2752_vm4, %v2747_v17, %v3337_v11  ;;  %v2755_v38 = vsel %vm2752_vm4, %v2746_v29, %v3336_v48 }
 0x66c   : > { %v2762_v31 = vpack.c.bf16 %v2756_v47, %v2755_v38 }
 0x66e   : > { %3279 = vmatmul.mubr.msk.bf16.vlgmr.msra.gmra.mxu0 %vm350_vm0, %v2762_v31 }
 0x670   : > { %v3340_v35 = vpop.permute.xlu0 %3339 }
 0x671   : > { %v3342_v37 = vunpack.i.h.bf16 %v3340_v35  ;;  %v3341_v18 = vunpack.i.l.bf16 %v3340_v35 }
 0x673   : > { %v2741_v16 = vsel %vm624_vm2, %v4440_v0, %v3342_v37  ;;  %v2740_v7 = vsel %vm624_vm2, %v4438_v50, %v3341_v18 }
 0x674   : > { %v3345_v43 = vpop.permute.xlu0 %3344 }
 0x675   : > { %v3347_v6 = vunpack.i.h.bf16 %v3345_v43  ;;  %v3346_v30 = vunpack.i.l.bf16 %v3345_v43 }
 0x677   : > { %v2748_v8 = vsel %vm1519_vm3, %v2740_v7, %v3346_v30  ;;  %v2749_v45 = vsel %vm1519_vm3, %v2741_v16, %v3347_v6 }
 0x678   : > { %v3360_v21 = vpop.permute.xlu0 %3359 }
 0x679   : > { %v3362_v1 = vunpack.i.h.bf16 %v3360_v21  ;;  %v3361_v25 = vunpack.i.l.bf16 %v3360_v21 }
 0x67b   : > { %v2757_v13 = vsel %vm2752_vm4, %v2748_v8, %v3361_v25  ;;  %v2758_v63 = vsel %vm2752_vm4, %v2749_v45, %v3362_v1 }
 0x67c   : > { %v2763_v2 = vpack.c.bf16 %v2758_v63, %v2757_v13 }
 0x67e   : > { %3282 = vmatprep.mubr.msk.bf16.mxu0 %vm350_vm0, %v2763_v2 }
 0x68b   : > { %v3350_v55 = vpop.permute.xlu1 %3349 }
 0x68c   : > { %v3352_v61 = vunpack.i.h.bf16 %v3350_v55  ;;  %v3351_v0 = vunpack.i.l.bf16 %v3350_v55 }
 0x68e   : > { %v2743_v49 = vsel %vm624_vm2, %v4447_v3, %v3352_v61  ;;  %v2742_v14 = vsel %vm624_vm2, %v4444_v58, %v3351_v0  ;;  %v2983_v3 = vld [vmem:[%s4514_s6] ss:$0 sm:$0xff] }
 0x68f   : > { %v3355_v54 = vpop.permute.xlu1 %3354 }
 0x690   : > { %v3357_v41 = vunpack.i.h.bf16 %v3355_v54  ;;  %v3356_v50 = vunpack.i.l.bf16 %v3355_v54 }
 0x692   : > { %v2751_v19 = vsel %vm1519_vm3, %v2743_v49, %v3357_v41  ;;  %v2750_v59 = vsel %vm1519_vm3, %v2742_v14, %v3356_v50 }
 0x693   : > { %v3365_v22 = vpop.permute.xlu1 %3364 }
 0x694   : > { %v3367_v53 = vunpack.i.h.bf16 %v3365_v22  ;;  %v3366_v10 = vunpack.i.l.bf16 %v3365_v22 }
 0x696   : > { %v2759_v60 = vsel %vm2752_vm4, %v2750_v59, %v3366_v10  ;;  %v2760_v36 = vsel %vm2752_vm4, %v2751_v19, %v3367_v53 }
 0x697   : > { %v2764_v9 = vpack.c.bf16 %v2760_v36, %v2759_v60 }
 0x699   : > { %3283 = vmatmul.mubr.msk.bf16.gmra.mxu0 %vm350_vm0, %v2764_v9 }
 0x72e   : > { %v3280_v56 = vpop.f32.mrf.mxu0 }
 0x72f   : > { %v2843_v39 = vadd.f32 %v3280_v56, %v2983_v3 }
 0x730   : > { %v2834_v58 = vpop.f32.mrf.mxu0 }
 0x731   : > { %v2835_v42 = vadd.f32 %v2983_v3, %v2834_v58  ;;  %2867 = vst.msk [vmem:[%s339_s21 + $0x10] sm:$0xff] %vm350_vm0, %v2843_v39 }
 0x732   : > { %v3281_v20 = vpop.f32.mrf.mxu0 }
 0x733   : > { %2865 = vst.msk [vmem:[%s339_s21] sm:$0xff] %vm350_vm0, %v2835_v42  ;;  %v2846_v34 = vadd.f32 %v3281_v20, %v2983_v3 }
 0x734   : > { %v2837_v24 = vpop.f32.mrf.mxu0 }
 0x735   : > { %v2838_v26 = vadd.f32 %v2983_v3, %v2837_v24  ;;  %2868 = vst.msk [vmem:[%s339_s21 + $0x18] sm:$0xff] %vm350_vm0, %v2846_v34 }
 0x737   : > { %2866 = vst.msk [vmem:[%s339_s21 + $0x8] sm:$0xff] %vm350_vm0, %v2838_v26 }
 0x759   : > { %v3284_v51 = vpop.f32.mrf.mxu0 }
 0x75a   : > { %v2859_v4 = vadd.f32 %v3284_v51, %v2983_v3 }
 0x75b   : > { %v2850_v33 = vpop.f32.mrf.mxu0 }
 0x75c   : > { %v2851_v27 = vadd.f32 %v2983_v3, %v2850_v33  ;;  %2871 = vst.msk [vmem:[%s339_s21 + $0x30] sm:$0xff] %vm350_vm0, %v2859_v4 }
 0x75d   : > { %v3285_v5 = vpop.f32.mrf.mxu0 }
 0x75e   : > { %2869 = vst.msk [vmem:[%s339_s21 + $0x20] sm:$0xff] %vm350_vm0, %v2851_v27  ;;  %v2862_v12 = vadd.f32 %v3285_v5, %v2983_v3 }
 0x75f   : > { %v2853_v23 = vpop.f32.mrf.mxu0 }
 0x760   : > { %v2854_v44 = vadd.f32 %v2983_v3, %v2853_v23  ;;  %2872 = vst.msk [vmem:[%s339_s21 + $0x38] sm:$0xff] %vm350_vm0, %v2862_v12 }
 0x762   : > { %2870 = vst.msk [vmem:[%s339_s21 + $0x28] sm:$0xff] %vm350_vm0, %v2854_v44 }
 0x763 PF: > { %s19_s30 = sadd.s32 1, %s3522_s30  }
 0x764   : > { %p16_p4 = scmp.ge.s32.totalorder %s19_s30, 4  }
 0x766   :  { %18 = sbr.rel (!%p16_p4) target bundleno = 1 (0x1), region = 86 }

</bundles_post_ra>
